<compile_context>
chip_gen: v6e
topology: v6e:2x2x1
jax: 0.10.0
libtpu: 0.0.40
codegen_flags: <defaults>
</compile_context>

<pallas_src>
import numpy as np
import jax
import jax.numpy as jnp
from jax.experimental import pallas as pl
from jax.experimental.pallas import tpu as pltpu


# --------------------------------------------------------------------------- dims
def tinyvgg_dims(C, H, W):
    assert H % 4 == 0 and W % 4 == 0, "two 2x2 maxpools require H, W % 4 == 0"
    d = {}
    d["Wp1"] = W + 2                       # padded row stride, block 1
    d["P1"] = (H + 2) * d["Wp1"]           # padded flattened length, block 1
    d["Q1"] = (H - 1) * d["Wp1"] + W       # conv output (flattened, with junk cols)
    d["V1"] = d["Q1"] - d["Wp1"] - 1       # shift-max output length
    d["H2"], d["W2"] = H // 2, W // 2
    d["Wp2"] = d["W2"] + 2
    d["P2"] = (d["H2"] + 2) * d["Wp2"]
    d["Q2"] = (d["H2"] - 1) * d["Wp2"] + d["W2"]
    d["V2"] = d["Q2"] - d["Wp2"] - 1
    d["H4"], d["W4"] = d["H2"] // 2, d["W2"] // 2
    return d


# --------------------------------------------------------------------------- kernel
def make_tinyvgg_kernel(C, d):
    Wp1, Q1, V1 = d["Wp1"], d["Q1"], d["V1"]
    Wp2, Q2, V2 = d["Wp2"], d["Q2"], d["V2"]

    def kernel(x_ref, w1_ref, b1_ref, w2_ref, b2_ref, w3_ref, b3_ref,
               w4_ref, b4_ref, wfc_ref, bfc_ref, m1_ref, m2_ref,
               s1_ref, s2_ref, o_ref, padb_ref, pads_ref, col_ref):
        # x_ref   : (1, C, P1)  zero-padded, lane-flattened NCHW image
        # wN_ref  : (C, 9C)     conv weights, columns ordered k*C + ci, k = 3*dy+dx
        # bN_ref  : (C, 1)
        # wfc_ref : (C, F, O)   classifier weight in the kernel's (c, y*W4+x) order
        # mN_ref  : (1, QN)     1/0 mask killing the junk (x >= W) columns
        # sN_ref  : (VN, ...)   0/1 selection matrices (pool subsample + re-pad)
        # padb/pads : VMEM scratch for the re-padded activations; col : im2col rows

        def conv3x3_relu(load, w_ref, b_ref, stride, q):
            # Stack the 9 tap-shifted views along sublanes, then one MXU matmul.
            for k in range(9):
                dy, dx = divmod(k, 3)
                col_ref[k * C:(k + 1) * C, :q] = load(dy * stride + dx, q)
            acc = jnp.dot(w_ref[...], col_ref[:, :q],
                          preferred_element_type=jnp.float32)
            return jnp.maximum(acc + b_ref[...], 0.0)

        def maxpool2x2(a, s_ref, stride, q, v):
            # shift-max on the VPU, then a 0/1 selection matmul on the MXU does
            # the stride-2 subsample and the re-pad for the next layer.
            hmx = jnp.maximum(a[:, :q - 1], a[:, 1:q])
            vmx = jnp.maximum(hmx[:, :v], hmx[:, stride:stride + v])
            return jnp.dot(vmx, s_ref[...], preferred_element_type=jnp.float32)

        # ---------------- block 1 ----------------
        a = conv3x3_relu(lambda o, q: x_ref[0, :, o:o + q], w1_ref, b1_ref, Wp1, Q1)
        padb_ref[...] = jnp.zeros(padb_ref.shape, padb_ref.dtype)
        padb_ref[:, Wp1 + 1:Wp1 + 1 + Q1] = a * m1_ref[...]     # re-pad, zero junk
        a = conv3x3_relu(lambda o, q: padb_ref[:, o:o + q], w2_ref, b2_ref, Wp1, Q1)
        p1 = maxpool2x2(a, s1_ref, Wp1, Q1, V1)                 # (C, P2), padded

        # ---------------- block 2 ----------------
        a = conv3x3_relu(lambda o, q: p1[:, o:o + q], w3_ref, b3_ref, Wp2, Q2)
        pads_ref[...] = jnp.zeros(pads_ref.shape, pads_ref.dtype)
        pads_ref[:, Wp2 + 1:Wp2 + 1 + Q2] = a * m2_ref[...]
        a = conv3x3_relu(lambda o, q: pads_ref[:, o:o + q], w4_ref, b4_ref, Wp2, Q2)
        feat = maxpool2x2(a, s2_ref, Wp2, Q2, V2)               # (C, H4*W4)

        # ---------------- classifier ----------------
        logits = bfc_ref[...]                                   # (1, O)
        for c in range(C):                                      # unrolled, tiny matmuls
            logits = logits + jnp.dot(feat[c:c + 1, :], wfc_ref[c],
                                      preferred_element_type=jnp.float32)
        o_ref[0] = logits.astype(o_ref.dtype)

    return kernel


# --------------------------------------------------------------------------- wrapper
def fused_forward(x_flat, kp, *, C, H, W, O):
    B = x_flat.shape[0]
    d = tinyvgg_dims(C, H, W)
    P1, Q1, V1 = d["P1"], d["Q1"], d["V1"]
    P2, Q2, V2 = d["P2"], d["Q2"], d["V2"]
    F = d["H4"] * d["W4"]
    kernel = make_tinyvgg_kernel(C, d)
    c2 = lambda i: (0, 0)
    c3 = lambda i: (0, 0, 0)

    out = pl.pallas_call(
        kernel,
        out_shape=jax.ShapeDtypeStruct((B, 1, O), jnp.float32),
        grid=(B,),
        in_specs=[
            pl.BlockSpec((1, C, P1), lambda i: (i, 0, 0)),       # image i
            pl.BlockSpec((C, 9 * C), c2), pl.BlockSpec((C, 1), c2),   # conv1
            pl.BlockSpec((C, 9 * C), c2), pl.BlockSpec((C, 1), c2),   # conv2
            pl.BlockSpec((C, 9 * C), c2), pl.BlockSpec((C, 1), c2),   # conv3
            pl.BlockSpec((C, 9 * C), c2), pl.BlockSpec((C, 1), c2),   # conv4
            pl.BlockSpec((C, F, O), c3), pl.BlockSpec((1, O), c2),    # classifier
            pl.BlockSpec((1, Q1), c2), pl.BlockSpec((1, Q2), c2),     # junk masks
            pl.BlockSpec((V1, P2), c2), pl.BlockSpec((V2, F), c2),    # pool selectors
        ],
        out_specs=pl.BlockSpec((1, 1, O), lambda i: (i, 0, 0)),
        scratch_shapes=[
            pltpu.VMEM((C, P1), jnp.float32),      # re-padded activation, block 1
            pltpu.VMEM((C, P2), jnp.float32),      # re-padded activation, block 2
            pltpu.VMEM((9 * C, Q1), jnp.float32),  # im2col rows (reused by block 2)
        ],
        compiler_params=pltpu.CompilerParams(
            dimension_semantics=("parallel",)),    # one image per TensorCore
    )(x_flat, kp["w1"], kp["b1"], kp["w2"], kp["b2"], kp["w3"], kp["b3"],
      kp["w4"], kp["b4"], kp["w_fc"], kp["b_fc"], kp["mask1"], kp["mask2"],
      kp["sel1"], kp["sel2"])
    return out.reshape(B, O)


# --------------------------------------------------------------------------- params
def init_params(key, input_shape, hidden_units, output_shape):
    """Deterministic synthetic parameters with exactly the nn.Module tensor shapes."""
    ks = jax.random.split(key, 10)

    def conv(kw, kb, cin, cout):
        w = jax.random.normal(kw, (cout, cin, 3, 3), jnp.float32) / (9.0 * cin) ** 0.5
        b = jax.random.normal(kb, (cout,), jnp.float32) * 0.01
        return w, b                                   # OIHW, like nn.Conv2d

    p = {}
    p["w1"], p["b1"] = conv(ks[0], ks[1], input_shape, hidden_units)
    p["w2"], p["b2"] = conv(ks[2], ks[3], hidden_units, hidden_units)
    p["w3"], p["b3"] = conv(ks[4], ks[5], hidden_units, hidden_units)
    p["w4"], p["b4"] = conv(ks[6], ks[7], hidden_units, hidden_units)
    fan_in = hidden_units * 7 * 7
    p["w_fc"] = jax.random.normal(ks[8], (output_shape, fan_in), jnp.float32) / fan_in ** 0.5
    p["b_fc"] = jax.random.normal(ks[9], (output_shape,), jnp.float32) * 0.01
    return p


def prepare_kernel_params(p, input_shape, hidden_units, output_shape, H=28, W=28):
    """One-time layout work (NOT per forward): tap-major conv weights with channel
    zero padding, classifier permutation, junk-column masks, pool selection mats."""
    C = hidden_units
    assert input_shape <= C, "kernel pads input channels up to hidden_units"
    d = tinyvgg_dims(C, H, W)
    F = d["H4"] * d["W4"]

    def conv_w(w_oihw):
        co, ci = w_oihw.shape[:2]
        w = jnp.transpose(w_oihw, (0, 2, 3, 1))                      # (co, 3, 3, ci)
        if ci < C:
            w = jnp.pad(w, ((0, 0), (0, 0), (0, 0), (0, C - ci)))    # zero channels
        return w.reshape(co, 9 * C)                                  # col = k*C + ci

    kp = {}
    for n in ("1", "2", "3", "4"):
        kp["w" + n] = conv_w(p["w" + n])
        kp["b" + n] = p["b" + n].reshape(C, 1)

    # PyTorch flattens NCHW as (c, y, x); kernel holds feat as (c, y*W4 + x).
    kp["w_fc"] = p["w_fc"].reshape(output_shape, C, F).transpose(1, 2, 0)  # (C, F, O)
    kp["b_fc"] = p["b_fc"].reshape(1, output_shape)

    # masks that zero the invalid (x >= W) columns of the flattened conv output
    q1 = np.arange(d["Q1"])
    kp["mask1"] = jnp.asarray(((q1 % d["Wp1"]) < W).astype(np.float32)[None, :])
    q2 = np.arange(d["Q2"])
    kp["mask2"] = jnp.asarray(((q2 % d["Wp2"]) < d["W2"]).astype(np.float32)[None, :])

    # 0/1 selection matrices: stride-2 subsample of the shift-max output and
    # placement into the next layer's padded flattened layout (or compact feat).
    s1 = np.zeros((d["V1"], d["P2"]), np.float32)
    for y in range(d["H2"]):
        for x in range(d["W2"]):
            s1[2 * y * d["Wp1"] + 2 * x, (y + 1) * d["Wp2"] + (x + 1)] = 1.0
    kp["sel1"] = jnp.asarray(s1)

    s2 = np.zeros((d["V2"], F), np.float32)
    for y in range(d["H4"]):
        for x in range(d["W4"]):
            s2[2 * y * d["Wp2"] + 2 * x, y * d["W4"] + x] = 1.0
    kp["sel2"] = jnp.asarray(s2)
    return kp


def prepare_input(x_nchw, hidden_units):
    """NCHW -> channel zero-pad to hidden_units, spatial pad 1, lane-flatten."""
    B, cin, H, W = x_nchw.shape
    x = x_nchw.astype(jnp.float32)
    if cin < hidden_units:
        x = jnp.pad(x, ((0, 0), (0, hidden_units - cin), (0, 0), (0, 0)))
    x = jnp.pad(x, ((0, 0), (0, 0), (1, 1), (1, 1)))
    return x.reshape(B, hidden_units, (H + 2) * (W + 2))


def forward(kernel_params, x_nchw, *, hidden_units, output_shape):
    B, _, H, W = x_nchw.shape
    x_flat = prepare_input(x_nchw, hidden_units)
    return fused_forward(x_flat, kernel_params, C=hidden_units, H=H, W=W, O=output_shape)


# --------------------------------------------------------------------------- reference
def reference_forward(p, x):
    dn = ("NCHW", "OIHW", "NCHW")

    def conv(a, w, b):
        y = jax.lax.conv_general_dilated(a, w, (1, 1), ((1, 1), (1, 1)),
                                         dimension_numbers=dn,
                                         precision=jax.lax.Precision.HIGHEST)
        return jax.nn.relu(y + b[None, :, None, None])

    def pool(a):
        return jax.lax.reduce_window(a, -jnp.inf, jax.lax.max,
                                     (1, 1, 2, 2), (1, 1, 2, 2), "VALID")

    a = pool(conv(conv(x, p["w1"], p["b1"]), p["w2"], p["b2"]))
    a = pool(conv(conv(a, p["w3"], p["b3"]), p["w4"], p["b4"]))
    flat = a.reshape(a.shape[0], -1)
    return flat @ p["w_fc"].T + p["b_fc"][None, :]


# --------------------------------------------------------------------------- main
if __name__ == "__main__":
    key = jax.random.PRNGKey(0)
    k_param, k_x = jax.random.split(key)

    BATCH, IN_CH, HIDDEN, OUT = 2, 4, 8, 10
    H = W = 28     # the classifier hard-codes hidden_units * 7 * 7 -> 28x28 input
    x = jax.random.normal(k_x, (BATCH, IN_CH, H, W), jnp.float32)

    raw_params = init_params(k_param, IN_CH, HIDDEN, OUT)
    kernel_params = prepare_kernel_params(raw_params, IN_CH, HIDDEN, OUT, H, W)

    logits = forward(kernel_params, x, hidden_units=HIDDEN, output_shape=OUT)
    logits = jax.block_until_ready(logits)
    assert logits.shape == (BATCH, OUT), logits.shape
    assert logits.dtype == jnp.float32

    ref = jax.block_until_ready(reference_forward(raw_params, x))
    if not np.allclose(np.asarray(logits), np.asarray(ref), rtol=3e-2, atol=3e-2):
        raise AssertionError("Pallas kernel output mismatch vs XLA reference")

    print("KERNEL_OK")
</pallas_src>

<mosaic_0001>
module attributes {stable_mosaic.version = 11 : i64} {
  func.func @kernel(%arg0: i32, %arg1: memref<1x8x900xf32, #tpu.memory_space<vmem>>, %arg2: memref<8x72xf32, #tpu.memory_space<vmem>>, %arg3: memref<8x1xf32, #tpu.memory_space<vmem>>, %arg4: memref<8x72xf32, #tpu.memory_space<vmem>>, %arg5: memref<8x1xf32, #tpu.memory_space<vmem>>, %arg6: memref<8x72xf32, #tpu.memory_space<vmem>>, %arg7: memref<8x1xf32, #tpu.memory_space<vmem>>, %arg8: memref<8x72xf32, #tpu.memory_space<vmem>>, %arg9: memref<8x1xf32, #tpu.memory_space<vmem>>, %arg10: memref<8x49x10xf32, #tpu.memory_space<vmem>>, %arg11: memref<1x10xf32, #tpu.memory_space<vmem>>, %arg12: memref<1x838xf32, #tpu.memory_space<vmem>>, %arg13: memref<1x222xf32, #tpu.memory_space<vmem>>, %arg14: memref<807x256xf32, #tpu.memory_space<vmem>>, %arg15: memref<205x49xf32, #tpu.memory_space<vmem>>, %arg16: memref<1x1x10xf32, #tpu.memory_space<vmem>>, %arg17: memref<8x900xf32, #tpu.memory_space<vmem>>, %arg18: memref<8x256xf32, #tpu.memory_space<vmem>>, %arg19: memref<72x838xf32, #tpu.memory_space<vmem>>) attributes {dimension_semantics = [#tpu.dimension_semantics<parallel>], iteration_bounds = array<i64: 2>, scalar_prefetch = 0 : i64, scratch_operands = 3 : i64, tpu.core_type = #tpu.core_type<tc>, window_params = [{transform_indices = @transform_0, window_bounds = array<i64: 1, 8, 900>}, {pipeline_mode = #tpu.pipeline_mode<synchronous>, transform_indices = @transform_1, window_bounds = array<i64: 8, 72>}, {pipeline_mode = #tpu.pipeline_mode<synchronous>, transform_indices = @transform_2, window_bounds = array<i64: 8, 1>}, {pipeline_mode = #tpu.pipeline_mode<synchronous>, transform_indices = @transform_3, window_bounds = array<i64: 8, 72>}, {pipeline_mode = #tpu.pipeline_mode<synchronous>, transform_indices = @transform_4, window_bounds = array<i64: 8, 1>}, {pipeline_mode = #tpu.pipeline_mode<synchronous>, transform_indices = @transform_5, window_bounds = array<i64: 8, 72>}, {pipeline_mode = #tpu.pipeline_mode<synchronous>, transform_indices = @transform_6, window_bounds = array<i64: 8, 1>}, {pipeline_mode = #tpu.pipeline_mode<synchronous>, transform_indices = @transform_7, window_bounds = array<i64: 8, 72>}, {pipeline_mode = #tpu.pipeline_mode<synchronous>, transform_indices = @transform_8, window_bounds = array<i64: 8, 1>}, {pipeline_mode = #tpu.pipeline_mode<synchronous>, transform_indices = @transform_9, window_bounds = array<i64: 8, 49, 10>}, {pipeline_mode = #tpu.pipeline_mode<synchronous>, transform_indices = @transform_10, window_bounds = array<i64: 1, 10>}, {pipeline_mode = #tpu.pipeline_mode<synchronous>, transform_indices = @transform_11, window_bounds = array<i64: 1, 838>}, {pipeline_mode = #tpu.pipeline_mode<synchronous>, transform_indices = @transform_12, window_bounds = array<i64: 1, 222>}, {pipeline_mode = #tpu.pipeline_mode<synchronous>, transform_indices = @transform_13, window_bounds = array<i64: 807, 256>}, {pipeline_mode = #tpu.pipeline_mode<synchronous>, transform_indices = @transform_14, window_bounds = array<i64: 205, 49>}, {transform_indices = @transform_15, window_bounds = array<i64: 1, 1, 10>}]} {
    %c0 = arith.constant 0 : index
    %c0_0 = arith.constant 0 : index
    %c0_1 = arith.constant 0 : index
    %0 = vector.load %arg1[%c0, %c0_0, %c0_1] : memref<1x8x900xf32, #tpu.memory_space<vmem>>, vector<1x8x838xf32>
    %1 = vector.shape_cast %0 : vector<1x8x838xf32> to vector<8x838xf32>
    %c0_2 = arith.constant 0 : index
    %c0_3 = arith.constant 0 : index
    %2 = vector.load %arg19[%c0_2, %c0_3] : memref<72x838xf32, #tpu.memory_space<vmem>>, vector<8x838xf32>
    tpu.vector_store %arg19[%c0_2, %c0_3], %1 {strides = array<i32>} : memref<72x838xf32, #tpu.memory_space<vmem>>, vector<8x838xf32>,
    %c0_4 = arith.constant 0 : index
    %c0_5 = arith.constant 0 : index
    %c1 = arith.constant 1 : index
    %3 = vector.load %arg1[%c0_4, %c0_5, %c1] : memref<1x8x900xf32, #tpu.memory_space<vmem>>, vector<1x8x838xf32>
    %4 = vector.shape_cast %3 : vector<1x8x838xf32> to vector<8x838xf32>
    %c8 = arith.constant 8 : index
    %c0_6 = arith.constant 0 : index
    %5 = vector.load %arg19[%c8, %c0_6] : memref<72x838xf32, #tpu.memory_space<vmem>>, vector<8x838xf32>
    tpu.vector_store %arg19[%c8, %c0_6], %4 {strides = array<i32>} : memref<72x838xf32, #tpu.memory_space<vmem>>, vector<8x838xf32>,
    %c0_7 = arith.constant 0 : index
    %c0_8 = arith.constant 0 : index
    %c2 = arith.constant 2 : index
    %6 = vector.load %arg1[%c0_7, %c0_8, %c2] : memref<1x8x900xf32, #tpu.memory_space<vmem>>, vector<1x8x838xf32>
    %7 = vector.shape_cast %6 : vector<1x8x838xf32> to vector<8x838xf32>
    %c16 = arith.constant 16 : index
    %c0_9 = arith.constant 0 : index
    %8 = vector.load %arg19[%c16, %c0_9] : memref<72x838xf32, #tpu.memory_space<vmem>>, vector<8x838xf32>
    tpu.vector_store %arg19[%c16, %c0_9], %7 {strides = array<i32>} : memref<72x838xf32, #tpu.memory_space<vmem>>, vector<8x838xf32>,
    %c0_10 = arith.constant 0 : index
    %c0_11 = arith.constant 0 : index
    %c30 = arith.constant 30 : index
    %9 = vector.load %arg1[%c0_10, %c0_11, %c30] : memref<1x8x900xf32, #tpu.memory_space<vmem>>, vector<1x8x838xf32>
    %10 = vector.shape_cast %9 : vector<1x8x838xf32> to vector<8x838xf32>
    %c24 = arith.constant 24 : index
    %c0_12 = arith.constant 0 : index
    %11 = vector.load %arg19[%c24, %c0_12] : memref<72x838xf32, #tpu.memory_space<vmem>>, vector<8x838xf32>
    tpu.vector_store %arg19[%c24, %c0_12], %10 {strides = array<i32>} : memref<72x838xf32, #tpu.memory_space<vmem>>, vector<8x838xf32>,
    %c0_13 = arith.constant 0 : index
    %c0_14 = arith.constant 0 : index
    %c31 = arith.constant 31 : index
    %12 = vector.load %arg1[%c0_13, %c0_14, %c31] : memref<1x8x900xf32, #tpu.memory_space<vmem>>, vector<1x8x838xf32>
    %13 = vector.shape_cast %12 : vector<1x8x838xf32> to vector<8x838xf32>
    %c32 = arith.constant 32 : index
    %c0_15 = arith.constant 0 : index
    %14 = vector.load %arg19[%c32, %c0_15] : memref<72x838xf32, #tpu.memory_space<vmem>>, vector<8x838xf32>
    tpu.vector_store %arg19[%c32, %c0_15], %13 {strides = array<i32>} : memref<72x838xf32, #tpu.memory_space<vmem>>, vector<8x838xf32>,
    %c0_16 = arith.constant 0 : index
    %c0_17 = arith.constant 0 : index
    %c32_18 = arith.constant 32 : index
    %15 = vector.load %arg1[%c0_16, %c0_17, %c32_18] : memref<1x8x900xf32, #tpu.memory_space<vmem>>, vector<1x8x838xf32>
    %16 = vector.shape_cast %15 : vector<1x8x838xf32> to vector<8x838xf32>
    %c40 = arith.constant 40 : index
    %c0_19 = arith.constant 0 : index
    %17 = vector.load %arg19[%c40, %c0_19] : memref<72x838xf32, #tpu.memory_space<vmem>>, vector<8x838xf32>
    tpu.vector_store %arg19[%c40, %c0_19], %16 {strides = array<i32>} : memref<72x838xf32, #tpu.memory_space<vmem>>, vector<8x838xf32>,
    %c0_20 = arith.constant 0 : index
    %c0_21 = arith.constant 0 : index
    %c60 = arith.constant 60 : index
    %18 = vector.load %arg1[%c0_20, %c0_21, %c60] : memref<1x8x900xf32, #tpu.memory_space<vmem>>, vector<1x8x838xf32>
    %19 = vector.shape_cast %18 : vector<1x8x838xf32> to vector<8x838xf32>
    %c48 = arith.constant 48 : index
    %c0_22 = arith.constant 0 : index
    %20 = vector.load %arg19[%c48, %c0_22] : memref<72x838xf32, #tpu.memory_space<vmem>>, vector<8x838xf32>
    tpu.vector_store %arg19[%c48, %c0_22], %19 {strides = array<i32>} : memref<72x838xf32, #tpu.memory_space<vmem>>, vector<8x838xf32>,
    %c0_23 = arith.constant 0 : index
    %c0_24 = arith.constant 0 : index
    %c61 = arith.constant 61 : index
    %21 = vector.load %arg1[%c0_23, %c0_24, %c61] : memref<1x8x900xf32, #tpu.memory_space<vmem>>, vector<1x8x838xf32>
    %22 = vector.shape_cast %21 : vector<1x8x838xf32> to vector<8x838xf32>
    %c56 = arith.constant 56 : index
    %c0_25 = arith.constant 0 : index
    %23 = vector.load %arg19[%c56, %c0_25] : memref<72x838xf32, #tpu.memory_space<vmem>>, vector<8x838xf32>
    tpu.vector_store %arg19[%c56, %c0_25], %22 {strides = array<i32>} : memref<72x838xf32, #tpu.memory_space<vmem>>, vector<8x838xf32>,
    %c0_26 = arith.constant 0 : index
    %c0_27 = arith.constant 0 : index
    %c62 = arith.constant 62 : index
    %24 = vector.load %arg1[%c0_26, %c0_27, %c62] : memref<1x8x900xf32, #tpu.memory_space<vmem>>, vector<1x8x838xf32>
    %25 = vector.shape_cast %24 : vector<1x8x838xf32> to vector<8x838xf32>
    %c64 = arith.constant 64 : index
    %c0_28 = arith.constant 0 : index
    %26 = vector.load %arg19[%c64, %c0_28] : memref<72x838xf32, #tpu.memory_space<vmem>>, vector<8x838xf32>
    tpu.vector_store %arg19[%c64, %c0_28], %25 {strides = array<i32>} : memref<72x838xf32, #tpu.memory_space<vmem>>, vector<8x838xf32>,
    %c0_29 = arith.constant 0 : index
    %c0_30 = arith.constant 0 : index
    %27 = vector.load %arg2[%c0_29, %c0_30] : memref<8x72xf32, #tpu.memory_space<vmem>>, vector<8x72xf32>
    %c0_31 = arith.constant 0 : index
    %c0_32 = arith.constant 0 : index
    %28 = vector.load %arg19[%c0_31, %c0_32] : memref<72x838xf32, #tpu.memory_space<vmem>>, vector<72x838xf32>
    %cst = arith.constant dense<0.000000e+00> : vector<8x838xf32>
    %29 = tpu.matmul %27, %28, %cst {dimension_numbers = #tpu.dot_dimension_numbers<[1], [0], [0], [1], [0, 0, 1, 1], [], []>} : vector<8x72xf32>, vector<72x838xf32>, vector<8x838xf32> -> vector<8x838xf32>
    %c0_33 = arith.constant 0 : index
    %c0_34 = arith.constant 0 : index
    %30 = vector.load %arg3[%c0_33, %c0_34] : memref<8x1xf32, #tpu.memory_space<vmem>>, vector<8x1xf32>
    %31 = vector.broadcast %30 : vector<8x1xf32> to vector<8x838xf32>
    %32 = arith.addf %29, %31 : vector<8x838xf32>
    %cst_35 = arith.constant 0.000000e+00 : f32
    %33 = vector.broadcast %cst_35 : f32 to vector<8x838xf32>
    %34 = arith.maximumf %32, %33 : vector<8x838xf32>
    %cst_36 = arith.constant 0.000000e+00 : f32
    %35 = vector.broadcast %cst_36 : f32 to vector<8x900xf32>
    %c0_37 = arith.constant 0 : index
    %c0_38 = arith.constant 0 : index
    %36 = vector.load %arg17[%c0_37, %c0_38] : memref<8x900xf32, #tpu.memory_space<vmem>>, vector<8x900xf32>
    tpu.vector_store %arg17[%c0_37, %c0_38], %35 {strides = array<i32>} : memref<8x900xf32, #tpu.memory_space<vmem>>, vector<8x900xf32>,
    %c0_39 = arith.constant 0 : index
    %c0_40 = arith.constant 0 : index
    %37 = vector.load %arg12[%c0_39, %c0_40] : memref<1x838xf32, #tpu.memory_space<vmem>>, vector<1x838xf32>
    %38 = vector.broadcast %37 : vector<1x838xf32> to vector<8x838xf32>
    %39 = arith.mulf %34, %38 : vector<8x838xf32>
    %c0_41 = arith.constant 0 : index
    %c31_42 = arith.constant 31 : index
    %40 = vector.load %arg17[%c0_41, %c31_42] : memref<8x900xf32, #tpu.memory_space<vmem>>, vector<8x838xf32>
    tpu.vector_store %arg17[%c0_41, %c31_42], %39 {strides = array<i32>} : memref<8x900xf32, #tpu.memory_space<vmem>>, vector<8x838xf32>,
    %c0_43 = arith.constant 0 : index
    %c0_44 = arith.constant 0 : index
    %41 = vector.load %arg17[%c0_43, %c0_44] : memref<8x900xf32, #tpu.memory_space<vmem>>, vector<8x838xf32>
    %c0_45 = arith.constant 0 : index
    %c0_46 = arith.constant 0 : index
    %42 = vector.load %arg19[%c0_45, %c0_46] : memref<72x838xf32, #tpu.memory_space<vmem>>, vector<8x838xf32>
    tpu.vector_store %arg19[%c0_45, %c0_46], %41 {strides = array<i32>} : memref<72x838xf32, #tpu.memory_space<vmem>>, vector<8x838xf32>,
    %c0_47 = arith.constant 0 : index
    %c1_48 = arith.constant 1 : index
    %43 = vector.load %arg17[%c0_47, %c1_48] : memref<8x900xf32, #tpu.memory_space<vmem>>, vector<8x838xf32>
    %c8_49 = arith.constant 8 : index
    %c0_50 = arith.constant 0 : index
    %44 = vector.load %arg19[%c8_49, %c0_50] : memref<72x838xf32, #tpu.memory_space<vmem>>, vector<8x838xf32>
    tpu.vector_store %arg19[%c8_49, %c0_50], %43 {strides = array<i32>} : memref<72x838xf32, #tpu.memory_space<vmem>>, vector<8x838xf32>,
    %c0_51 = arith.constant 0 : index
    %c2_52 = arith.constant 2 : index
    %45 = vector.load %arg17[%c0_51, %c2_52] : memref<8x900xf32, #tpu.memory_space<vmem>>, vector<8x838xf32>
    %c16_53 = arith.constant 16 : index
    %c0_54 = arith.constant 0 : index
    %46 = vector.load %arg19[%c16_53, %c0_54] : memref<72x838xf32, #tpu.memory_space<vmem>>, vector<8x838xf32>
    tpu.vector_store %arg19[%c16_53, %c0_54], %45 {strides = array<i32>} : memref<72x838xf32, #tpu.memory_space<vmem>>, vector<8x838xf32>,
    %c0_55 = arith.constant 0 : index
    %c30_56 = arith.constant 30 : index
    %47 = vector.load %arg17[%c0_55, %c30_56] : memref<8x900xf32, #tpu.memory_space<vmem>>, vector<8x838xf32>
    %c24_57 = arith.constant 24 : index
    %c0_58 = arith.constant 0 : index
    %48 = vector.load %arg19[%c24_57, %c0_58] : memref<72x838xf32, #tpu.memory_space<vmem>>, vector<8x838xf32>
    tpu.vector_store %arg19[%c24_57, %c0_58], %47 {strides = array<i32>} : memref<72x838xf32, #tpu.memory_space<vmem>>, vector<8x838xf32>,
    %c0_59 = arith.constant 0 : index
    %c31_60 = arith.constant 31 : index
    %49 = vector.load %arg17[%c0_59, %c31_60] : memref<8x900xf32, #tpu.memory_space<vmem>>, vector<8x838xf32>
    %c32_61 = arith.constant 32 : index
    %c0_62 = arith.constant 0 : index
    %50 = vector.load %arg19[%c32_61, %c0_62] : memref<72x838xf32, #tpu.memory_space<vmem>>, vector<8x838xf32>
    tpu.vector_store %arg19[%c32_61, %c0_62], %49 {strides = array<i32>} : memref<72x838xf32, #tpu.memory_space<vmem>>, vector<8x838xf32>,
    %c0_63 = arith.constant 0 : index
    %c32_64 = arith.constant 32 : index
    %51 = vector.load %arg17[%c0_63, %c32_64] : memref<8x900xf32, #tpu.memory_space<vmem>>, vector<8x838xf32>
    %c40_65 = arith.constant 40 : index
    %c0_66 = arith.constant 0 : index
    %52 = vector.load %arg19[%c40_65, %c0_66] : memref<72x838xf32, #tpu.memory_space<vmem>>, vector<8x838xf32>
    tpu.vector_store %arg19[%c40_65, %c0_66], %51 {strides = array<i32>} : memref<72x838xf32, #tpu.memory_space<vmem>>, vector<8x838xf32>,
    %c0_67 = arith.constant 0 : index
    %c60_68 = arith.constant 60 : index
    %53 = vector.load %arg17[%c0_67, %c60_68] : memref<8x900xf32, #tpu.memory_space<vmem>>, vector<8x838xf32>
    %c48_69 = arith.constant 48 : index
    %c0_70 = arith.constant 0 : index
    %54 = vector.load %arg19[%c48_69, %c0_70] : memref<72x838xf32, #tpu.memory_space<vmem>>, vector<8x838xf32>
    tpu.vector_store %arg19[%c48_69, %c0_70], %53 {strides = array<i32>} : memref<72x838xf32, #tpu.memory_space<vmem>>, vector<8x838xf32>,
    %c0_71 = arith.constant 0 : index
    %c61_72 = arith.constant 61 : index
    %55 = vector.load %arg17[%c0_71, %c61_72] : memref<8x900xf32, #tpu.memory_space<vmem>>, vector<8x838xf32>
    %c56_73 = arith.constant 56 : index
    %c0_74 = arith.constant 0 : index
    %56 = vector.load %arg19[%c56_73, %c0_74] : memref<72x838xf32, #tpu.memory_space<vmem>>, vector<8x838xf32>
    tpu.vector_store %arg19[%c56_73, %c0_74], %55 {strides = array<i32>} : memref<72x838xf32, #tpu.memory_space<vmem>>, vector<8x838xf32>,
    %c0_75 = arith.constant 0 : index
    %c62_76 = arith.constant 62 : index
    %57 = vector.load %arg17[%c0_75, %c62_76] : memref<8x900xf32, #tpu.memory_space<vmem>>, vector<8x838xf32>
    %c64_77 = arith.constant 64 : index
    %c0_78 = arith.constant 0 : index
    %58 = vector.load %arg19[%c64_77, %c0_78] : memref<72x838xf32, #tpu.memory_space<vmem>>, vector<8x838xf32>
    tpu.vector_store %arg19[%c64_77, %c0_78], %57 {strides = array<i32>} : memref<72x838xf32, #tpu.memory_space<vmem>>, vector<8x838xf32>,
    %c0_79 = arith.constant 0 : index
    %c0_80 = arith.constant 0 : index
    %59 = vector.load %arg4[%c0_79, %c0_80] : memref<8x72xf32, #tpu.memory_space<vmem>>, vector<8x72xf32>
    %c0_81 = arith.constant 0 : index
    %c0_82 = arith.constant 0 : index
    %60 = vector.load %arg19[%c0_81, %c0_82] : memref<72x838xf32, #tpu.memory_space<vmem>>, vector<72x838xf32>
    %cst_83 = arith.constant dense<0.000000e+00> : vector<8x838xf32>
    %61 = tpu.matmul %59, %60, %cst_83 {dimension_numbers = #tpu.dot_dimension_numbers<[1], [0], [0], [1], [0, 0, 1, 1], [], []>} : vector<8x72xf32>, vector<72x838xf32>, vector<8x838xf32> -> vector<8x838xf32>
    %c0_84 = arith.constant 0 : index
    %c0_85 = arith.constant 0 : index
    %62 = vector.load %arg5[%c0_84, %c0_85] : memref<8x1xf32, #tpu.memory_space<vmem>>, vector<8x1xf32>
    %63 = vector.broadcast %62 : vector<8x1xf32> to vector<8x838xf32>
    %64 = arith.addf %61, %63 : vector<8x838xf32>
    %cst_86 = arith.constant 0.000000e+00 : f32
    %65 = vector.broadcast %cst_86 : f32 to vector<8x838xf32>
    %66 = arith.maximumf %64, %65 : vector<8x838xf32>
    %67 = vector.extract_strided_slice %66 {offsets = [0, 0], sizes = [8, 837], strides = [1, 1]} : vector<8x838xf32> to vector<8x837xf32>
    %68 = vector.extract_strided_slice %66 {offsets = [0, 1], sizes = [8, 837], strides = [1, 1]} : vector<8x838xf32> to vector<8x837xf32>
    %69 = arith.maximumf %67, %68 : vector<8x837xf32>
    %70 = vector.extract_strided_slice %69 {offsets = [0, 0], sizes = [8, 807], strides = [1, 1]} : vector<8x837xf32> to vector<8x807xf32>
    %71 = vector.extract_strided_slice %69 {offsets = [0, 30], sizes = [8, 807], strides = [1, 1]} : vector<8x837xf32> to vector<8x807xf32>
    %72 = arith.maximumf %70, %71 : vector<8x807xf32>
    %c0_87 = arith.constant 0 : index
    %c0_88 = arith.constant 0 : index
    %73 = vector.load %arg14[%c0_87, %c0_88] : memref<807x256xf32, #tpu.memory_space<vmem>>, vector<807x256xf32>
    %cst_89 = arith.constant dense<0.000000e+00> : vector<8x256xf32>
    %74 = tpu.matmul %72, %73, %cst_89 {dimension_numbers = #tpu.dot_dimension_numbers<[1], [0], [0], [1], [0, 0, 1, 1], [], []>} : vector<8x807xf32>, vector<807x256xf32>, vector<8x256xf32> -> vector<8x256xf32>
    %75 = vector.extract_strided_slice %74 {offsets = [0, 0], sizes = [8, 222], strides = [1, 1]} : vector<8x256xf32> to vector<8x222xf32>
    %c0_90 = arith.constant 0 : index
    %c0_91 = arith.constant 0 : index
    %76 = vector.load %arg19[%c0_90, %c0_91] : memref<72x838xf32, #tpu.memory_space<vmem>>, vector<8x222xf32>
    tpu.vector_store %arg19[%c0_90, %c0_91], %75 {strides = array<i32>} : memref<72x838xf32, #tpu.memory_space<vmem>>, vector<8x222xf32>,
    %77 = vector.extract_strided_slice %74 {offsets = [0, 1], sizes = [8, 222], strides = [1, 1]} : vector<8x256xf32> to vector<8x222xf32>
    %c8_92 = arith.constant 8 : index
    %c0_93 = arith.constant 0 : index
    %78 = vector.load %arg19[%c8_92, %c0_93] : memref<72x838xf32, #tpu.memory_space<vmem>>, vector<8x222xf32>
    tpu.vector_store %arg19[%c8_92, %c0_93], %77 {strides = array<i32>} : memref<72x838xf32, #tpu.memory_space<vmem>>, vector<8x222xf32>,
    %79 = vector.extract_strided_slice %74 {offsets = [0, 2], sizes = [8, 222], strides = [1, 1]} : vector<8x256xf32> to vector<8x222xf32>
    %c16_94 = arith.constant 16 : index
    %c0_95 = arith.constant 0 : index
    %80 = vector.load %arg19[%c16_94, %c0_95] : memref<72x838xf32, #tpu.memory_space<vmem>>, vector<8x222xf32>
    tpu.vector_store %arg19[%c16_94, %c0_95], %79 {strides = array<i32>} : memref<72x838xf32, #tpu.memory_space<vmem>>, vector<8x222xf32>,
    %81 = vector.extract_strided_slice %74 {offsets = [0, 16], sizes = [8, 222], strides = [1, 1]} : vector<8x256xf32> to vector<8x222xf32>
    %c24_96 = arith.constant 24 : index
    %c0_97 = arith.constant 0 : index
    %82 = vector.load %arg19[%c24_96, %c0_97] : memref<72x838xf32, #tpu.memory_space<vmem>>, vector<8x222xf32>
    tpu.vector_store %arg19[%c24_96, %c0_97], %81 {strides = array<i32>} : memref<72x838xf32, #tpu.memory_space<vmem>>, vector<8x222xf32>,
    %83 = vector.extract_strided_slice %74 {offsets = [0, 17], sizes = [8, 222], strides = [1, 1]} : vector<8x256xf32> to vector<8x222xf32>
    %c32_98 = arith.constant 32 : index
    %c0_99 = arith.constant 0 : index
    %84 = vector.load %arg19[%c32_98, %c0_99] : memref<72x838xf32, #tpu.memory_space<vmem>>, vector<8x222xf32>
    tpu.vector_store %arg19[%c32_98, %c0_99], %83 {strides = array<i32>} : memref<72x838xf32, #tpu.memory_space<vmem>>, vector<8x222xf32>,
    %85 = vector.extract_strided_slice %74 {offsets = [0, 18], sizes = [8, 222], strides = [1, 1]} : vector<8x256xf32> to vector<8x222xf32>
    %c40_100 = arith.constant 40 : index
    %c0_101 = arith.constant 0 : index
    %86 = vector.load %arg19[%c40_100, %c0_101] : memref<72x838xf32, #tpu.memory_space<vmem>>, vector<8x222xf32>
    tpu.vector_store %arg19[%c40_100, %c0_101], %85 {strides = array<i32>} : memref<72x838xf32, #tpu.memory_space<vmem>>, vector<8x222xf32>,
    %87 = vector.extract_strided_slice %74 {offsets = [0, 32], sizes = [8, 222], strides = [1, 1]} : vector<8x256xf32> to vector<8x222xf32>
    %c48_102 = arith.constant 48 : index
    %c0_103 = arith.constant 0 : index
    %88 = vector.load %arg19[%c48_102, %c0_103] : memref<72x838xf32, #tpu.memory_space<vmem>>, vector<8x222xf32>
    tpu.vector_store %arg19[%c48_102, %c0_103], %87 {strides = array<i32>} : memref<72x838xf32, #tpu.memory_space<vmem>>, vector<8x222xf32>,
    %89 = vector.extract_strided_slice %74 {offsets = [0, 33], sizes = [8, 222], strides = [1, 1]} : vector<8x256xf32> to vector<8x222xf32>
    %c56_104 = arith.constant 56 : index
    %c0_105 = arith.constant 0 : index
    %90 = vector.load %arg19[%c56_104, %c0_105] : memref<72x838xf32, #tpu.memory_space<vmem>>, vector<8x222xf32>
    tpu.vector_store %arg19[%c56_104, %c0_105], %89 {strides = array<i32>} : memref<72x838xf32, #tpu.memory_space<vmem>>, vector<8x222xf32>,
    %91 = vector.extract_strided_slice %74 {offsets = [0, 34], sizes = [8, 222], strides = [1, 1]} : vector<8x256xf32> to vector<8x222xf32>
    %c64_106 = arith.constant 64 : index
    %c0_107 = arith.constant 0 : index
    %92 = vector.load %arg19[%c64_106, %c0_107] : memref<72x838xf32, #tpu.memory_space<vmem>>, vector<8x222xf32>
    tpu.vector_store %arg19[%c64_106, %c0_107], %91 {strides = array<i32>} : memref<72x838xf32, #tpu.memory_space<vmem>>, vector<8x222xf32>,
    %c0_108 = arith.constant 0 : index
    %c0_109 = arith.constant 0 : index
    %93 = vector.load %arg6[%c0_108, %c0_109] : memref<8x72xf32, #tpu.memory_space<vmem>>, vector<8x72xf32>
    %c0_110 = arith.constant 0 : index
    %c0_111 = arith.constant 0 : index
    %94 = vector.load %arg19[%c0_110, %c0_111] : memref<72x838xf32, #tpu.memory_space<vmem>>, vector<72x222xf32>
    %cst_112 = arith.constant dense<0.000000e+00> : vector<8x222xf32>
    %95 = tpu.matmul %93, %94, %cst_112 {dimension_numbers = #tpu.dot_dimension_numbers<[1], [0], [0], [1], [0, 0, 1, 1], [], []>} : vector<8x72xf32>, vector<72x222xf32>, vector<8x222xf32> -> vector<8x222xf32>
    %c0_113 = arith.constant 0 : index
    %c0_114 = arith.constant 0 : index
    %96 = vector.load %arg7[%c0_113, %c0_114] : memref<8x1xf32, #tpu.memory_space<vmem>>, vector<8x1xf32>
    %97 = vector.broadcast %96 : vector<8x1xf32> to vector<8x222xf32>
    %98 = arith.addf %95, %97 : vector<8x222xf32>
    %cst_115 = arith.constant 0.000000e+00 : f32
    %99 = vector.broadcast %cst_115 : f32 to vector<8x222xf32>
    %100 = arith.maximumf %98, %99 : vector<8x222xf32>
    %cst_116 = arith.constant 0.000000e+00 : f32
    %101 = vector.broadcast %cst_116 : f32 to vector<8x256xf32>
    %c0_117 = arith.constant 0 : index
    %c0_118 = arith.constant 0 : index
    %102 = vector.load %arg18[%c0_117, %c0_118] : memref<8x256xf32, #tpu.memory_space<vmem>>, vector<8x256xf32>
    tpu.vector_store %arg18[%c0_117, %c0_118], %101 {strides = array<i32>} : memref<8x256xf32, #tpu.memory_space<vmem>>, vector<8x256xf32>,
    %c0_119 = arith.constant 0 : index
    %c0_120 = arith.constant 0 : index
    %103 = vector.load %arg13[%c0_119, %c0_120] : memref<1x222xf32, #tpu.memory_space<vmem>>, vector<1x222xf32>
    %104 = vector.broadcast %103 : vector<1x222xf32> to vector<8x222xf32>
    %105 = arith.mulf %100, %104 : vector<8x222xf32>
    %c0_121 = arith.constant 0 : index
    %c17 = arith.constant 17 : index
    %106 = vector.load %arg18[%c0_121, %c17] : memref<8x256xf32, #tpu.memory_space<vmem>>, vector<8x222xf32>
    tpu.vector_store %arg18[%c0_121, %c17], %105 {strides = array<i32>} : memref<8x256xf32, #tpu.memory_space<vmem>>, vector<8x222xf32>,
    %c0_122 = arith.constant 0 : index
    %c0_123 = arith.constant 0 : index
    %107 = vector.load %arg18[%c0_122, %c0_123] : memref<8x256xf32, #tpu.memory_space<vmem>>, vector<8x222xf32>
    %c0_124 = arith.constant 0 : index
    %c0_125 = arith.constant 0 : index
    %108 = vector.load %arg19[%c0_124, %c0_125] : memref<72x838xf32, #tpu.memory_space<vmem>>, vector<8x222xf32>
    tpu.vector_store %arg19[%c0_124, %c0_125], %107 {strides = array<i32>} : memref<72x838xf32, #tpu.memory_space<vmem>>, vector<8x222xf32>,
    %c0_126 = arith.constant 0 : index
    %c1_127 = arith.constant 1 : index
    %109 = vector.load %arg18[%c0_126, %c1_127] : memref<8x256xf32, #tpu.memory_space<vmem>>, vector<8x222xf32>
    %c8_128 = arith.constant 8 : index
    %c0_129 = arith.constant 0 : index
    %110 = vector.load %arg19[%c8_128, %c0_129] : memref<72x838xf32, #tpu.memory_space<vmem>>, vector<8x222xf32>
    tpu.vector_store %arg19[%c8_128, %c0_129], %109 {strides = array<i32>} : memref<72x838xf32, #tpu.memory_space<vmem>>, vector<8x222xf32>,
    %c0_130 = arith.constant 0 : index
    %c2_131 = arith.constant 2 : index
    %111 = vector.load %arg18[%c0_130, %c2_131] : memref<8x256xf32, #tpu.memory_space<vmem>>, vector<8x222xf32>
    %c16_132 = arith.constant 16 : index
    %c0_133 = arith.constant 0 : index
    %112 = vector.load %arg19[%c16_132, %c0_133] : memref<72x838xf32, #tpu.memory_space<vmem>>, vector<8x222xf32>
    tpu.vector_store %arg19[%c16_132, %c0_133], %111 {strides = array<i32>} : memref<72x838xf32, #tpu.memory_space<vmem>>, vector<8x222xf32>,
    %c0_134 = arith.constant 0 : index
    %c16_135 = arith.constant 16 : index
    %113 = vector.load %arg18[%c0_134, %c16_135] : memref<8x256xf32, #tpu.memory_space<vmem>>, vector<8x222xf32>
    %c24_136 = arith.constant 24 : index
    %c0_137 = arith.constant 0 : index
    %114 = vector.load %arg19[%c24_136, %c0_137] : memref<72x838xf32, #tpu.memory_space<vmem>>, vector<8x222xf32>
    tpu.vector_store %arg19[%c24_136, %c0_137], %113 {strides = array<i32>} : memref<72x838xf32, #tpu.memory_space<vmem>>, vector<8x222xf32>,
    %c0_138 = arith.constant 0 : index
    %c17_139 = arith.constant 17 : index
    %115 = vector.load %arg18[%c0_138, %c17_139] : memref<8x256xf32, #tpu.memory_space<vmem>>, vector<8x222xf32>
    %c32_140 = arith.constant 32 : index
    %c0_141 = arith.constant 0 : index
    %116 = vector.load %arg19[%c32_140, %c0_141] : memref<72x838xf32, #tpu.memory_space<vmem>>, vector<8x222xf32>
    tpu.vector_store %arg19[%c32_140, %c0_141], %115 {strides = array<i32>} : memref<72x838xf32, #tpu.memory_space<vmem>>, vector<8x222xf32>,
    %c0_142 = arith.constant 0 : index
    %c18 = arith.constant 18 : index
    %117 = vector.load %arg18[%c0_142, %c18] : memref<8x256xf32, #tpu.memory_space<vmem>>, vector<8x222xf32>
    %c40_143 = arith.constant 40 : index
    %c0_144 = arith.constant 0 : index
    %118 = vector.load %arg19[%c40_143, %c0_144] : memref<72x838xf32, #tpu.memory_space<vmem>>, vector<8x222xf32>
    tpu.vector_store %arg19[%c40_143, %c0_144], %117 {strides = array<i32>} : memref<72x838xf32, #tpu.memory_space<vmem>>, vector<8x222xf32>,
    %c0_145 = arith.constant 0 : index
    %c32_146 = arith.constant 32 : index
    %119 = vector.load %arg18[%c0_145, %c32_146] : memref<8x256xf32, #tpu.memory_space<vmem>>, vector<8x222xf32>
    %c48_147 = arith.constant 48 : index
    %c0_148 = arith.constant 0 : index
    %120 = vector.load %arg19[%c48_147, %c0_148] : memref<72x838xf32, #tpu.memory_space<vmem>>, vector<8x222xf32>
    tpu.vector_store %arg19[%c48_147, %c0_148], %119 {strides = array<i32>} : memref<72x838xf32, #tpu.memory_space<vmem>>, vector<8x222xf32>,
    %c0_149 = arith.constant 0 : index
    %c33 = arith.constant 33 : index
    %121 = vector.load %arg18[%c0_149, %c33] : memref<8x256xf32, #tpu.memory_space<vmem>>, vector<8x222xf32>
    %c56_150 = arith.constant 56 : index
    %c0_151 = arith.constant 0 : index
    %122 = vector.load %arg19[%c56_150, %c0_151] : memref<72x838xf32, #tpu.memory_space<vmem>>, vector<8x222xf32>
    tpu.vector_store %arg19[%c56_150, %c0_151], %121 {strides = array<i32>} : memref<72x838xf32, #tpu.memory_space<vmem>>, vector<8x222xf32>,
    %c0_152 = arith.constant 0 : index
    %c34 = arith.constant 34 : index
    %123 = vector.load %arg18[%c0_152, %c34] : memref<8x256xf32, #tpu.memory_space<vmem>>, vector<8x222xf32>
    %c64_153 = arith.constant 64 : index
    %c0_154 = arith.constant 0 : index
    %124 = vector.load %arg19[%c64_153, %c0_154] : memref<72x838xf32, #tpu.memory_space<vmem>>, vector<8x222xf32>
    tpu.vector_store %arg19[%c64_153, %c0_154], %123 {strides = array<i32>} : memref<72x838xf32, #tpu.memory_space<vmem>>, vector<8x222xf32>,
    %c0_155 = arith.constant 0 : index
    %c0_156 = arith.constant 0 : index
    %125 = vector.load %arg8[%c0_155, %c0_156] : memref<8x72xf32, #tpu.memory_space<vmem>>, vector<8x72xf32>
    %c0_157 = arith.constant 0 : index
    %c0_158 = arith.constant 0 : index
    %126 = vector.load %arg19[%c0_157, %c0_158] : memref<72x838xf32, #tpu.memory_space<vmem>>, vector<72x222xf32>
    %cst_159 = arith.constant dense<0.000000e+00> : vector<8x222xf32>
    %127 = tpu.matmul %125, %126, %cst_159 {dimension_numbers = #tpu.dot_dimension_numbers<[1], [0], [0], [1], [0, 0, 1, 1], [], []>} : vector<8x72xf32>, vector<72x222xf32>, vector<8x222xf32> -> vector<8x222xf32>
    %c0_160 = arith.constant 0 : index
    %c0_161 = arith.constant 0 : index
    %128 = vector.load %arg9[%c0_160, %c0_161] : memref<8x1xf32, #tpu.memory_space<vmem>>, vector<8x1xf32>
    %129 = vector.broadcast %128 : vector<8x1xf32> to vector<8x222xf32>
    %130 = arith.addf %127, %129 : vector<8x222xf32>
    %cst_162 = arith.constant 0.000000e+00 : f32
    %131 = vector.broadcast %cst_162 : f32 to vector<8x222xf32>
    %132 = arith.maximumf %130, %131 : vector<8x222xf32>
    %133 = vector.extract_strided_slice %132 {offsets = [0, 0], sizes = [8, 221], strides = [1, 1]} : vector<8x222xf32> to vector<8x221xf32>
    %134 = vector.extract_strided_slice %132 {offsets = [0, 1], sizes = [8, 221], strides = [1, 1]} : vector<8x222xf32> to vector<8x221xf32>
    %135 = arith.maximumf %133, %134 : vector<8x221xf32>
    %136 = vector.extract_strided_slice %135 {offsets = [0, 0], sizes = [8, 205], strides = [1, 1]} : vector<8x221xf32> to vector<8x205xf32>
    %137 = vector.extract_strided_slice %135 {offsets = [0, 16], sizes = [8, 205], strides = [1, 1]} : vector<8x221xf32> to vector<8x205xf32>
    %138 = arith.maximumf %136, %137 : vector<8x205xf32>
    %c0_163 = arith.constant 0 : index
    %c0_164 = arith.constant 0 : index
    %139 = vector.load %arg15[%c0_163, %c0_164] : memref<205x49xf32, #tpu.memory_space<vmem>>, vector<205x49xf32>
    %cst_165 = arith.constant dense<0.000000e+00> : vector<8x49xf32>
    %140 = tpu.matmul %138, %139, %cst_165 {dimension_numbers = #tpu.dot_dimension_numbers<[1], [0], [0], [1], [0, 0, 1, 1], [], []>} : vector<8x205xf32>, vector<205x49xf32>, vector<8x49xf32> -> vector<8x49xf32>
    %c0_166 = arith.constant 0 : index
    %c0_167 = arith.constant 0 : index
    %141 = vector.load %arg11[%c0_166, %c0_167] : memref<1x10xf32, #tpu.memory_space<vmem>>, vector<1x10xf32>
    %142 = vector.extract_strided_slice %140 {offsets = [0, 0], sizes = [1, 49], strides = [1, 1]} : vector<8x49xf32> to vector<1x49xf32>
    %c0_168 = arith.constant 0 : index
    %c0_169 = arith.constant 0 : index
    %c0_170 = arith.constant 0 : index
    %143 = vector.load %arg10[%c0_168, %c0_169, %c0_170] : memref<8x49x10xf32, #tpu.memory_space<vmem>>, vector<1x49x10xf32>
    %144 = vector.shape_cast %143 : vector<1x49x10xf32> to vector<49x10xf32>
    %cst_171 = arith.constant dense<0.000000e+00> : vector<1x10xf32>
    %145 = tpu.matmul %142, %144, %cst_171 {dimension_numbers = #tpu.dot_dimension_numbers<[1], [0], [0], [1], [0, 0, 1, 1], [], []>} : vector<1x49xf32>, vector<49x10xf32>, vector<1x10xf32> -> vector<1x10xf32>
    %146 = arith.addf %141, %145 : vector<1x10xf32>
    %147 = vector.extract_strided_slice %140 {offsets = [1, 0], sizes = [1, 49], strides = [1, 1]} : vector<8x49xf32> to vector<1x49xf32>
    %c1_172 = arith.constant 1 : index
    %c0_173 = arith.constant 0 : index
    %c0_174 = arith.constant 0 : index
    %148 = vector.load %arg10[%c1_172, %c0_173, %c0_174] : memref<8x49x10xf32, #tpu.memory_space<vmem>>, vector<1x49x10xf32>
    %149 = vector.shape_cast %148 : vector<1x49x10xf32> to vector<49x10xf32>
    %cst_175 = arith.constant dense<0.000000e+00> : vector<1x10xf32>
    %150 = tpu.matmul %147, %149, %cst_175 {dimension_numbers = #tpu.dot_dimension_numbers<[1], [0], [0], [1], [0, 0, 1, 1], [], []>} : vector<1x49xf32>, vector<49x10xf32>, vector<1x10xf32> -> vector<1x10xf32>
    %151 = arith.addf %146, %150 : vector<1x10xf32>
    %152 = vector.extract_strided_slice %140 {offsets = [2, 0], sizes = [1, 49], strides = [1, 1]} : vector<8x49xf32> to vector<1x49xf32>
    %c2_176 = arith.constant 2 : index
    %c0_177 = arith.constant 0 : index
    %c0_178 = arith.constant 0 : index
    %153 = vector.load %arg10[%c2_176, %c0_177, %c0_178] : memref<8x49x10xf32, #tpu.memory_space<vmem>>, vector<1x49x10xf32>
    %154 = vector.shape_cast %153 : vector<1x49x10xf32> to vector<49x10xf32>
    %cst_179 = arith.constant dense<0.000000e+00> : vector<1x10xf32>
    %155 = tpu.matmul %152, %154, %cst_179 {dimension_numbers = #tpu.dot_dimension_numbers<[1], [0], [0], [1], [0, 0, 1, 1], [], []>} : vector<1x49xf32>, vector<49x10xf32>, vector<1x10xf32> -> vector<1x10xf32>
    %156 = arith.addf %151, %155 : vector<1x10xf32>
    %157 = vector.extract_strided_slice %140 {offsets = [3, 0], sizes = [1, 49], strides = [1, 1]} : vector<8x49xf32> to vector<1x49xf32>
    %c3 = arith.constant 3 : index
    %c0_180 = arith.constant 0 : index
    %c0_181 = arith.constant 0 : index
    %158 = vector.load %arg10[%c3, %c0_180, %c0_181] : memref<8x49x10xf32, #tpu.memory_space<vmem>>, vector<1x49x10xf32>
    %159 = vector.shape_cast %158 : vector<1x49x10xf32> to vector<49x10xf32>
    %cst_182 = arith.constant dense<0.000000e+00> : vector<1x10xf32>
    %160 = tpu.matmul %157, %159, %cst_182 {dimension_numbers = #tpu.dot_dimension_numbers<[1], [0], [0], [1], [0, 0, 1, 1], [], []>} : vector<1x49xf32>, vector<49x10xf32>, vector<1x10xf32> -> vector<1x10xf32>
    %161 = arith.addf %156, %160 : vector<1x10xf32>
    %162 = vector.extract_strided_slice %140 {offsets = [4, 0], sizes = [1, 49], strides = [1, 1]} : vector<8x49xf32> to vector<1x49xf32>
    %c4 = arith.constant 4 : index
    %c0_183 = arith.constant 0 : index
    %c0_184 = arith.constant 0 : index
    %163 = vector.load %arg10[%c4, %c0_183, %c0_184] : memref<8x49x10xf32, #tpu.memory_space<vmem>>, vector<1x49x10xf32>
    %164 = vector.shape_cast %163 : vector<1x49x10xf32> to vector<49x10xf32>
    %cst_185 = arith.constant dense<0.000000e+00> : vector<1x10xf32>
    %165 = tpu.matmul %162, %164, %cst_185 {dimension_numbers = #tpu.dot_dimension_numbers<[1], [0], [0], [1], [0, 0, 1, 1], [], []>} : vector<1x49xf32>, vector<49x10xf32>, vector<1x10xf32> -> vector<1x10xf32>
    %166 = arith.addf %161, %165 : vector<1x10xf32>
    %167 = vector.extract_strided_slice %140 {offsets = [5, 0], sizes = [1, 49], strides = [1, 1]} : vector<8x49xf32> to vector<1x49xf32>
    %c5 = arith.constant 5 : index
    %c0_186 = arith.constant 0 : index
    %c0_187 = arith.constant 0 : index
    %168 = vector.load %arg10[%c5, %c0_186, %c0_187] : memref<8x49x10xf32, #tpu.memory_space<vmem>>, vector<1x49x10xf32>
    %169 = vector.shape_cast %168 : vector<1x49x10xf32> to vector<49x10xf32>
    %cst_188 = arith.constant dense<0.000000e+00> : vector<1x10xf32>
    %170 = tpu.matmul %167, %169, %cst_188 {dimension_numbers = #tpu.dot_dimension_numbers<[1], [0], [0], [1], [0, 0, 1, 1], [], []>} : vector<1x49xf32>, vector<49x10xf32>, vector<1x10xf32> -> vector<1x10xf32>
    %171 = arith.addf %166, %170 : vector<1x10xf32>
    %172 = vector.extract_strided_slice %140 {offsets = [6, 0], sizes = [1, 49], strides = [1, 1]} : vector<8x49xf32> to vector<1x49xf32>
    %c6 = arith.constant 6 : index
    %c0_189 = arith.constant 0 : index
    %c0_190 = arith.constant 0 : index
    %173 = vector.load %arg10[%c6, %c0_189, %c0_190] : memref<8x49x10xf32, #tpu.memory_space<vmem>>, vector<1x49x10xf32>
    %174 = vector.shape_cast %173 : vector<1x49x10xf32> to vector<49x10xf32>
    %cst_191 = arith.constant dense<0.000000e+00> : vector<1x10xf32>
    %175 = tpu.matmul %172, %174, %cst_191 {dimension_numbers = #tpu.dot_dimension_numbers<[1], [0], [0], [1], [0, 0, 1, 1], [], []>} : vector<1x49xf32>, vector<49x10xf32>, vector<1x10xf32> -> vector<1x10xf32>
    %176 = arith.addf %171, %175 : vector<1x10xf32>
    %177 = vector.extract_strided_slice %140 {offsets = [7, 0], sizes = [1, 49], strides = [1, 1]} : vector<8x49xf32> to vector<1x49xf32>
    %c7 = arith.constant 7 : index
    %c0_192 = arith.constant 0 : index
    %c0_193 = arith.constant 0 : index
    %178 = vector.load %arg10[%c7, %c0_192, %c0_193] : memref<8x49x10xf32, #tpu.memory_space<vmem>>, vector<1x49x10xf32>
    %179 = vector.shape_cast %178 : vector<1x49x10xf32> to vector<49x10xf32>
    %cst_194 = arith.constant dense<0.000000e+00> : vector<1x10xf32>
    %180 = tpu.matmul %177, %179, %cst_194 {dimension_numbers = #tpu.dot_dimension_numbers<[1], [0], [0], [1], [0, 0, 1, 1], [], []>} : vector<1x49xf32>, vector<49x10xf32>, vector<1x10xf32> -> vector<1x10xf32>
    %181 = arith.addf %176, %180 : vector<1x10xf32>
    %c0_195 = arith.constant 0 : index
    %c0_196 = arith.constant 0 : index
    %c0_197 = arith.constant 0 : index
    %182 = vector.load %arg16[%c0_195, %c0_196, %c0_197] : memref<1x1x10xf32, #tpu.memory_space<vmem>>, vector<1x1x10xf32>
    %183 = vector.shape_cast %182 : vector<1x1x10xf32> to vector<1x10xf32>
    %184 = vector.shape_cast %181 : vector<1x10xf32> to vector<1x1x10xf32>
    tpu.vector_store %arg16[%c0_195, %c0_196, %c0_197], %184 {strides = array<i32>} : memref<1x1x10xf32, #tpu.memory_space<vmem>>, vector<1x1x10xf32>,
    return
  }
  func.func @transform_0(%arg0: i32) -> (i32, i32, i32) {
    %c0_i32 = arith.constant 0 : i32
    %c0_i32_0 = arith.constant 0 : i32
    %c0_i32_1 = arith.constant 0 : i32
    return %arg0, %c0_i32, %c0_i32_0 : i32, i32, i32
  }
  func.func @transform_1(%arg0: i32) -> (i32, i32) {
    %c0_i32 = arith.constant 0 : i32
    %c0_i32_0 = arith.constant 0 : i32
    %c0_i32_1 = arith.constant 0 : i32
    return %c0_i32, %c0_i32_0 : i32, i32
  }
  func.func @transform_2(%arg0: i32) -> (i32, i32) {
    %c0_i32 = arith.constant 0 : i32
    %c0_i32_0 = arith.constant 0 : i32
    %c0_i32_1 = arith.constant 0 : i32
    return %c0_i32, %c0_i32_0 : i32, i32
  }
  func.func @transform_3(%arg0: i32) -> (i32, i32) {
    %c0_i32 = arith.constant 0 : i32
    %c0_i32_0 = arith.constant 0 : i32
    %c0_i32_1 = arith.constant 0 : i32
    return %c0_i32, %c0_i32_0 : i32, i32
  }
  func.func @transform_4(%arg0: i32) -> (i32, i32) {
    %c0_i32 = arith.constant 0 : i32
    %c0_i32_0 = arith.constant 0 : i32
    %c0_i32_1 = arith.constant 0 : i32
    return %c0_i32, %c0_i32_0 : i32, i32
  }
  func.func @transform_5(%arg0: i32) -> (i32, i32) {
    %c0_i32 = arith.constant 0 : i32
    %c0_i32_0 = arith.constant 0 : i32
    %c0_i32_1 = arith.constant 0 : i32
    return %c0_i32, %c0_i32_0 : i32, i32
  }
  func.func @transform_6(%arg0: i32) -> (i32, i32) {
    %c0_i32 = arith.constant 0 : i32
    %c0_i32_0 = arith.constant 0 : i32
    %c0_i32_1 = arith.constant 0 : i32
    return %c0_i32, %c0_i32_0 : i32, i32
  }
  func.func @transform_7(%arg0: i32) -> (i32, i32) {
    %c0_i32 = arith.constant 0 : i32
    %c0_i32_0 = arith.constant 0 : i32
    %c0_i32_1 = arith.constant 0 : i32
    return %c0_i32, %c0_i32_0 : i32, i32
  }
  func.func @transform_8(%arg0: i32) -> (i32, i32) {
    %c0_i32 = arith.constant 0 : i32
    %c0_i32_0 = arith.constant 0 : i32
    %c0_i32_1 = arith.constant 0 : i32
    return %c0_i32, %c0_i32_0 : i32, i32
  }
  func.func @transform_9(%arg0: i32) -> (i32, i32, i32) {
    %c0_i32 = arith.constant 0 : i32
    %c0_i32_0 = arith.constant 0 : i32
    %c0_i32_1 = arith.constant 0 : i32
    %c0_i32_2 = arith.constant 0 : i32
    return %c0_i32, %c0_i32_0, %c0_i32_1 : i32, i32, i32
  }
  func.func @transform_10(%arg0: i32) -> (i32, i32) {
    %c0_i32 = arith.constant 0 : i32
    %c0_i32_0 = arith.constant 0 : i32
    %c0_i32_1 = arith.constant 0 : i32
    return %c0_i32, %c0_i32_0 : i32, i32
  }
  func.func @transform_11(%arg0: i32) -> (i32, i32) {
    %c0_i32 = arith.constant 0 : i32
    %c0_i32_0 = arith.constant 0 : i32
    %c0_i32_1 = arith.constant 0 : i32
    return %c0_i32, %c0_i32_0 : i32, i32
  }
  func.func @transform_12(%arg0: i32) -> (i32, i32) {
    %c0_i32 = arith.constant 0 : i32
    %c0_i32_0 = arith.constant 0 : i32
    %c0_i32_1 = arith.constant 0 : i32
    return %c0_i32, %c0_i32_0 : i32, i32
  }
  func.func @transform_13(%arg0: i32) -> (i32, i32) {
    %c0_i32 = arith.constant 0 : i32
    %c0_i32_0 = arith.constant 0 : i32
    %c0_i32_1 = arith.constant 0 : i32
    return %c0_i32, %c0_i32_0 : i32, i32
  }
  func.func @transform_14(%arg0: i32) -> (i32, i32) {
    %c0_i32 = arith.constant 0 : i32
    %c0_i32_0 = arith.constant 0 : i32
    %c0_i32_1 = arith.constant 0 : i32
    return %c0_i32, %c0_i32_0 : i32, i32
  }
  func.func @transform_15(%arg0: i32) -> (i32, i32, i32) {
    %c0_i32 = arith.constant 0 : i32
    %c0_i32_0 = arith.constant 0 : i32
    %c0_i32_1 = arith.constant 0 : i32
    return %arg0, %c0_i32, %c0_i32_0 : i32, i32, i32
  }
}

</mosaic_0001>

<bundles_post_ra>
// kernel: tpu_custom_call.1
= control target key start
LH: loop header
LB: loop body
LE: loop exit
PB: predicated region body
PF: predicated region fallthrough
CT: control target
= control target key end

     0   :  { %s5998_s0 = inlined_call_operand.vmem [shape: f32[2,8,900], index: 0, kind: input, shape index: {}]   ;;  %s5999_s1 = inlined_call_operand.vmem [shape: f32[8,72], index: 1, kind: input, shape index: {}]   ;;  %s6000_s2 = inlined_call_operand.vmem [shape: f32[8,1], index: 2, kind: input, shape index: {}]   ;;  %s6001_s3 = inlined_call_operand.vmem [shape: f32[8,72], index: 3, kind: input, shape index: {}]   ;;  %s6002_s4 = inlined_call_operand.vmem [shape: f32[8,1], index: 4, kind: input, shape index: {}]   ;;  %s6003_s5 = inlined_call_operand.vmem [shape: f32[8,72], index: 5, kind: input, shape index: {}]   ;;  %s6004_s6 = inlined_call_operand.vmem [shape: f32[8,1], index: 6, kind: input, shape index: {}]   ;;  %s6005_s7 = inlined_call_operand.vmem [shape: f32[8,72], index: 7, kind: input, shape index: {}]   ;;  %s6006_s8 = inlined_call_operand.vmem [shape: f32[8,1], index: 8, kind: input, shape index: {}]   ;;  %s6007_s9 = inlined_call_operand.vmem [shape: f32[8,49,10], index: 9, kind: input, shape index: {}]   ;;  %s6008_s10 = inlined_call_operand.vmem [shape: f32[1,10], index: 10, kind: input, shape index: {}]   ;;  %s6009_s11 = inlined_call_operand.vmem [shape: f32[1,838], index: 11, kind: input, shape index: {}]   ;;  %s6010_s12 = inlined_call_operand.vmem [shape: f32[1,222], index: 12, kind: input, shape index: {}]   ;;  %s6011_s13 = inlined_call_operand.hbm [shape: f32[807,256], index: 13, kind: input, shape index: {}]   ;;  %s6012_s14 = inlined_call_operand.vmem [shape: f32[205,49], index: 14, kind: input, shape index: {}]   ;;  %s6013_s15 = inlined_call_operand.hbm [shape: f32[2,1,10], index: 15, kind: output, shape index: {}]  }
   0x1   :  { %6021 = sst [smem:[#allocation16_spill]] %s5998_s0 }
   0x2   :  { %20 = vsyncpa [#allocation6], 0 }
   0x3   :  { %21 = vsyncpa [#allocation7], 0 }
   0x4   :  { %23 = vsyncpa [#allocation7 + $0x1], 0  ;;  %s4702_s18 = smov 0   ;;  %s4704_s19 = smov 0  }
   0x5   :  { %s4706_s20 = smov 0   ;;  %s4708_s21 = smov 0  }
   0x6 LB: > { %6022 = sst [smem:[#allocation11_spill]] %s4586_s18  ;;  %s4723_s22 = sadd.s32 4294967295, %s4598_s21   ;;  %s4598_s21 = sphi %s4708_s21, %s6035_s21   ;;  %s4594_s20 = sphi %s4706_s20, %s6037_s20   ;;  %s4590_s19 = sphi %s4704_s19, %s6039_s19   ;;  %s4586_s18 = sphi %s4702_s18, %s6038_s18  }
   0x7   : > { %6023 = sst [smem:[#allocation12_spill]] %s4594_s20  ;;  %s4055_s23 = sadd.s32 4294967294, %s4598_s21  }
   0x8   : > { %s4727_s24 = sadd.s32 1, %s4598_s21   ;;  %s356_s25 = sadd.s32 1, %s4594_s20 }
   0x9   : > { %6024 = sst [smem:[#allocation13_spill]] %s4727_s24  ;;  %s353_s26 = ssub.s32 %s4598_s21, %s4727_s24 }
   0xa   : > { %p366_p0 = scmp.ne.s32.totalorder %s4594_s20, %s4590_s19  ;;  %p354_p1 = scmp.eq.s32.totalorder %s353_s26, 0 }
   0xb   : > { %p367_p2 = scmp.eq.s32.totalorder %s4723_s22, 1  ;;  %p372_p3 = scmp.ne.s32.totalorder %s4590_s19, %s4586_s18 }
   0xc   : > { %p373_p4 = scmp.eq.s32.totalorder %s4055_s23, 1  ;;  %p4056_p7 = scmp.ge.s32.totalorder %s4598_s21, 1 }
   0xd   : > { %s4738_s27 = scalar_select %p354_p1, %s4594_s20, %s356_s25  }
   0xe   : > { %p4740_p5 = por %p367_p2, %p366_p0  ;;  %p4744_p6 = por %p373_p4, %p372_p3 }
   0xf   : > { %6025 = sst [smem:[#allocation14_spill]] %s4738_s27  ;;  %p380_p8 = scmp.lt.s32.totalorder %s4598_s21, 3 }
  0x10   : > { %s6027_s29 = scalar_select %p4744_p6, 1, 0 }
  0x11   : > { %p4423_p9 = scmp.eq.s32.totalorder %s4723_s22, 0  ;;  %p4751_p10 = pnand %p4056_p7, %p380_p8 }
  0x12   : > { %6028 = sst [smem:[#allocation15_spill]] %s6027_s29  ;;  %s4600_s16 = smov [#allocation5]  }
  0x13   : > { %s428_s17 = sshll.u32 %s4600_s16, 4  ;;  %p4415_p11 = pneg %p4751_p10  ;;  %s429_s17 = int_to_ptr.vmem [resolvable:$true] %s428_s17 }
  0x14   : > { %s4519_s23 = scalar_lea.vmem %s429_s17, 25856  ;;  %p4527_p3 = scmp.lt.s32.totalorder %s429_s17, %s429_s17 }
  0x15   : > { %p4416_p12 = pnand %p4423_p9, %p4415_p11  ;;  %p4520_p0 = scmp.ne.s32.totalorder %s429_s17, %s4519_s23 }
  0x16   : > { %p4528_p4 = scmp.lt.s32.totalorder %s4519_s23, %s4519_s23 }
  0x17   : > { %p4510_p13 = pneg %p4416_p12 }
  0x18   : > { %p4529_p6 = por %p4528_p4, %p4527_p3 }
  0x19   : > { %p4522_p1 = pnand %p4520_p0, %p4510_p13 }
  0x1b   : > { %p4523_p2 = pneg %p4522_p1 }
  0x1d   : > { %p4530_p7 = pnand %p4529_p6, %p4523_p2 }
  0x1f   : > { %4533 = shalt.err (!%p4530_p7)
}
  0x20   : > { %s4601_s25 = smov 256   ;;  %s4602_s26 = smov 16  }
  0x21   : > { %4418 = dma.hbm_to_vmem [thread:$0]  (!%p4416_p12), %s6011_s13, 25856, %s429_s17, [#allocation6], %s4601_s25, %s4601_s25, %s4602_s26  }
  0x22   : > { %455 = sbr.rel (%p4751_p10) target bundleno = 3065 (0xbf9), region = 80 }
  0x27   : > { %4577 = dma.done.wait (%p4423_p9), [#allocation6], 25856  }
  0x28   : > { %4579 = vsyncadd (%p4423_p9), [#allocation6], 4294941440  ;;  %p502_p8 = scmp.lt.s32.totalorder %s4723_s22, 1  ;;  %s6030_s0 = sld [smem:[#allocation16_spill]]  ;;  %v4611_v3 = vmov 0.0   ;;  %vm520_vm0 = vcmask 572416  }
  0x29   : > { %s4603_s20 = smov 66   ;;  %s4604_s24 = smov 67   ;;  %1293 = vst [vmem:[#allocation2] sm:$0xff] %v4611_v3  ;;  %1299 = vst [vmem:[#allocation2 + $0x30] sm:$0xff] %v4611_v3  ;;  %1067 = vmatprep.mubr.f32.mxu0 %v4611_v3  ;;  %1138 = vmatprep.mubr.f32.mxu1 %v4611_v3  ;;  %vm907_vm1 = vcmask 539648   ;;  %v4612_v13 = vmov 0  }
  0x2a   : > { %s503_s16 = scalar_select %p502_p8, %s4723_s22, 1  ;;  %2927 = vst [vmem:[#allocation3] sm:$0xff] %v4611_v3  ;;  %2928 = vst [vmem:[#allocation3 + $0x8] sm:$0xff] %v4611_v3  ;;  %4479 = vset.pattern.permute.xlu1 %v4612_v13  ;;  %v993_v14 = vld [vmem:[%s6000_s2] sm:$0xff]  ;;  %4480 = vset.pattern.permute.xlu0 %v4612_v13  ;;  %vm853_vm2 = vcmask 547840   ;;  %vm799_vm3 = vcmask 556032  }
  0x2b   : > { %s4605_s27 = smov 68   ;;  %s4606_s29 = smov 96   ;;  %vm746_vm4 = vcmask 785408   ;;  %vm697_vm5 = vcmask 793600   ;;  %vm648_vm6 = vcmask 801792   ;;  %vm599_vm7 = vcmask 1031168  }
  0x2c   : > { %s4146_s23 = sshll.u32 %s503_s16, 6  ;;  %s4607_s30 = smov 97   ;;  %vm550_vm8 = vcmask 1039360   ;;  %v4955_v51 = vld [vmem:[%s5999_s1] sm:$0xff]  ;;  %vm999_vm9 = vcmask 588800   ;;  %vm4613_vm10 = vmmov 0  }
  0x2d   : > { %s4608_s17 = smov 98   ;;  %s4609_s25 = smov 126   ;;  %vm1300_vm11 = vcmask 31744   ;;  %vm1381_vm12 = vcmask 1047800   ;;  %vm1367_vm13 = vcmask 252928   ;;  %vm1388_vm14 = vcmask 826368  }
  0x2e   : > { %s4773_s18 = scalar_lea.vmem %s6030_s0, %s4146_s23  ;;  %s6019_s26 = smov 127   ;;  %1301 = vst.msk [vmem:[#allocation2 + $0x38] sm:$0xff] %vm1300_vm11, %v4611_v3  ;;  %vm2454_vm15 = vcmask 1046528   ;;  %vm2953_vm11 = vcmask 1047688  }
  0x2f   : > { %v4776_v0 = vld [vmem:[%s4773_s18 + $0x8] sm:$0xff]  ;;  %v4779_v1 = vld [vmem:[%s4773_s18] sm:$0xff]  ;;  %v4786_v2 = vld [vmem:[%s4773_s18 + $0x10] sm:$0xff]  ;;  %s4614_s16 = smov 31   ;;  %s4616_s23 = smov 95  }
  0x30   : > { %893 = vrot.lane.b32.xlu0 %v4776_v0, %s4603_s20  ;;  %891 = vrot.lane.b32.xlu1 %v4779_v1, %s4603_s20  ;;  %v4837_v4 = vld [vmem:[%s4773_s18 + $0x18] sm:$0xff]  ;;  %v4840_v5 = vld [vmem:[%s4773_s18 + $0x20] sm:$0xff] }
  0x31   : > { %v4853_v6 = vld [vmem:[%s4773_s18 + $0x28] sm:$0xff]  ;;  %v881_v7 = vld [vmem:[%s4773_s18 + $0x30] sm:$0xff]  ;;  %v882_v8 = vld [vmem:[%s4773_s18 + $0x38] sm:$0xff]  ;;  %s4617_s18 = smov 110  }
  0x32   : > { %521 = vst.msk [vmem:[#allocation4 + $0x30] sm:$0xff] %vm520_vm0, %v881_v7 }
  0x34   : > { %895 = vrot.lane.b32.xlu0 %v4786_v2, %s4603_s20  ;;  %839 = vrot.lane.b32.xlu1 %v4776_v0, %s4604_s24 }
  0x38   : > { %841 = vrot.lane.b32.xlu0 %v4786_v2, %s4604_s24  ;;  %837 = vrot.lane.b32.xlu1 %v4779_v1, %s4604_s24 }
  0x3c   : > { %787 = vrot.lane.b32.xlu1 %v4786_v2, %s4605_s27  ;;  %785 = vrot.lane.b32.xlu0 %v4776_v0, %s4605_s27 }
  0x40   : > { %783 = vrot.lane.b32.xlu0 %v4779_v1, %s4605_s27  ;;  %734 = vrot.lane.b32.xlu1 %v4776_v0, %s4606_s29 }
  0x44   : > { %736 = vrot.lane.b32.xlu0 %v4786_v2, %s4606_s29  ;;  %732 = vrot.lane.b32.xlu1 %v4779_v1, %s4606_s29 }
  0x48   : > { %687 = vrot.lane.b32.xlu1 %v4786_v2, %s4607_s30  ;;  %685 = vrot.lane.b32.xlu0 %v4776_v0, %s4607_s30 }
  0x4c   : > { %683 = vrot.lane.b32.xlu0 %v4779_v1, %s4607_s30  ;;  %636 = vrot.lane.b32.xlu1 %v4776_v0, %s4608_s17 }
  0x50   : > { %638 = vrot.lane.b32.xlu0 %v4786_v2, %s4608_s17  ;;  %634 = vrot.lane.b32.xlu1 %v4779_v1, %s4608_s17 }
  0x54   : > { %589 = vrot.lane.b32.xlu1 %v4786_v2, %s4609_s25  ;;  %587 = vrot.lane.b32.xlu0 %v4776_v0, %s4609_s25 }
  0x58   : > { %585 = vrot.lane.b32.xlu0 %v4779_v1, %s4609_s25  ;;  %538 = vrot.lane.b32.xlu1 %v4776_v0, %s6019_s26 }
  0x5c   : > { %540 = vrot.lane.b32.xlu0 %v4786_v2, %s6019_s26  ;;  %536 = vrot.lane.b32.xlu1 %v4779_v1, %s6019_s26 }
  0x60   : > { %897 = vrot.lane.b32.xlu0 %v4837_v4, %s4603_s20  ;;  %899 = vrot.lane.b32.xlu1 %v4840_v5, %s4603_s20 }
  0x64   : > { %843 = vrot.lane.b32.xlu0 %v4837_v4, %s4604_s24  ;;  %845 = vrot.lane.b32.xlu1 %v4840_v5, %s4604_s24 }
  0x68   : > { %901 = vrot.lane.b32.xlu0 %v4853_v6, %s4603_s20  ;;  %903 = vrot.lane.b32.xlu1 %v881_v7, %s4603_s20 }
  0x6c   : > { %789 = vrot.lane.b32.xlu0 %v4837_v4, %s4605_s27  ;;  %791 = vrot.lane.b32.xlu1 %v4840_v5, %s4605_s27 }
  0x70   : > { %847 = vrot.lane.b32.xlu0 %v4853_v6, %s4604_s24  ;;  %849 = vrot.lane.b32.xlu1 %v881_v7, %s4604_s24 }
  0x74   : > { %738 = vrot.lane.b32.xlu0 %v4837_v4, %s4606_s29  ;;  %740 = vrot.lane.b32.xlu1 %v4840_v5, %s4606_s29 }
  0x78   : > { %793 = vrot.lane.b32.xlu0 %v4853_v6, %s4605_s27  ;;  %795 = vrot.lane.b32.xlu1 %v881_v7, %s4605_s27 }
  0x7c   : > { %689 = vrot.lane.b32.xlu0 %v4837_v4, %s4607_s30  ;;  %691 = vrot.lane.b32.xlu1 %v4840_v5, %s4607_s30 }
  0x80   : > { %742 = vrot.lane.b32.xlu0 %v4853_v6, %s4606_s29  ;;  %744 = vrot.lane.b32.xlu1 %v881_v7, %s4606_s29 }
  0x84   : > { %640 = vrot.lane.b32.xlu0 %v4837_v4, %s4608_s17  ;;  %642 = vrot.lane.b32.xlu1 %v4840_v5, %s4608_s17 }
  0x88   : > { %693 = vrot.lane.b32.xlu0 %v4853_v6, %s4607_s30  ;;  %695 = vrot.lane.b32.xlu1 %v881_v7, %s4607_s30 }
  0x8c   : > { %591 = vrot.lane.b32.xlu0 %v4837_v4, %s4609_s25  ;;  %593 = vrot.lane.b32.xlu1 %v4840_v5, %s4609_s25 }
  0x90   : > { %644 = vrot.lane.b32.xlu0 %v4853_v6, %s4608_s17  ;;  %646 = vrot.lane.b32.xlu1 %v881_v7, %s4608_s17 }
  0x94   : > { %542 = vrot.lane.b32.xlu0 %v4837_v4, %s6019_s26  ;;  %544 = vrot.lane.b32.xlu1 %v4840_v5, %s6019_s26 }
  0x98   : > { %595 = vrot.lane.b32.xlu0 %v4853_v6, %s4609_s25  ;;  %597 = vrot.lane.b32.xlu1 %v881_v7, %s4609_s25 }
  0x9c   : > { %546 = vrot.lane.b32.xlu0 %v4853_v6, %s6019_s26  ;;  %548 = vrot.lane.b32.xlu1 %v881_v7, %s6019_s26 }
  0xa0   : > { %905 = vrot.lane.b32.xlu0 %v882_v8, %s4603_s20  ;;  %851 = vrot.lane.b32.xlu1 %v882_v8, %s4604_s24 }
  0xa2   : > { %v894_v9 = vpop.permute.xlu0 %893  ;;  %v892_v10 = vpop.permute.xlu1 %891 }
  0xa3   : > { %v908_v16 = vsel %vm907_vm1, %v892_v10, %v894_v9 }
  0xa4   : > { %797 = vrot.lane.b32.xlu0 %v882_v8, %s4605_s27  ;;  %996 = vperm.xlu1 %4479, %v993_v14  }
  0xa6   : > { %v4909_v11 = vpop.permute.xlu0 %895  ;;  %v840_v12 = vpop.permute.xlu1 %839 }
  0xa7   : > { %v909_v15 = vsel %vm907_vm1, %v894_v9, %v4909_v11 }
  0xa8   : > { %1017 = vmatprep.subr.mxu0 %v909_v15 }
  0xa9   : > { %1018 = vmatpush1.msra.mxu0 %v908_v16 }
  0xaa   : > { %v4917_v17 = vpop.permute.xlu0 %841  ;;  %v838_v18 = vpop.permute.xlu1 %837 }
  0xab   : > { %v855_v19 = vsel %vm853_vm2, %v840_v12, %v4917_v17  ;;  %v854_v20 = vsel %vm853_vm2, %v838_v18, %v840_v12 }
  0xac   : > { %1019 = vmatprep.subr.mxu0 %v855_v19 }
  0xad   : > { %1020 = vmatpush1.msra.mxu0 %v854_v20 }
  0xae   : > { %v4922_v21 = vpop.permute.xlu1 %787  ;;  %v786_v22 = vpop.permute.xlu0 %785 }
  0xaf   : > { %v801_v23 = vsel %vm799_vm3, %v786_v22, %v4922_v21 }
  0xb0   : > { %1021 = vmatprep.subr.mxu0 %v801_v23 }
  0xb2   : > { %v784_v24 = vpop.permute.xlu0 %783  ;;  %v735_v25 = vpop.permute.xlu1 %734 }
  0xb3   : > { %v800_v26 = vsel %vm799_vm3, %v784_v24, %v786_v22 }
  0xb4   : > { %1022 = vmatpush1.msra.mxu0 %v800_v26 }
  0xb6   : > { %v4927_v27 = vpop.permute.xlu0 %736  ;;  %v733_v28 = vpop.permute.xlu1 %732 }
  0xb7   : > { %v748_v29 = vsel %vm746_vm4, %v735_v25, %v4927_v27  ;;  %v747_v30 = vsel %vm746_vm4, %v733_v28, %v735_v25 }
  0xb8   : > { %1023 = vmatprep.subr.mxu0 %v748_v29 }
  0xb9   : > { %1024 = vmatpush1.msra.mxu0 %v747_v30 }
  0xba   : > { %v4932_v31 = vpop.permute.xlu1 %687  ;;  %v686_v32 = vpop.permute.xlu0 %685 }
  0xbb   : > { %v699_v33 = vsel %vm697_vm5, %v686_v32, %v4932_v31 }
  0xbc   : > { %1025 = vmatprep.subr.mxu0 %v699_v33 }
  0xbe   : > { %v684_v34 = vpop.permute.xlu0 %683  ;;  %v637_v35 = vpop.permute.xlu1 %636 }
  0xbf   : > { %v698_v36 = vsel %vm697_vm5, %v684_v34, %v686_v32 }
  0xc0   : > { %1026 = vmatpush1.msra.mxu0 %v698_v36 }
  0xc2   : > { %v4937_v37 = vpop.permute.xlu0 %638  ;;  %v635_v38 = vpop.permute.xlu1 %634 }
  0xc3   : > { %v650_v39 = vsel %vm648_vm6, %v637_v35, %v4937_v37  ;;  %v649_v40 = vsel %vm648_vm6, %v635_v38, %v637_v35 }
  0xc4   : > { %1027 = vmatprep.subr.mxu0 %v650_v39 }
  0xc5   : > { %1028 = vmatpush1.msra.mxu0 %v649_v40 }
  0xc6   : > { %v4942_v41 = vpop.permute.xlu1 %589  ;;  %v588_v42 = vpop.permute.xlu0 %587 }
  0xc7   : > { %v601_v43 = vsel %vm599_vm7, %v588_v42, %v4942_v41 }
  0xc8   : > { %1029 = vmatprep.subr.mxu0 %v601_v43 }
  0xca   : > { %v586_v44 = vpop.permute.xlu0 %585  ;;  %v539_v45 = vpop.permute.xlu1 %538 }
  0xcb   : > { %v600_v46 = vsel %vm599_vm7, %v586_v44, %v588_v42 }
  0xcc   : > { %1030 = vmatpush1.msra.mxu0 %v600_v46 }
  0xce   : > { %v4947_v47 = vpop.permute.xlu0 %540  ;;  %v537_v48 = vpop.permute.xlu1 %536 }
  0xcf   : > { %v552_v49 = vsel %vm550_vm8, %v539_v45, %v4947_v47  ;;  %v551_v50 = vsel %vm550_vm8, %v537_v48, %v539_v45 }
  0xd0   : > { %1031 = vmatprep.subr.mxu0 %v552_v49 }
  0xd1   : > { %1032 = vmatpush1.msra.mxu0 %v551_v50 }
  0xd2   : > { %v898_v52 = vpop.permute.xlu0 %897  ;;  %v900_v53 = vpop.permute.xlu1 %899  ;;  %1033 = vmatprep.subr.mxu0 %v4776_v0 }
  0xd3   : > { %v910_v54 = vsel %vm907_vm1, %v4909_v11, %v898_v52  ;;  %v911_v55 = vsel %vm907_vm1, %v898_v52, %v900_v53  ;;  %1034 = vmatpush1.msra.mxu0 %v4779_v1 }
  0xd4   : > { %1088 = vmatprep.subr.mxu1 %v911_v55  ;;  %4063 = vmatmul.mubr.msk.f32.vlgmr.msra.gmra.mxu0 %vm999_vm9, %v4955_v51 }
  0xd5   : > { %1089 = vmatpush1.msra.mxu1 %v910_v54  ;;  %1209 = vmatprep.mubr.f32.mxu0 %v4611_v3 }
  0xd6   : > { %v844_v56 = vpop.permute.xlu0 %843  ;;  %v846_v57 = vpop.permute.xlu1 %845 }
  0xd7   : > { %v856_v58 = vsel %vm853_vm2, %v4917_v17, %v844_v56  ;;  %v857_v59 = vsel %vm853_vm2, %v844_v56, %v846_v57 }
  0xd8   : > { %1090 = vmatprep.subr.mxu1 %v857_v59 }
  0xd9   : > { %1091 = vmatpush1.msra.mxu1 %v856_v58 }
  0xda   : > { %v902_v60 = vpop.permute.xlu0 %901  ;;  %v4968_v61 = vpop.permute.xlu1 %903 }
  0xdb   : > { %v912_v62 = vsel %vm907_vm1, %v900_v53, %v902_v60  ;;  %v913_v63 = vsel %vm907_vm1, %v902_v60, %v4968_v61 }
  0xdc   : > { %1159 = vmatprep.subr.mxu0 %v913_v63 }
  0xdd   : > { %1160 = vmatpush1.msra.mxu0 %v912_v62 }
  0xde   : > { %v790_v0 = vpop.permute.xlu0 %789  ;;  %v792_v1 = vpop.permute.xlu1 %791 }
  0xdf   : > { %v802_v7 = vsel %vm799_vm3, %v4922_v21, %v790_v0  ;;  %v803_v8 = vsel %vm799_vm3, %v790_v0, %v792_v1 }
  0xe0   : > { %1092 = vmatprep.subr.mxu1 %v803_v8 }
  0xe1   : > { %1093 = vmatpush1.msra.mxu1 %v802_v7 }
  0xe2   : > { %v848_v9 = vpop.permute.xlu0 %847  ;;  %v4976_v10 = vpop.permute.xlu1 %849 }
  0xe3   : > { %v858_v11 = vsel %vm853_vm2, %v846_v57, %v848_v9  ;;  %v859_v12 = vsel %vm853_vm2, %v848_v9, %v4976_v10  ;;  %v936_v9 = vld [vmem:[#allocation4 + $0x30] sm:$0xff] }
  0xe4   : > { %1161 = vmatprep.subr.mxu0 %v859_v12 }
  0xe5   : > { %1162 = vmatpush1.msra.mxu0 %v858_v11 }
  0xe6   : > { %v739_v13 = vpop.permute.xlu0 %738  ;;  %v741_v14 = vpop.permute.xlu1 %740 }
  0xe7   : > { %v749_v15 = vsel %vm746_vm4, %v4927_v27, %v739_v13  ;;  %v750_v16 = vsel %vm746_vm4, %v739_v13, %v741_v14 }
  0xe8   : > { %1094 = vmatprep.subr.mxu1 %v750_v16 }
  0xe9   : > { %1095 = vmatpush1.msra.mxu1 %v749_v15 }
  0xea   : > { %v794_v17 = vpop.permute.xlu0 %793  ;;  %v4984_v18 = vpop.permute.xlu1 %795 }
  0xeb   : > { %v804_v19 = vsel %vm799_vm3, %v792_v1, %v794_v17  ;;  %v805_v20 = vsel %vm799_vm3, %v794_v17, %v4984_v18 }
  0xec   : > { %1163 = vmatprep.subr.mxu0 %v805_v20 }
  0xed   : > { %1164 = vmatpush1.msra.mxu0 %v804_v19 }
  0xee   : > { %v690_v21 = vpop.permute.xlu0 %689  ;;  %v692_v22 = vpop.permute.xlu1 %691 }
  0xef   : > { %v700_v23 = vsel %vm697_vm5, %v4932_v31, %v690_v21  ;;  %v701_v24 = vsel %vm697_vm5, %v690_v21, %v692_v22 }
  0xf0   : > { %1096 = vmatprep.subr.mxu1 %v701_v24 }
  0xf1   : > { %1097 = vmatpush1.msra.mxu1 %v700_v23 }
  0xf2   : > { %v743_v25 = vpop.permute.xlu0 %742  ;;  %v745_v26 = vpop.permute.xlu1 %744 }
  0xf3   : > { %v751_v27 = vsel %vm746_vm4, %v741_v14, %v743_v25  ;;  %v752_v28 = vsel %vm746_vm4, %v743_v25, %v745_v26  ;;  %766 = vst.msk [vmem:[#allocation4 + $0x148] sm:$0xff] %vm520_vm0, %v745_v26  ;;  %v1302_v14 = vld [vmem:[%s6009_s11] sm:$0x7f] }
  0xf4   : > { %1165 = vmatprep.subr.mxu0 %v752_v28 }
  0xf5   : > { %1166 = vmatpush1.msra.mxu0 %v751_v27 }
  0xf6   : > { %v641_v29 = vpop.permute.xlu0 %640  ;;  %v643_v30 = vpop.permute.xlu1 %642 }
  0xf7   : > { %v651_v32 = vsel %vm648_vm6, %v4937_v37, %v641_v29  ;;  %v652_v31 = vsel %vm648_vm6, %v641_v29, %v643_v30 }
  0xf8   : > { %1098 = vmatprep.subr.mxu1 %v652_v31 }
  0xf9   : > { %1099 = vmatpush1.msra.mxu1 %v651_v32 }
  0xfa   : > { %v694_v33 = vpop.permute.xlu0 %693  ;;  %v696_v34 = vpop.permute.xlu1 %695  ;;  %v971_v63 = vld [vmem:[#allocation4 + $0x148] sm:$0xff] }
  0xfb   : > { %v702_v35 = vsel %vm697_vm5, %v692_v22, %v694_v33  ;;  %v703_v36 = vsel %vm697_vm5, %v694_v33, %v696_v34  ;;  %717 = vst.msk [vmem:[#allocation4 + $0x110] sm:$0xff] %vm520_vm0, %v696_v34 }
  0xfc   : > { %1167 = vmatprep.subr.mxu0 %v703_v36 }
  0xfd   : > { %1168 = vmatpush1.msra.mxu0 %v702_v35 }
  0xfe   : > { %v592_v38 = vpop.permute.xlu0 %591  ;;  %v594_v39 = vpop.permute.xlu1 %593 }
  0xff   : > { %v602_v40 = vsel %vm599_vm7, %v4942_v41, %v592_v38  ;;  %v603_v37 = vsel %vm599_vm7, %v592_v38, %v594_v39 }
 0x100   : > { %1100 = vmatprep.subr.mxu1 %v603_v37 }
 0x101   : > { %1101 = vmatpush1.msra.mxu1 %v602_v40 }
 0x102   : > { %v645_v42 = vpop.permute.xlu0 %644  ;;  %v647_v43 = vpop.permute.xlu1 %646  ;;  %v964_v0 = vld [vmem:[#allocation4 + $0x110] sm:$0xff] }
 0x103   : > { %v653_v44 = vsel %vm648_vm6, %v643_v30, %v645_v42  ;;  %v654_v45 = vsel %vm648_vm6, %v645_v42, %v647_v43  ;;  %668 = vst.msk [vmem:[#allocation4 + $0xd8] sm:$0xff] %vm520_vm0, %v647_v43 }
 0x104   : > { %1169 = vmatprep.subr.mxu0 %v654_v45 }
 0x105   : > { %1170 = vmatpush1.msra.mxu0 %v653_v44 }
 0x106   : > { %v543_v46 = vpop.permute.xlu0 %542  ;;  %v545_v48 = vpop.permute.xlu1 %544 }
 0x107   : > { %v553_v49 = vsel %vm550_vm8, %v4947_v47, %v543_v46  ;;  %v554_v41 = vsel %vm550_vm8, %v543_v46, %v545_v48 }
 0x108   : > { %1102 = vmatprep.subr.mxu1 %v554_v41 }
 0x109   : > { %1103 = vmatpush1.msra.mxu1 %v553_v49 }
 0x10a   : > { %v596_v50 = vpop.permute.xlu0 %595  ;;  %v598_v52 = vpop.permute.xlu1 %597  ;;  %1104 = vmatprep.subr.mxu1 %v4837_v4  ;;  %v957_v1 = vld [vmem:[#allocation4 + $0xd8] sm:$0xff] }
 0x10b   : > { %v604_v53 = vsel %vm599_vm7, %v594_v39, %v596_v50  ;;  %v605_v54 = vsel %vm599_vm7, %v596_v50, %v598_v52  ;;  %619 = vst.msk [vmem:[#allocation4 + $0xa0] sm:$0xff] %vm520_vm0, %v598_v52  ;;  %1105 = vmatpush1.msra.mxu1 %v4786_v2 }
 0x10c   : > { %4064 = vmatmul.mubr.msk.f32.vlgmr.msra.gmra.mxu1 %vm999_vm9, %v4955_v51  ;;  %1171 = vmatprep.subr.mxu0 %v605_v54 }
 0x10d   : > { %1172 = vmatpush1.msra.mxu0 %v604_v53  ;;  %4231 = vmatprep.subr.mxu1 %v4611_v3 }
 0x10e   : > { %v547_v47 = vpop.permute.xlu0 %546  ;;  %v549_v55 = vpop.permute.xlu1 %548  ;;  %4249 = vmatprep.mubr.msk.f32.mxu1 %vm4613_vm10, %v4611_v3 }
 0x10f   : > { %v555_v4 = vsel %vm550_vm8, %v545_v48, %v547_v47  ;;  %v556_v56 = vsel %vm550_vm8, %v547_v47, %v549_v55  ;;  %570 = vst.msk [vmem:[#allocation4 + $0x68] sm:$0xff] %vm520_vm0, %v549_v55 }
 0x110   : > { %1173 = vmatprep.subr.mxu0 %v556_v56 }
 0x111   : > { %1174 = vmatpush1.msra.mxu0 %v555_v4 }
 0x112   : > { %v906_v2 = vpop.permute.xlu0 %905  ;;  %v852_v57 = vpop.permute.xlu1 %851  ;;  %1175 = vmatprep.subr.mxu0 %v4853_v6  ;;  %v950_v7 = vld [vmem:[#allocation4 + $0xa0] sm:$0xff] }
 0x113   : > { %v914_v58 = vsel %vm907_vm1, %v4968_v61, %v906_v2  ;;  %v860_v59 = vsel %vm853_vm2, %v4976_v10, %v852_v57  ;;  %1176 = vmatpush1.msra.mxu0 %v4840_v5  ;;  %v1304_v10 = vlaneseq }
 0x114   : > { %928 = vst.msk [vmem:[#allocation4 + $0x1f0] sm:$0xff] %vm520_vm0, %v914_v58  ;;  %874 = vst.msk [vmem:[#allocation4 + $0x1b8] sm:$0xff] %vm520_vm0, %v860_v59  ;;  %4065 = vmatmul.mubr.msk.f32.vlgmr.msra.gmra.mxu0 %vm999_vm9, %v4955_v51 }
 0x115   : > { %1940 = vmatprep.mubr.f32.mxu0 %v4611_v3  ;;  %v5048_v11 = vshrl.u32 %v1304_v10, 7 }
 0x116   : > { %v798_v60 = vpop.permute.xlu0 %797  ;;  %v943_v8 = vld [vmem:[#allocation4 + $0x68] sm:$0xff] }
 0x117   : > { %v806_v6 = vsel %vm799_vm3, %v4984_v18, %v798_v60  ;;  %v1306_v12 = vsub.s32 0, %v5048_v11  ;;  %v1310_v15 = vsub.s32 1, %v5048_v11  ;;  %v1314_v25 = vsub.s32 2, %v5048_v11 }
 0x118   : > { %820 = vst.msk [vmem:[#allocation4 + $0x180] sm:$0xff] %vm520_vm0, %v806_v6  ;;  %v1318_v26 = vsub.s32 3, %v5048_v11  ;;  %v1322_v36 = vsub.s32 4, %v5048_v11  ;;  %v1326_v39 = vsub.s32 5, %v5048_v11  ;;  %v1330_v50 = vsub.s32 6, %v5048_v11 }
 0x119   : > { %v1307_v18 = vrot.slane %v1302_v14, %v1306_v12  ;;  %v1311_v21 = vrot.slane %v1302_v14, %v1310_v15  ;;  %v1315_v29 = vrot.slane %v1302_v14, %v1314_v25 }
 0x11a   : > { %v1319_v33 = vrot.slane %v1302_v14, %v1318_v26  ;;  %v1323_v42 = vrot.slane %v1302_v14, %v1322_v36  ;;  %v1327_v46 = vrot.slane %v1302_v14, %v1326_v39  ;;  %v1331_v54 = vrot.slane %v1302_v14, %v1330_v50 }
 0x11b   : > { %v992_v61 = vld [vmem:[#allocation4 + $0x1f0] sm:$0xff]  ;;  %v985_v5 = vld [vmem:[#allocation4 + $0x1b8] sm:$0xff] }
 0x11c   : > { %4232 = vmatpush3.msra.mxu1 %v992_v61 }
 0x11d   : > { %4233 = vmatprep.subr.mxu1 %v4611_v3 }
 0x11e   : > { %4234 = vmatpush3.msra.mxu1 %v985_v5 }
 0x11f   : > { %4235 = vmatprep.subr.mxu1 %v4611_v3  ;;  %v978_v62 = vld [vmem:[#allocation4 + $0x180] sm:$0xff]  ;;  %v997_v13 = vpop.permute.xlu1 %996 }
 0x120   : > { %4236 = vmatpush3.msra.mxu1 %v978_v62 }
 0x121   : > { %4237 = vmatprep.subr.mxu1 %v4611_v3 }
 0x122   : > { %4238 = vmatpush3.msra.mxu1 %v971_v63 }
 0x123   : > { %4239 = vmatprep.subr.mxu1 %v4611_v3 }
 0x124   : > { %4240 = vmatpush3.msra.mxu1 %v964_v0 }
 0x125   : > { %4241 = vmatprep.subr.mxu1 %v4611_v3 }
 0x126   : > { %4242 = vmatpush3.msra.mxu1 %v957_v1 }
 0x127   : > { %4243 = vmatprep.subr.mxu1 %v4611_v3 }
 0x128   : > { %4244 = vmatpush3.msra.mxu1 %v950_v7 }
 0x129   : > { %4245 = vmatprep.subr.mxu1 %v4611_v3 }
 0x12a   : > { %4246 = vmatpush3.msra.mxu1 %v943_v8  ;;  %v1757_v8 = vld [vmem:[#allocation2 + $0x38] sm:$0xff] }
 0x12b   : > { %4247 = vmatprep.subr.mxu1 %v4611_v3 }
 0x12c   : > { %4248 = vmatpush3.msra.mxu1 %v936_v9 }
 0x12d   : > { %4250 = vmatmul.mubr.msk.f32.vlgmr.msra.gmra.mxu1 %vm999_vm9, %v4955_v51 }
 0x12e   : > { %2011 = vmatprep.mubr.f32.mxu1 %v4611_v3 }
 0x194   : > { %v1069_v16 = vpop.f32.mrf.mxu0 }
 0x195   : > { %v1070_v17 = vadd.f32 %v1069_v16, %v997_v13 }
 0x196   : > { %v1071_v51 = vpop.f32.mrf.mxu0 }
 0x197   : > { %v1286_v19 = vmax.f32 %v1070_v17, 0.0  ;;  %v1072_v20 = vadd.f32 %v1071_v51, %v997_v13 }
 0x199   : > { %v1339_v22 = vmul.f32 %v1307_v18, %v1286_v19  ;;  %v1287_v23 = vmax.f32 %v1072_v20, 0.0  ;;  %v1867_v18 = vld [vmem:[%s6002_s4] sm:$0xff] }
 0x19b   : > { %1353 = vrot.lane.b32.xlu0 %v1339_v22, %s4614_s16  ;;  %v1340_v24 = vmul.f32 %v1311_v21, %v1287_v23 }
 0x19d   : > { %1355 = vrot.lane.b32.xlu1 %v1340_v24, %s4614_s16 }
 0x1cc   : > { %v1140_v27 = vpop.f32.mrf.mxu1 }
 0x1cd   : > { %v1141_v28 = vadd.f32 %v1140_v27, %v997_v13 }
 0x1ce   : > { %v1142_v30 = vpop.f32.mrf.mxu1 }
 0x1cf   : > { %v1288_v32 = vmax.f32 %v1141_v28, 0.0  ;;  %v1143_v31 = vadd.f32 %v1142_v30, %v997_v13 }
 0x1d1   : > { %v1341_v34 = vmul.f32 %v1315_v29, %v1288_v32  ;;  %v1289_v35 = vmax.f32 %v1143_v31, 0.0 }
 0x1d3   : > { %v1342_v38 = vmul.f32 %v1319_v33, %v1289_v35  ;;  %1357 = vrot.lane.b32.xlu0 %v1341_v34, %s4614_s16 }
 0x1d4   : > { %v1211_v40 = vpop.f32.mrf.mxu0 }
 0x1d5   : > { %v1212_v37 = vadd.f32 %v1211_v40, %v997_v13  ;;  %1359 = vrot.lane.b32.xlu1 %v1342_v38, %s4614_s16 }
 0x1d6   : > { %v1213_v43 = vpop.f32.mrf.mxu0 }
 0x1d7   : > { %v1290_v44 = vmax.f32 %v1212_v37, 0.0  ;;  %v1214_v45 = vadd.f32 %v1213_v43, %v997_v13 }
 0x1d9   : > { %v1343_v48 = vmul.f32 %v1323_v42, %v1290_v44  ;;  %v1291_v49 = vmax.f32 %v1214_v45, 0.0 }
 0x1db   : > { %v1344_v41 = vmul.f32 %v1327_v46, %v1291_v49  ;;  %1361 = vrot.lane.b32.xlu0 %v1343_v48, %s4614_s16 }
 0x1dd   : > { %1363 = vrot.lane.b32.xlu1 %v1344_v41, %s4614_s16 }
 0x1ed   : > { %v1282_v52 = vpop.f32.mrf.mxu1 }
 0x1ee   : > { %v1283_v53 = vadd.f32 %v1282_v52, %v997_v13 }
 0x1ef   : > { %v4251_v47 = vpop.f32.mrf.mxu1 }
 0x1f0   : > { %v1292_v55 = vmax.f32 %v1283_v53, 0.0 }
 0x1f2   : > { %v1345_v4 = vmul.f32 %v1331_v54, %v1292_v55 }
 0x1f4   : > { %1365 = vrot.lane.b32.xlu0 %v1345_v4, %s4614_s16  ;;  %s4618_s16 = smov 111  }
 0x20d   : > { %v1354_v56 = vpop.permute.xlu0 %1353 }
 0x20e   : > { %1382 = vst.msk [vmem:[#allocation2] sm:$0xff] %vm1381_vm12, %v1354_v56  ;;  %vm2949_vm12 = vcmask 138240  }
 0x20f   : > { %v1356_v2 = vpop.permute.xlu1 %1355 }
 0x210   : > { %v5073_v57 = vsel %vm1367_vm13, %v1354_v56, %v1356_v2 }
 0x211   : > { %1398 = vst [vmem:[#allocation4 + $0x8] sm:$0xff] %v5073_v57 }
 0x215   : > { %v5076_v58 = vld [vmem:[#allocation2] sm:$0xff] }
 0x216   : > { %1766 = vrot.lane.b32.xlu1 %v5076_v58, %s4603_s20  ;;  %1713 = vrot.lane.b32.xlu0 %v5076_v58, %s4604_s24 }
 0x21a   : > { %1660 = vrot.lane.b32.xlu1 %v5076_v58, %s4605_s27  ;;  %1610 = vrot.lane.b32.xlu0 %v5076_v58, %s4606_s29 }
 0x21e   : > { %1562 = vrot.lane.b32.xlu1 %v5076_v58, %s4607_s30  ;;  %1514 = vrot.lane.b32.xlu0 %v5076_v58, %s4608_s17 }
 0x222   : > { %1466 = vrot.lane.b32.xlu1 %v5076_v58, %s4609_s25 }
 0x226   : > { %1768 = vrot.lane.b32.xlu1 %v5073_v57, %s4603_s20 }
 0x245   : > { %v1358_v3 = vpop.permute.xlu0 %1357 }
 0x246   : > { %v5095_v59 = vsel %vm1367_vm13, %v1356_v2, %v1358_v3 }
 0x247   : > { %v1360_v60 = vpop.permute.xlu1 %1359  ;;  %1770 = vrot.lane.b32.xlu0 %v5095_v59, %s4603_s20 }
 0x248   : > { %v5100_v6 = vsel %vm1367_vm13, %v1358_v3, %v1360_v60 }
 0x249   : > { %1772 = vrot.lane.b32.xlu1 %v5100_v6, %s4603_s20 }
 0x24b   : > { %1715 = vrot.lane.b32.xlu0 %v5073_v57, %s4604_s24 }
 0x24d   : > { %v1362_v61 = vpop.permute.xlu0 %1361  ;;  %1717 = vrot.lane.b32.xlu1 %v5095_v59, %s4604_s24 }
 0x24e   : > { %v5109_v5 = vsel %vm1367_vm13, %v1360_v60, %v1362_v61 }
 0x24f   : > { %v1364_v62 = vpop.permute.xlu1 %1363  ;;  %1719 = vrot.lane.b32.xlu0 %v5100_v6, %s4604_s24 }
 0x250   : > { %v5114_v63 = vsel %vm1367_vm13, %v1362_v61, %v1364_v62 }
 0x251   : > { %1662 = vrot.lane.b32.xlu1 %v5073_v57, %s4605_s27 }
 0x253   : > { %1664 = vrot.lane.b32.xlu0 %v5095_v59, %s4605_s27 }
 0x255   : > { %1666 = vrot.lane.b32.xlu1 %v5100_v6, %s4605_s27 }
 0x257   : > { %1612 = vrot.lane.b32.xlu0 %v5073_v57, %s4606_s29 }
 0x259   : > { %1614 = vrot.lane.b32.xlu1 %v5095_v59, %s4606_s29 }
 0x25b   : > { %1616 = vrot.lane.b32.xlu0 %v5100_v6, %s4606_s29 }
 0x25d   : > { %1564 = vrot.lane.b32.xlu1 %v5073_v57, %s4607_s30 }
 0x25f   : > { %1566 = vrot.lane.b32.xlu0 %v5095_v59, %s4607_s30 }
 0x261   : > { %1568 = vrot.lane.b32.xlu1 %v5100_v6, %s4607_s30 }
 0x263   : > { %1516 = vrot.lane.b32.xlu0 %v5073_v57, %s4608_s17 }
 0x265   : > { %1518 = vrot.lane.b32.xlu1 %v5095_v59, %s4608_s17 }
 0x266   : > { %v1366_v0 = vpop.permute.xlu0 %1365 }
 0x267   : > { %v1373_v1 = vsel %vm1367_vm13, %v1364_v62, %v1366_v0  ;;  %1520 = vrot.lane.b32.xlu0 %v5100_v6, %s4608_s17 }
 0x268   : > { %1389 = vst.msk [vmem:[#allocation2 + $0x30] sm:$0xff] %vm1388_vm14, %v1373_v1 }
 0x269   : > { %1468 = vrot.lane.b32.xlu1 %v5073_v57, %s4609_s25 }
 0x26b   : > { %1470 = vrot.lane.b32.xlu0 %v5095_v59, %s4609_s25 }
 0x26d   : > { %1472 = vrot.lane.b32.xlu1 %v5100_v6, %s4609_s25 }
 0x26f   : > { %v1396_v7 = vld [vmem:[#allocation2 + $0x30] sm:$0xff]  ;;  %1420 = vrot.lane.b32.xlu0 %v5073_v57, %s6019_s26 }
 0x270   : > { %1403 = vst.msk [vmem:[#allocation4 + $0x30] sm:$0xff] %vm520_vm0, %v1396_v7 }
 0x271   : > { %1422 = vrot.lane.b32.xlu1 %v5095_v59, %s6019_s26 }
 0x273   : > { %1424 = vrot.lane.b32.xlu0 %v5100_v6, %s6019_s26 }
 0x275   : > { %1721 = vrot.lane.b32.xlu1 %v5109_v5, %s4604_s24 }
 0x277   : > { %1774 = vrot.lane.b32.xlu0 %v5109_v5, %s4603_s20 }
 0x279   : > { %1618 = vrot.lane.b32.xlu1 %v5109_v5, %s4606_s29 }
 0x27b   : > { %1668 = vrot.lane.b32.xlu0 %v5109_v5, %s4605_s27 }
 0x27d   : > { %1522 = vrot.lane.b32.xlu1 %v5109_v5, %s4608_s17 }
 0x27f   : > { %1570 = vrot.lane.b32.xlu0 %v5109_v5, %s4607_s30 }
 0x281   : > { %1426 = vrot.lane.b32.xlu1 %v5109_v5, %s6019_s26 }
 0x283   : > { %1474 = vrot.lane.b32.xlu0 %v5109_v5, %s4609_s25 }
 0x285   : > { %1780 = vrot.lane.b32.xlu1 %v1757_v8, %s4603_s20 }
 0x287   : > { %1418 = vrot.lane.b32.xlu0 %v5076_v58, %s6019_s26 }
 0x288   : > { %v1767_v9 = vpop.permute.xlu1 %1766  ;;  %v1714_v13 = vpop.permute.xlu0 %1713 }
 0x289   : > { %1776 = vrot.lane.b32.xlu1 %v5114_v63, %s4603_s20 }
 0x28b   : > { %1727 = vrot.lane.b32.xlu0 %v1757_v8, %s4604_s24 }
 0x28c   : > { %v1661_v10 = vpop.permute.xlu1 %1660  ;;  %v1611_v16 = vpop.permute.xlu0 %1610 }
 0x28d   : > { %1723 = vrot.lane.b32.xlu1 %v5114_v63, %s4604_s24 }
 0x28f   : > { %1778 = vrot.lane.b32.xlu0 %v1396_v7, %s4603_s20  ;;  %s4619_s20 = smov 112  }
 0x290   : > { %v1563_v14 = vpop.permute.xlu1 %1562  ;;  %v1515_v51 = vpop.permute.xlu0 %1514 }
 0x291   : > { %1670 = vrot.lane.b32.xlu1 %v5114_v63, %s4605_s27 }
 0x293   : > { %1725 = vrot.lane.b32.xlu0 %v1396_v7, %s4604_s24 }
 0x294   : > { %v1467_v17 = vpop.permute.xlu1 %1466 }
 0x295   : > { %1620 = vrot.lane.b32.xlu1 %v5114_v63, %s4606_s29 }
 0x297   : > { %1672 = vrot.lane.b32.xlu0 %v1396_v7, %s4605_s27 }
 0x298   : > { %v1769_v19 = vpop.permute.xlu1 %1768 }
 0x299   : > { %1572 = vrot.lane.b32.xlu1 %v5114_v63, %s4607_s30  ;;  %v1782_v22 = vsel %vm907_vm1, %v1767_v9, %v1769_v19 }
 0x29b   : > { %1622 = vrot.lane.b32.xlu0 %v1396_v7, %s4606_s29 }
 0x29d   : > { %1524 = vrot.lane.b32.xlu1 %v5114_v63, %s4608_s17 }
 0x29f   : > { %1574 = vrot.lane.b32.xlu0 %v1396_v7, %s4607_s30  ;;  %s4620_s30 = smov 17  }
 0x2a1   : > { %1478 = vrot.lane.b32.xlu1 %v1396_v7, %s4609_s25 }
 0x2a3   : > { %1526 = vrot.lane.b32.xlu0 %v1396_v7, %s4608_s17 }
 0x2a5   : > { %1428 = vrot.lane.b32.xlu1 %v5114_v63, %s6019_s26 }
 0x2a7   : > { %1476 = vrot.lane.b32.xlu0 %v5114_v63, %s4609_s25 }
 0x2a9   : > { %1674 = vrot.lane.b32.xlu1 %v1757_v8, %s4605_s27 }
 0x2ab   : > { %1430 = vrot.lane.b32.xlu0 %v1396_v7, %s6019_s26 }
 0x2af   : > { %1870 = vperm.xlu0 %4480, %v1867_v18  }
 0x2b9   : > { %v1771_v20 = vpop.permute.xlu0 %1770 }
 0x2ba   : > { %v1783_v21 = vsel %vm907_vm1, %v1769_v19, %v1771_v20 }
 0x2bb   : > { %1797 = vst [vmem:[#allocation4 + $0x1c8] sm:$0xff] %v1783_v21  ;;  %v5204_v23 = vpop.permute.xlu1 %1772  ;;  %1890 = vmatprep.subr.mxu0 %v1783_v21 }
 0x2bc   : > { %v5208_v24 = vsel %vm907_vm1, %v1771_v20, %v5204_v23  ;;  %1891 = vmatpush1.msra.mxu0 %v1782_v22 }
 0x2bd   : > { %v1716_v25 = vpop.permute.xlu0 %1715 }
 0x2be   : > { %v1729_v28 = vsel %vm853_vm2, %v1714_v13, %v1716_v25 }
 0x2bf   : > { %v1718_v26 = vpop.permute.xlu1 %1717 }
 0x2c0   : > { %v1730_v27 = vsel %vm853_vm2, %v1716_v25, %v1718_v26 }
 0x2c1   : > { %1744 = vst [vmem:[#allocation4 + $0x190] sm:$0xff] %v1730_v27  ;;  %v1720_v29 = vpop.permute.xlu0 %1719  ;;  %1892 = vmatprep.subr.mxu0 %v1730_v27 }
 0x2c2   : > { %v5213_v30 = vsel %vm853_vm2, %v1718_v26, %v1720_v29  ;;  %1893 = vmatpush1.msra.mxu0 %v1729_v28 }
 0x2c3   : > { %v1663_v32 = vpop.permute.xlu1 %1662 }
 0x2c4   : > { %v1676_v34 = vsel %vm799_vm3, %v1661_v10, %v1663_v32 }
 0x2c5   : > { %v1665_v31 = vpop.permute.xlu0 %1664 }
 0x2c6   : > { %v1677_v33 = vsel %vm799_vm3, %v1663_v32, %v1665_v31 }
 0x2c7   : > { %1691 = vst [vmem:[#allocation4 + $0x158] sm:$0xff] %v1677_v33  ;;  %v1667_v35 = vpop.permute.xlu1 %1666  ;;  %1894 = vmatprep.subr.mxu0 %v1677_v33 }
 0x2c8   : > { %v1678_v36 = vsel %vm799_vm3, %v1665_v31, %v1667_v35  ;;  %1895 = vmatpush1.msra.mxu0 %v1676_v34  ;;  %v5270_v34 = vld [vmem:[#allocation3] sm:$0xff] }
 0x2c9   : > { %v1613_v38 = vpop.permute.xlu0 %1612 }
 0x2ca   : > { %v1624_v37 = vsel %vm746_vm4, %v1611_v16, %v1613_v38 }
 0x2cb   : > { %v1615_v39 = vpop.permute.xlu1 %1614 }
 0x2cc   : > { %v1625_v40 = vsel %vm746_vm4, %v1613_v38, %v1615_v39 }
 0x2cd   : > { %1638 = vst [vmem:[#allocation4 + $0x120] sm:$0xff] %v1625_v40  ;;  %v1617_v42 = vpop.permute.xlu0 %1616  ;;  %1896 = vmatprep.subr.mxu0 %v1625_v40 }
 0x2ce   : > { %v1626_v43 = vsel %vm746_vm4, %v1615_v39, %v1617_v42  ;;  %1897 = vmatpush1.msra.mxu0 %v1624_v37 }
 0x2cf   : > { %v1565_v44 = vpop.permute.xlu1 %1564 }
 0x2d0   : > { %v1576_v48 = vsel %vm697_vm5, %v1563_v14, %v1565_v44 }
 0x2d1   : > { %v1567_v45 = vpop.permute.xlu0 %1566 }
 0x2d2   : > { %v1577_v46 = vsel %vm697_vm5, %v1565_v44, %v1567_v45 }
 0x2d3   : > { %1590 = vst [vmem:[#allocation4 + $0xe8] sm:$0xff] %v1577_v46  ;;  %v1569_v49 = vpop.permute.xlu1 %1568  ;;  %1898 = vmatprep.subr.mxu0 %v1577_v46 }
 0x2d4   : > { %v1578_v41 = vsel %vm697_vm5, %v1567_v45, %v1569_v49  ;;  %1899 = vmatpush1.msra.mxu0 %v1576_v48 }
 0x2d5   : > { %v1517_v50 = vpop.permute.xlu0 %1516 }
 0x2d6   : > { %v1528_v54 = vsel %vm648_vm6, %v1515_v51, %v1517_v50 }
 0x2d7   : > { %v1519_v52 = vpop.permute.xlu1 %1518 }
 0x2d8   : > { %v1529_v53 = vsel %vm648_vm6, %v1517_v50, %v1519_v52 }
 0x2d9   : > { %1542 = vst [vmem:[#allocation4 + $0xb0] sm:$0xff] %v1529_v53  ;;  %v1521_v47 = vpop.permute.xlu0 %1520  ;;  %1900 = vmatprep.subr.mxu0 %v1529_v53 }
 0x2da   : > { %v1530_v55 = vsel %vm648_vm6, %v1519_v52, %v1521_v47  ;;  %1901 = vmatpush1.msra.mxu0 %v1528_v54 }
 0x2db   : > { %v1469_v4 = vpop.permute.xlu1 %1468 }
 0x2dc   : > { %v1480_v3 = vsel %vm599_vm7, %v1467_v17, %v1469_v4 }
 0x2dd   : > { %v1471_v56 = vpop.permute.xlu0 %1470 }
 0x2de   : > { %v1481_v2 = vsel %vm599_vm7, %v1469_v4, %v1471_v56 }
 0x2df   : > { %1494 = vst [vmem:[#allocation4 + $0x78] sm:$0xff] %v1481_v2  ;;  %v1473_v60 = vpop.permute.xlu1 %1472  ;;  %1902 = vmatprep.subr.mxu0 %v1481_v2 }
 0x2e0   : > { %v1482_v61 = vsel %vm599_vm7, %v1471_v56, %v1473_v60  ;;  %1903 = vmatpush1.msra.mxu0 %v1480_v3 }
 0x2e1   : > { %v1421_v62 = vpop.permute.xlu0 %1420 }
 0x2e3   : > { %v1423_v0 = vpop.permute.xlu1 %1422 }
 0x2e4   : > { %v1433_v1 = vsel %vm550_vm8, %v1421_v62, %v1423_v0 }
 0x2e5   : > { %1446 = vst [vmem:[#allocation4 + $0x40] sm:$0xff] %v1433_v1  ;;  %v1425_v7 = vpop.permute.xlu0 %1424  ;;  %1904 = vmatprep.subr.mxu0 %v1433_v1 }
 0x2e6   : > { %v1434_v8 = vsel %vm550_vm8, %v1423_v0, %v1425_v7 }
 0x2e7   : > { %v1722_v9 = vpop.permute.xlu1 %1721 }
 0x2e8   : > { %v1732_v10 = vsel %vm853_vm2, %v1720_v29, %v1722_v9 }
 0x2e9   : > { %v1775_v13 = vpop.permute.xlu0 %1774 }
 0x2ea   : > { %v1785_v14 = vsel %vm907_vm1, %v5204_v23, %v1775_v13 }
 0x2eb   : > { %v5235_v16 = vpop.permute.xlu1 %1618  ;;  %1961 = vmatprep.subr.mxu1 %v1785_v14 }
 0x2ec   : > { %v1627_v17 = vsel %vm746_vm4, %v1617_v42, %v5235_v16  ;;  %1962 = vmatpush1.msra.mxu1 %v5208_v24 }
 0x2ed   : > { %v1669_v18 = vpop.permute.xlu0 %1668  ;;  %1963 = vmatprep.subr.mxu1 %v1732_v10 }
 0x2ee   : > { %v1679_v51 = vsel %vm799_vm3, %v1667_v35, %v1669_v18  ;;  %1964 = vmatpush1.msra.mxu1 %v5213_v30  ;;  %v5259_v30 = vld [vmem:[%s6001_s3] sm:$0xff] }
 0x2ef   : > { %v5242_v19 = vpop.permute.xlu1 %1522  ;;  %1965 = vmatprep.subr.mxu1 %v1679_v51 }
 0x2f0   : > { %v1531_v20 = vsel %vm648_vm6, %v1521_v47, %v5242_v19  ;;  %1966 = vmatpush1.msra.mxu1 %v1678_v36 }
 0x2f1   : > { %v1571_v21 = vpop.permute.xlu0 %1570  ;;  %1967 = vmatprep.subr.mxu1 %v1627_v17  ;;  %v1810_v17 = vld [vmem:[#allocation4 + $0x30] sm:$0xff] }
 0x2f2   : > { %v1579_v22 = vsel %vm697_vm5, %v1569_v49, %v1571_v21  ;;  %1968 = vmatpush1.msra.mxu1 %v1626_v43 }
 0x2f3   : > { %v5247_v23 = vpop.permute.xlu1 %1426  ;;  %1969 = vmatprep.subr.mxu1 %v1579_v22 }
 0x2f4   : > { %v1435_v24 = vsel %vm550_vm8, %v1425_v7, %v5247_v23  ;;  %1970 = vmatpush1.msra.mxu1 %v1578_v41 }
 0x2f5   : > { %v5251_v25 = vpop.permute.xlu0 %1474  ;;  %1971 = vmatprep.subr.mxu1 %v1531_v20 }
 0x2f6   : > { %v1483_v26 = vsel %vm599_vm7, %v1473_v60, %v5251_v25  ;;  %1972 = vmatpush1.msra.mxu1 %v1530_v55 }
 0x2f7   : > { %v1781_v27 = vpop.permute.xlu1 %1780  ;;  %1973 = vmatprep.subr.mxu1 %v1483_v26 }
 0x2f8   : > { %1974 = vmatpush1.msra.mxu1 %v1482_v61 }
 0x2f9   : > { %v1419_v28 = vpop.permute.xlu0 %1418  ;;  %1975 = vmatprep.subr.mxu1 %v1435_v24 }
 0x2fa   : > { %v1432_v29 = vsel %vm550_vm8, %v1419_v28, %v1421_v62  ;;  %1976 = vmatpush1.msra.mxu1 %v1434_v8 }
 0x2fb   : > { %v1777_v32 = vpop.permute.xlu1 %1776  ;;  %1905 = vmatpush1.msra.mxu0 %v1432_v29  ;;  %1977 = vmatprep.subr.mxu1 %v5100_v6 }
 0x2fc   : > { %v1786_v31 = vsel %vm907_vm1, %v1775_v13, %v1777_v32  ;;  %1906 = vmatprep.subr.mxu0 %v5073_v57  ;;  %1978 = vmatpush1.msra.mxu1 %v5095_v59 }
 0x2fd   : > { %v1728_v33 = vpop.permute.xlu0 %1727  ;;  %1907 = vmatpush1.msra.mxu0 %v5076_v58  ;;  %4068 = vmatmul.mubr.msk.f32.vlgmr.msra.gmra.mxu1 %vm999_vm9, %v5259_v30 }
 0x2fe   : > { %4067 = vmatmul.mubr.msk.f32.vlgmr.msra.gmra.mxu0 %vm999_vm9, %v5259_v30  ;;  %4252 = vmatprep.subr.mxu1 %v5270_v34 }
 0x2ff   : > { %v1724_v6 = vpop.permute.xlu1 %1723  ;;  %2082 = vmatprep.mubr.f32.mxu0 %v5270_v34  ;;  %4270 = vmatprep.mubr.msk.f32.mxu1 %vm4613_vm10, %v5270_v34 }
 0x300   : > { %v1733_v57 = vsel %vm853_vm2, %v1722_v9, %v1724_v6 }
 0x301   : > { %v1779_v59 = vpop.permute.xlu0 %1778 }
 0x302   : > { %v1787_v58 = vsel %vm907_vm1, %v1777_v32, %v1779_v59  ;;  %v1788_v35 = vsel %vm907_vm1, %v1779_v59, %v1781_v27  ;;  %v2278_v59 = vld [vmem:[#allocation5 + $0xf0] sm:$0xff]  ;;  %vm2746_vm1 = vcmask 769024  }
 0x303   : > { %1802 = vst.msk [vmem:[#allocation4 + $0x1f0] sm:$0xff] %vm520_vm0, %v1788_v35  ;;  %v1671_v36 = vpop.permute.xlu1 %1670  ;;  %2032 = vmatprep.subr.mxu0 %v1787_v58  ;;  %v2277_v58 = vld [vmem:[#allocation5 + $0xe8] sm:$0xff]  ;;  %v2276_v35 = vld [vmem:[#allocation5 + $0xe0] sm:$0xff] }
 0x304   : > { %v1680_v38 = vsel %vm799_vm3, %v1669_v18, %v1671_v36  ;;  %2033 = vmatpush1.msra.mxu0 %v1786_v31 }
 0x305   : > { %v1726_v39 = vpop.permute.xlu0 %1725 }
 0x306   : > { %v1734_v40 = vsel %vm853_vm2, %v1724_v6, %v1726_v39  ;;  %v1735_v37 = vsel %vm853_vm2, %v1726_v39, %v1728_v33  ;;  %v2275_v39 = vld [vmem:[#allocation5 + $0xd8] sm:$0xff]  ;;  %vm2811_vm2 = vcmask 777216  }
 0x307   : > { %1749 = vst.msk [vmem:[#allocation4 + $0x1b8] sm:$0xff] %vm520_vm0, %v1735_v37  ;;  %v1621_v42 = vpop.permute.xlu1 %1620  ;;  %2034 = vmatprep.subr.mxu0 %v1734_v40  ;;  %v2274_v40 = vld [vmem:[#allocation5 + $0xd0] sm:$0xff] }
 0x308   : > { %v1628_v43 = vsel %vm746_vm4, %v5235_v16, %v1621_v42  ;;  %2035 = vmatpush1.msra.mxu0 %v1733_v57  ;;  %v2279_v57 = vld [vmem:[#allocation5 + $0xf8] sm:$0xff] }
 0x309   : > { %v1673_v44 = vpop.permute.xlu0 %1672 }
 0x30a   : > { %v1681_v45 = vsel %vm799_vm3, %v1671_v36, %v1673_v44  ;;  %v1866_v46 = vld [vmem:[#allocation4 + $0x1f0] sm:$0xff] }
 0x30b   : > { %v1573_v48 = vpop.permute.xlu1 %1572  ;;  %4253 = vmatpush3.msra.mxu1 %v1866_v46  ;;  %2036 = vmatprep.subr.mxu0 %v1681_v45  ;;  %v2270_v45 = vld [vmem:[#allocation5 + $0xb0] sm:$0xff]  ;;  %v2269_v46 = vld [vmem:[#allocation5 + $0xa8] sm:$0xff] }
 0x30c   : > { %v1580_v49 = vsel %vm697_vm5, %v1571_v21, %v1573_v48  ;;  %4254 = vmatprep.subr.mxu1 %v5270_v34  ;;  %2037 = vmatpush1.msra.mxu0 %v1680_v38 }
 0x30d   : > { %v1623_v41 = vpop.permute.xlu0 %1622 }
 0x30e   : > { %v1629_v50 = vsel %vm746_vm4, %v1621_v42, %v1623_v41  ;;  %1643 = vst.msk [vmem:[#allocation4 + $0x148] sm:$0xff] %vm520_vm0, %v1623_v41  ;;  %v1859_v52 = vld [vmem:[#allocation4 + $0x1b8] sm:$0xff]  ;;  %v2273_v42 = vld [vmem:[#allocation5 + $0xc8] sm:$0xff]  ;;  %v2266_v41 = vld [vmem:[#allocation5 + $0x90] sm:$0xff] }
 0x30f   : > { %v1525_v53 = vpop.permute.xlu1 %1524  ;;  %4255 = vmatpush3.msra.mxu1 %v1859_v52  ;;  %2038 = vmatprep.subr.mxu0 %v1629_v50  ;;  %v2343_v50 = vld [vmem:[#allocation5 + $0x2f8] sm:$0xff] }
 0x310   : > { %v1532_v54 = vsel %vm648_vm6, %v5242_v19, %v1525_v53  ;;  %2039 = vmatpush1.msra.mxu0 %v1628_v43  ;;  %4256 = vmatprep.subr.mxu1 %v5270_v34  ;;  %v2272_v43 = vld [vmem:[#allocation5 + $0xc0] sm:$0xff] }
 0x311   : > { %v1575_v47 = vpop.permute.xlu0 %1574 }
 0x312   : > { %v1581_v55 = vsel %vm697_vm5, %v1573_v48, %v1575_v47  ;;  %1595 = vst.msk [vmem:[#allocation4 + $0x110] sm:$0xff] %vm520_vm0, %v1575_v47  ;;  %v2268_v48 = vld [vmem:[#allocation5 + $0xa0] sm:$0xff]  ;;  %v2341_v47 = vld [vmem:[#allocation5 + $0x2e8] sm:$0xff]  ;;  %vm2782_vm5 = vcmask 908288  }
 0x313   : > { %v1479_v4 = vpop.permute.xlu1 %1478  ;;  %2040 = vmatprep.subr.mxu0 %v1581_v55  ;;  %v2264_v55 = vld [vmem:[#allocation5 + $0x80] sm:$0xff] }
 0x314   : > { %1499 = vst.msk [vmem:[#allocation4 + $0xa0] sm:$0xff] %vm520_vm0, %v1479_v4  ;;  %2041 = vmatpush1.msra.mxu0 %v1580_v49  ;;  %v2267_v49 = vld [vmem:[#allocation5 + $0x98] sm:$0xff] }
 0x315   : > { %v1527_v56 = vpop.permute.xlu0 %1526  ;;  %v1845_v13 = vld [vmem:[#allocation4 + $0x148] sm:$0xff] }
 0x316   : > { %v1533_v2 = vsel %vm648_vm6, %v1525_v53, %v1527_v56  ;;  %1547 = vst.msk [vmem:[#allocation4 + $0xd8] sm:$0xff] %vm520_vm0, %v1527_v56  ;;  %v2265_v53 = vld [vmem:[#allocation5 + $0x88] sm:$0xff] }
 0x317   : > { %v1429_v3 = vpop.permute.xlu1 %1428  ;;  %2042 = vmatprep.subr.mxu0 %v1533_v2  ;;  %v2263_v2 = vld [vmem:[#allocation5 + $0x78] sm:$0xff] }
 0x318   : > { %v1436_v60 = vsel %vm550_vm8, %v5247_v23, %v1429_v3  ;;  %2043 = vmatpush1.msra.mxu0 %v1532_v54  ;;  %v2342_v54 = vld [vmem:[#allocation5 + $0x2f0] sm:$0xff] }
 0x319   : > { %v1477_v61 = vpop.permute.xlu0 %1476  ;;  %v1838_v14 = vld [vmem:[#allocation4 + $0x110] sm:$0xff] }
 0x31a   : > { %v1484_v62 = vsel %vm599_vm7, %v5251_v25, %v1477_v61  ;;  %v1485_v0 = vsel %vm599_vm7, %v1477_v61, %v1479_v4  ;;  %v2340_v4 = vld [vmem:[#allocation5 + $0x2e0] sm:$0xff]  ;;  %v2262_v61 = vld [vmem:[#allocation5 + $0x70] sm:$0xff] }
 0x31b   : > { %v1675_v1 = vpop.permute.xlu1 %1674  ;;  %2044 = vmatprep.subr.mxu0 %v1485_v0  ;;  %v2261_v0 = vld [vmem:[#allocation5 + $0x68] sm:$0xff] }
 0x31c   : > { %v1682_v7 = vsel %vm799_vm3, %v1673_v44, %v1675_v1  ;;  %2045 = vmatpush1.msra.mxu0 %v1484_v62  ;;  %v2271_v44 = vld [vmem:[#allocation5 + $0xb8] sm:$0xff]  ;;  %v2337_v62 = vld [vmem:[#allocation5 + $0x2c8] sm:$0xff]  ;;  %v2336_v1 = vld [vmem:[#allocation5 + $0x2c0] sm:$0xff]  ;;  %vm2792_vm3 = vcmask 900096  }
 0x31d   : > { %1696 = vst.msk [vmem:[#allocation4 + $0x180] sm:$0xff] %vm520_vm0, %v1682_v7  ;;  %v1431_v8 = vpop.permute.xlu0 %1430  ;;  %v1831_v16 = vld [vmem:[#allocation4 + $0xd8] sm:$0xff] }
 0x31e   : > { %v1437_v9 = vsel %vm550_vm8, %v1429_v3, %v1431_v8  ;;  %1451 = vst.msk [vmem:[#allocation4 + $0x68] sm:$0xff] %vm520_vm0, %v1431_v8  ;;  %v2339_v3 = vld [vmem:[#allocation5 + $0x2d8] sm:$0xff]  ;;  %v2260_v7 = vld [vmem:[#allocation5 + $0x60] sm:$0xff]  ;;  %vm2450_vm0 = vcmask 318464  }
 0x31f   : > { %2046 = vmatprep.subr.mxu0 %v1437_v9  ;;  %v2335_v8 = vld [vmem:[#allocation5 + $0x2b8] sm:$0xff] }
 0x320   : > { %2047 = vmatpush1.msra.mxu0 %v1436_v60  ;;  %v2338_v60 = vld [vmem:[#allocation5 + $0x2d0] sm:$0xff]  ;;  %v2259_v9 = vld [vmem:[#allocation5 + $0x58] sm:$0xff] }
 0x321   : > { %2048 = vmatprep.subr.mxu0 %v5114_v63 }
 0x322   : > { %2049 = vmatpush1.msra.mxu0 %v5109_v5  ;;  %v1824_v5 = vld [vmem:[#allocation4 + $0xa0] sm:$0xff] }
 0x323   : > { %4069 = vmatmul.mubr.msk.f32.vlgmr.msra.gmra.mxu0 %vm999_vm9, %v5259_v30  ;;  %2461 = vmatprep.subr.mxu0 %v2279_v57  ;;  %v2251_v57 = vld [vmem:[#allocation5 + $0x18] sm:$0xff] }
 0x324   : > { %v1852_v10 = vld [vmem:[#allocation4 + $0x180] sm:$0xff]  ;;  %2462 = vmatpush1.msra.mxu0 %v2278_v59  ;;  %v2326_v59 = vld [vmem:[#allocation5 + $0x270] sm:$0xff] }
 0x325   : > { %4257 = vmatpush3.msra.mxu1 %v1852_v10  ;;  %v1817_v63 = vld [vmem:[#allocation4 + $0x68] sm:$0xff]  ;;  %2463 = vmatprep.subr.mxu0 %v2277_v58 }
 0x326   : > { %4258 = vmatprep.subr.mxu1 %v5270_v34  ;;  %2464 = vmatpush1.msra.mxu0 %v2276_v35  ;;  %v2334_v10 = vld [vmem:[#allocation5 + $0x2b0] sm:$0xff]  ;;  %v2325_v35 = vld [vmem:[#allocation5 + $0x268] sm:$0xff] }
 0x327   : > { %4259 = vmatpush3.msra.mxu1 %v1845_v13  ;;  %2465 = vmatprep.subr.mxu0 %v2275_v39  ;;  %v2258_v13 = vld [vmem:[#allocation5 + $0x50] sm:$0xff]  ;;  %v2249_v39 = vld [vmem:[#allocation5 + $0x8] sm:$0xff] }
 0x328   : > { %4260 = vmatprep.subr.mxu1 %v5270_v34  ;;  %2466 = vmatpush1.msra.mxu0 %v2274_v40  ;;  %v2250_v58 = vld [vmem:[#allocation5 + $0x10] sm:$0xff]  ;;  %v2324_v40 = vld [vmem:[#allocation5 + $0x260] sm:$0xff] }
 0x329   : > { %4261 = vmatpush3.msra.mxu1 %v1838_v14  ;;  %2467 = vmatprep.subr.mxu0 %v2273_v42  ;;  %v2333_v14 = vld [vmem:[#allocation5 + $0x2a8] sm:$0xff]  ;;  %v2323_v42 = vld [vmem:[#allocation5 + $0x258] sm:$0xff] }
 0x32a   : > { %4262 = vmatprep.subr.mxu1 %v5270_v34  ;;  %v5320_v51 = vpop.permute.xlu0 %1870  ;;  %2468 = vmatpush1.msra.mxu0 %v2272_v43  ;;  %v2311_v43 = vld [vmem:[#allocation5 + $0x1f8] sm:$0xff] }
 0x32b   : > { %4263 = vmatpush3.msra.mxu1 %v1831_v16  ;;  %2469 = vmatprep.subr.mxu0 %v2271_v44  ;;  %v2257_v16 = vld [vmem:[#allocation5 + $0x48] sm:$0xff]  ;;  %v2322_v44 = vld [vmem:[#allocation5 + $0x250] sm:$0xff] }
 0x32c   : > { %4264 = vmatprep.subr.mxu1 %v5270_v34  ;;  %2470 = vmatpush1.msra.mxu0 %v2270_v45  ;;  %v2310_v45 = vld [vmem:[#allocation5 + $0x1f0] sm:$0xff] }
 0x32d   : > { %4265 = vmatpush3.msra.mxu1 %v1824_v5  ;;  %2471 = vmatprep.subr.mxu0 %v2269_v46  ;;  %v2332_v5 = vld [vmem:[#allocation5 + $0x2a0] sm:$0xff]  ;;  %v2321_v46 = vld [vmem:[#allocation5 + $0x248] sm:$0xff] }
 0x32e   : > { %4266 = vmatprep.subr.mxu1 %v5270_v34  ;;  %2472 = vmatpush1.msra.mxu0 %v2268_v48  ;;  %v2309_v48 = vld [vmem:[#allocation5 + $0x1e8] sm:$0xff] }
 0x32f   : > { %4267 = vmatpush3.msra.mxu1 %v1817_v63  ;;  %2473 = vmatprep.subr.mxu0 %v2267_v49  ;;  %v2256_v63 = vld [vmem:[#allocation5 + $0x40] sm:$0xff] }
 0x330   : > { %4268 = vmatprep.subr.mxu1 %v5270_v34  ;;  %2474 = vmatpush1.msra.mxu0 %v2266_v41  ;;  %v2308_v49 = vld [vmem:[#allocation5 + $0x1e0] sm:$0xff]  ;;  %v2307_v41 = vld [vmem:[#allocation5 + $0x1d8] sm:$0xff] }
 0x331   : > { %4269 = vmatpush3.msra.mxu1 %v1810_v17  ;;  %2475 = vmatprep.subr.mxu0 %v2265_v53  ;;  %v2331_v17 = vld [vmem:[#allocation5 + $0x298] sm:$0xff]  ;;  %v2305_v53 = vld [vmem:[#allocation5 + $0x1c8] sm:$0xff] }
 0x332   : > { %4271 = vmatmul.mubr.msk.f32.vlgmr.msra.gmra.mxu1 %vm999_vm9, %v5259_v30  ;;  %2532 = vmatprep.subr.mxu1 %v2343_v50  ;;  %v2306_v50 = vld [vmem:[#allocation5 + $0x1d0] sm:$0xff] }
 0x333   : > { %2533 = vmatpush1.msra.mxu1 %v2342_v54  ;;  %2476 = vmatpush1.msra.mxu0 %v2264_v55  ;;  %v2304_v54 = vld [vmem:[#allocation5 + $0x1c0] sm:$0xff]  ;;  %v2302_v55 = vld [vmem:[#allocation5 + $0x1b0] sm:$0xff] }
 0x334   : > { %2534 = vmatprep.subr.mxu1 %v2341_v47  ;;  %2477 = vmatprep.subr.mxu0 %v2263_v2  ;;  %v2303_v47 = vld [vmem:[#allocation5 + $0x1b8] sm:$0xff] }
 0x335   : > { %2535 = vmatpush1.msra.mxu1 %v2340_v4  ;;  %2478 = vmatpush1.msra.mxu0 %v2262_v61  ;;  %v2301_v4 = vld [vmem:[#allocation5 + $0x1a8] sm:$0xff]  ;;  %v2299_v2 = vld [vmem:[#allocation5 + $0x198] sm:$0xff]  ;;  %v2296_v61 = vld [vmem:[#allocation5 + $0x180] sm:$0xff] }
 0x336   : > { %2536 = vmatprep.subr.mxu1 %v2339_v3  ;;  %2479 = vmatprep.subr.mxu0 %v2261_v0  ;;  %v2298_v3 = vld [vmem:[#allocation5 + $0x190] sm:$0xff] }
 0x337   : > { %2537 = vmatpush1.msra.mxu1 %v2338_v60  ;;  %2480 = vmatpush1.msra.mxu0 %v2260_v7  ;;  %v2297_v60 = vld [vmem:[#allocation5 + $0x188] sm:$0xff]  ;;  %v2294_v0 = vld [vmem:[#allocation5 + $0x170] sm:$0xff]  ;;  %v2292_v7 = vld [vmem:[#allocation5 + $0x160] sm:$0xff] }
 0x338   : > { %2538 = vmatprep.subr.mxu1 %v2337_v62  ;;  %2481 = vmatprep.subr.mxu0 %v2259_v9  ;;  %v2295_v62 = vld [vmem:[#allocation5 + $0x178] sm:$0xff]  ;;  %v2290_v9 = vld [vmem:[#allocation5 + $0x150] sm:$0xff] }
 0x339   : > { %2539 = vmatpush1.msra.mxu1 %v2336_v1  ;;  %2482 = vmatpush1.msra.mxu0 %v2258_v13  ;;  %v2293_v1 = vld [vmem:[#allocation5 + $0x168] sm:$0xff]  ;;  %v2288_v13 = vld [vmem:[#allocation5 + $0x140] sm:$0xff] }
 0x33a   : > { %2540 = vmatprep.subr.mxu1 %v2335_v8  ;;  %2483 = vmatprep.subr.mxu0 %v2257_v16  ;;  %v2291_v8 = vld [vmem:[#allocation5 + $0x158] sm:$0xff]  ;;  %v2320_v16 = vld [vmem:[#allocation5 + $0x240] sm:$0xff] }
 0x33b   : > { %2541 = vmatpush1.msra.mxu1 %v2334_v10  ;;  %2484 = vmatpush1.msra.mxu0 %v2256_v63  ;;  %v2289_v10 = vld [vmem:[#allocation5 + $0x148] sm:$0xff]  ;;  %v2319_v63 = vld [vmem:[#allocation5 + $0x238] sm:$0xff] }
 0x33c   : > { %2542 = vmatprep.subr.mxu1 %v2333_v14  ;;  %v2287_v14 = vld [vmem:[#allocation5 + $0x138] sm:$0xff] }
 0x33d   : > { %2543 = vmatpush1.msra.mxu1 %v2332_v5  ;;  %v2286_v5 = vld [vmem:[#allocation5 + $0x130] sm:$0xff] }
 0x33e   : > { %2544 = vmatprep.subr.mxu1 %v2331_v17  ;;  %v2285_v17 = vld [vmem:[#allocation5 + $0x128] sm:$0xff] }
 0x3bd   : > { %v2013_v18 = vpop.f32.mrf.mxu1 }
 0x3be   : > { %v1942_v19 = vpop.f32.mrf.mxu0  ;;  %v5323_v20 = vadd.f32 %v2013_v18, %v5320_v51  ;;  %v2255_v18 = vld [vmem:[#allocation5 + $0x38] sm:$0xff] }
 0x3bf   : > { %v2015_v21 = vpop.f32.mrf.mxu1  ;;  %v5326_v23 = vadd.f32 %v1942_v19, %v5320_v51  ;;  %v2330_v19 = vld [vmem:[#allocation5 + $0x290] sm:$0xff]  ;;  %2485 = vmatprep.subr.mxu0 %v2255_v18 }
 0x3c0   : > { %v1944_v22 = vpop.f32.mrf.mxu0  ;;  %v5329_v24 = vadd.f32 %v2015_v21, %v5320_v51  ;;  %v2161_v26 = vmax.f32 %v5323_v20, 0.0  ;;  %v2254_v21 = vld [vmem:[#allocation5 + $0x30] sm:$0xff]  ;;  %2545 = vmatpush1.msra.mxu1 %v2330_v19  ;;  %v2284_v19 = vld [vmem:[#allocation5 + $0x120] sm:$0xff]  ;;  %v2367_v20 = vld [vmem:[#allocation5 + $0x3b8] sm:$0xff] }
 0x3c1   : > { %v5332_v25 = vadd.f32 %v1944_v22, %v5320_v51  ;;  %v2159_v28 = vmax.f32 %v5326_v23, 0.0  ;;  %v2329_v22 = vld [vmem:[#allocation5 + $0x288] sm:$0xff]  ;;  %2486 = vmatpush1.msra.mxu0 %v2254_v21  ;;  %v2318_v18 = vld [vmem:[#allocation5 + $0x230] sm:$0xff] }
 0x3c2   : > { %v2162_v29 = vmax.f32 %v5329_v24, 0.0  ;;  %2546 = vmatprep.subr.mxu1 %v2329_v22  ;;  %v2317_v21 = vld [vmem:[#allocation5 + $0x228] sm:$0xff] }
 0x3c3   : > { %v2160_v27 = vmax.f32 %v5332_v25, 0.0  ;;  %v2368_v25 = vld [vmem:[#allocation5 + $0x3c0] sm:$0xff] }
 0x3c4   : > { %v4486_v32 = vpack.i.bf16 %v2159_v28, %v2162_v29 }
 0x3c5   : > { %v4481_v30 = vpack.i.bf16 %v2161_v26, %v2160_v27 }
 0x3c7   : > { %4482 = vrot.lane.b32.xlu1 %v4481_v30, %s6019_s26  ;;  %v2253_v30 = vld [vmem:[#allocation5 + $0x28] sm:$0xff] }
 0x3c8   : > { %2487 = vmatprep.subr.mxu0 %v2253_v30  ;;  %v2283_v30 = vld [vmem:[#allocation5 + $0x118] sm:$0xff] }
 0x3cb   : > { %4487 = vrot.lane.b32.xlu1 %v4486_v32, %s6019_s26  ;;  %v2328_v32 = vld [vmem:[#allocation5 + $0x280] sm:$0xff] }
 0x3cc   : > { %2547 = vmatpush1.msra.mxu1 %v2328_v32  ;;  %v2316_v32 = vld [vmem:[#allocation5 + $0x220] sm:$0xff] }
 0x3e3   : > { %v2084_v31 = vpop.f32.mrf.mxu0 }
 0x3e4   : > { %v5349_v33 = vadd.f32 %v2084_v31, %v5320_v51  ;;  %v2252_v31 = vld [vmem:[#allocation5 + $0x20] sm:$0xff] }
 0x3e5   : > { %v2086_v34 = vpop.f32.mrf.mxu0  ;;  %2488 = vmatpush1.msra.mxu0 %v2252_v31 }
 0x3e6   : > { %v5352_v6 = vadd.f32 %v2086_v34, %v5320_v51  ;;  %v2163_v36 = vmax.f32 %v5349_v33, 0.0  ;;  %v2327_v34 = vld [vmem:[#allocation5 + $0x278] sm:$0xff]  ;;  %2489 = vmatprep.subr.mxu0 %v2251_v57  ;;  %v2282_v57 = vld [vmem:[#allocation5 + $0x110] sm:$0xff] }
 0x3e7   : > { %2548 = vmatprep.subr.mxu1 %v2327_v34  ;;  %2490 = vmatpush1.msra.mxu0 %v2250_v58  ;;  %v2281_v58 = vld [vmem:[#allocation5 + $0x108] sm:$0xff] }
 0x3e8   : > { %v2164_v38 = vmax.f32 %v5352_v6, 0.0  ;;  %2549 = vmatpush1.msra.mxu1 %v2326_v59  ;;  %2491 = vmatprep.subr.mxu0 %v2249_v39  ;;  %v2315_v59 = vld [vmem:[#allocation5 + $0x218] sm:$0xff]  ;;  %v2280_v39 = vld [vmem:[#allocation5 + $0x100] sm:$0xff] }
 0x3e9   : > { %2550 = vmatprep.subr.mxu1 %v2325_v35  ;;  %v2314_v35 = vld [vmem:[#allocation5 + $0x210] sm:$0xff]  ;;  %v2400_v6 = vld [vmem:[#allocation5 + $0x4c0] sm:$0xff] }
 0x3ea   : > { %v4491_v37 = vpack.i.bf16 %v2164_v38, %v2163_v36  ;;  %2551 = vmatpush1.msra.mxu1 %v2324_v40  ;;  %v2313_v40 = vld [vmem:[#allocation5 + $0x208] sm:$0xff] }
 0x3eb   : > { %2552 = vmatprep.subr.mxu1 %v2323_v42  ;;  %v2312_v42 = vld [vmem:[#allocation5 + $0x200] sm:$0xff] }
 0x3ec   : > { %4492 = vrot.lane.b32.xlu0 %v4491_v37, %s6019_s26  ;;  %v2248_v37 = vld [vmem:[#allocation5] sm:$0xff]  ;;  %2553 = vmatpush1.msra.mxu1 %v2322_v44 }
 0x3ed   : > { %2492 = vmatpush1.msra.mxu0 %v2248_v37  ;;  %2554 = vmatprep.subr.mxu1 %v2321_v46  ;;  %v2375_v46 = vld [vmem:[#allocation5 + $0x3f8] sm:$0xff] }
 0x3ee   : > { %2493 = vmatprep.subr.mxu0 %v2311_v43  ;;  %2555 = vmatpush1.msra.mxu1 %v2320_v16  ;;  %v2351_v16 = vld [vmem:[#allocation5 + $0x338] sm:$0xff] }
 0x3ef   : > { %2494 = vmatpush2.msra.mxu0 %v2310_v45  ;;  %2556 = vmatprep.subr.mxu1 %v2319_v63  ;;  %v2349_v63 = vld [vmem:[#allocation5 + $0x328] sm:$0xff] }
 0x3f0   : > { %2495 = vmatprep.subr.mxu0 %v2309_v48  ;;  %2557 = vmatpush1.msra.mxu1 %v2318_v18  ;;  %v2374_v48 = vld [vmem:[#allocation5 + $0x3f0] sm:$0xff]  ;;  %v2347_v18 = vld [vmem:[#allocation5 + $0x318] sm:$0xff] }
 0x3f1   : > { %2496 = vmatpush2.msra.mxu0 %v2308_v49  ;;  %2558 = vmatprep.subr.mxu1 %v2317_v21  ;;  %v2373_v49 = vld [vmem:[#allocation5 + $0x3e8] sm:$0xff] }
 0x3f2   : > { %v5361_v52 = vpop.f32.mrf.mxu1  ;;  %2497 = vmatprep.subr.mxu0 %v2307_v41  ;;  %2559 = vmatpush1.msra.mxu1 %v2316_v32  ;;  %v2372_v41 = vld [vmem:[#allocation5 + $0x3e0] sm:$0xff]  ;;  %v2345_v21 = vld [vmem:[#allocation5 + $0x308] sm:$0xff] }
 0x3f3   : > { %2498 = vmatpush2.msra.mxu0 %v2306_v50  ;;  %2560 = vmatprep.subr.mxu1 %v2315_v59 }
 0x3f4   : > { %v4272_v56 = vpop.f32.mrf.mxu1  ;;  %2499 = vmatprep.subr.mxu0 %v2305_v53  ;;  %2561 = vmatpush1.msra.mxu1 %v2314_v35 }
 0x3f5   : > { %2500 = vmatpush2.msra.mxu0 %v2304_v54  ;;  %v2300_v56 = vld [vmem:[#allocation5 + $0x1a0] sm:$0xff]  ;;  %2562 = vmatprep.subr.mxu1 %v2313_v40  ;;  %v2371_v54 = vld [vmem:[#allocation5 + $0x3d8] sm:$0xff]  ;;  %v2449_v40 = vld [vmem:[#allocation5 + $0x648] sm:$0x7f] }
 0x3f6   : > { %2501 = vmatprep.subr.mxu0 %v2303_v47  ;;  %2563 = vmatpush1.msra.mxu1 %v2312_v42 }
 0x3f7   : > { %2502 = vmatpush2.msra.mxu0 %v2302_v55  ;;  %2564 = vmatprep.subr.mxu1 %v2375_v46 }
 0x3f8   : > { %2503 = vmatprep.subr.mxu0 %v2301_v4  ;;  %2565 = vmatpush2.msra.mxu1 %v2374_v48 }
 0x3f9   : > { %2504 = vmatpush2.msra.mxu0 %v2300_v56  ;;  %2566 = vmatprep.subr.mxu1 %v2373_v49  ;;  %v2370_v56 = vld [vmem:[#allocation5 + $0x3d0] sm:$0xff] }
 0x3fa   : > { %2505 = vmatprep.subr.mxu0 %v2299_v2  ;;  %2567 = vmatpush2.msra.mxu1 %v2372_v41  ;;  %v2369_v2 = vld [vmem:[#allocation5 + $0x3c8] sm:$0xff]  ;;  %v2406_v49 = vld [vmem:[#allocation5 + $0x4f0] sm:$0xff] }
 0x3fb   : > { %2506 = vmatpush2.msra.mxu0 %v2298_v3  ;;  %v5386_v3 = vadd.f32 %v5361_v52, %v5320_v51  ;;  %2568 = vmatprep.subr.mxu1 %v2371_v54  ;;  %v2364_v51 = vld [vmem:[#allocation5 + $0x3a0] sm:$0xff]  ;;  %v2363_v52 = vld [vmem:[#allocation5 + $0x398] sm:$0xff] }
 0x3fc   : > { %2507 = vmatprep.subr.mxu0 %v2297_v60  ;;  %2569 = vmatpush2.msra.mxu1 %v2370_v56  ;;  %v2362_v60 = vld [vmem:[#allocation5 + $0x390] sm:$0xff]  ;;  %v2403_v54 = vld [vmem:[#allocation5 + $0x4d8] sm:$0xff] }
 0x3fd   : > { %2508 = vmatpush2.msra.mxu0 %v2296_v61  ;;  %2570 = vmatprep.subr.mxu1 %v2369_v2  ;;  %v2361_v61 = vld [vmem:[#allocation5 + $0x388] sm:$0xff]  ;;  %v2398_v56 = vld [vmem:[#allocation5 + $0x4b0] sm:$0xff] }
 0x3fe   : > { %2509 = vmatprep.subr.mxu0 %v2295_v62  ;;  %2571 = vmatpush2.msra.mxu1 %v2368_v25  ;;  %v2360_v62 = vld [vmem:[#allocation5 + $0x380] sm:$0xff]  ;;  %v2397_v2 = vld [vmem:[#allocation5 + $0x4a8] sm:$0xff]  ;;  %v2394_v25 = vld [vmem:[#allocation5 + $0x490] sm:$0xff] }
 0x3ff   : > { %2510 = vmatpush2.msra.mxu0 %v2294_v0  ;;  %2572 = vmatprep.subr.mxu1 %v2367_v20  ;;  %v2359_v0 = vld [vmem:[#allocation5 + $0x378] sm:$0xff]  ;;  %v2393_v20 = vld [vmem:[#allocation5 + $0x488] sm:$0xff] }
 0x400   : > { %2511 = vmatprep.subr.mxu0 %v2293_v1  ;;  %v2358_v1 = vld [vmem:[#allocation5 + $0x370] sm:$0xff] }
 0x401   : > { %2512 = vmatpush2.msra.mxu0 %v2292_v7  ;;  %v2357_v7 = vld [vmem:[#allocation5 + $0x368] sm:$0xff] }
 0x402   : > { %2513 = vmatprep.subr.mxu0 %v2291_v8  ;;  %v2356_v8 = vld [vmem:[#allocation5 + $0x360] sm:$0xff] }
 0x403   : > { %2514 = vmatpush2.msra.mxu0 %v2290_v9  ;;  %v2355_v9 = vld [vmem:[#allocation5 + $0x358] sm:$0xff] }
 0x404   : > { %2515 = vmatprep.subr.mxu0 %v2289_v10  ;;  %v2354_v10 = vld [vmem:[#allocation5 + $0x350] sm:$0xff] }
 0x405   : > { %2516 = vmatpush2.msra.mxu0 %v2288_v13  ;;  %v2353_v13 = vld [vmem:[#allocation5 + $0x348] sm:$0xff] }
 0x406   : > { %2517 = vmatprep.subr.mxu0 %v2287_v14  ;;  %v2352_v14 = vld [vmem:[#allocation5 + $0x340] sm:$0xff] }
 0x407   : > { %2518 = vmatpush2.msra.mxu0 %v2286_v5  ;;  %v2350_v5 = vld [vmem:[#allocation5 + $0x330] sm:$0xff] }
 0x408   : > { %2519 = vmatprep.subr.mxu0 %v2285_v17  ;;  %v2348_v17 = vld [vmem:[#allocation5 + $0x320] sm:$0xff] }
 0x409   : > { %2520 = vmatpush2.msra.mxu0 %v2284_v19  ;;  %v2346_v19 = vld [vmem:[#allocation5 + $0x310] sm:$0xff] }
 0x40a   : > { %2521 = vmatprep.subr.mxu0 %v2283_v30 }
 0x40b   : > { %2522 = vmatpush2.msra.mxu0 %v2282_v57 }
 0x40c   : > { %2523 = vmatprep.subr.mxu0 %v2281_v58 }
 0x40d   : > { %2524 = vmatpush2.msra.mxu0 %v2280_v39 }
 0x439   : > { %v4483_v22 = vpop.permute.xlu1 %4482 }
 0x43a   : > { %v4485_v31 = vunpack.i.h.bf16 %v4483_v22  ;;  %v4484_v34 = vunpack.i.l.bf16 %v4483_v22  ;;  %v2344_v22 = vld [vmem:[#allocation5 + $0x300] sm:$0xff] }
 0x43c   : > { %v2188_v43 = vsel %vm550_vm8, %v4484_v34, %v4485_v31 }
 0x43d   : > { %v5363_v37 = vpop.permute.xlu1 %4487  ;;  %v5374_v47 = vmax.f32 %v2160_v27, %v2188_v43  ;;  %v2365_v27 = vld [vmem:[#allocation5 + $0x3a8] sm:$0xff] }
 0x43e   : > { %v4490_v44 = vunpack.i.h.bf16 %v5363_v37  ;;  %v4489_v45 = vunpack.i.l.bf16 %v5363_v37 }
 0x440   : > { %v2187_v50 = vsel %vm550_vm8, %v4490_v44, %v4484_v34  ;;  %v2189_v53 = vsel %vm550_vm8, %v4485_v31, %v4489_v45  ;;  %v2407_v34 = vld [vmem:[#allocation5 + $0x4f8] sm:$0xff] }
 0x441   : > { %v5378_v55 = vmax.f32 %v2159_v28, %v2187_v50  ;;  %v5382_v4 = vmax.f32 %v2161_v26, %v2189_v53  ;;  %v2366_v26 = vld [vmem:[#allocation5 + $0x3b0] sm:$0xff]  ;;  %v2165_v28 = vmax.f32 %v5386_v3, 0.0  ;;  %2603 = vmatprep.subr.mxu0 %v2407_v34  ;;  %v2405_v50 = vld [vmem:[#allocation5 + $0x4e8] sm:$0xff]  ;;  %v2404_v53 = vld [vmem:[#allocation5 + $0x4e0] sm:$0xff] }
 0x442   : > { %2573 = vmatpush2.msra.mxu1 %v2366_v26  ;;  %v2396_v3 = vld [vmem:[#allocation5 + $0x4a0] sm:$0xff] }
 0x443   : > { %2214 = vrot.lane.b32.xlu0 %v5378_v55, %s4608_s17  ;;  %v4496_v23 = vpack.i.bf16 %v5382_v4, %v5374_v47  ;;  %2574 = vmatprep.subr.mxu1 %v2365_v27  ;;  %v2392_v26 = vld [vmem:[#allocation5 + $0x480] sm:$0xff]  ;;  %v2391_v27 = vld [vmem:[#allocation5 + $0x478] sm:$0xff] }
 0x444   : > { %2575 = vmatpush2.msra.mxu1 %v2364_v51  ;;  %v2389_v51 = vld [vmem:[#allocation5 + $0x468] sm:$0xff]  ;;  %v2448_v34 = vld [vmem:[#allocation5 + $0x640] sm:$0x7f] }
 0x445   : > { %4497 = vrot.lane.b32.xlu1 %v4496_v23, %s4608_s17  ;;  %2576 = vmatprep.subr.mxu1 %v2363_v52  ;;  %v2395_v23 = vld [vmem:[#allocation5 + $0x498] sm:$0xff]  ;;  %v2388_v52 = vld [vmem:[#allocation5 + $0x460] sm:$0xff] }
 0x446   : > { %2577 = vmatpush2.msra.mxu1 %v2362_v60  ;;  %v2387_v60 = vld [vmem:[#allocation5 + $0x458] sm:$0xff] }
 0x447   : > { %2578 = vmatprep.subr.mxu1 %v2361_v61  ;;  %v2386_v61 = vld [vmem:[#allocation5 + $0x450] sm:$0xff] }
 0x448   : > { %2579 = vmatpush2.msra.mxu1 %v2360_v62  ;;  %v2385_v62 = vld [vmem:[#allocation5 + $0x448] sm:$0xff] }
 0x449   : > { %2185 = vrot.lane.b32.xlu1 %v2165_v28, %s6019_s26  ;;  %2580 = vmatprep.subr.mxu1 %v2359_v0  ;;  %v2384_v0 = vld [vmem:[#allocation5 + $0x440] sm:$0xff] }
 0x44a   : > { %2581 = vmatpush2.msra.mxu1 %v2358_v1  ;;  %v2383_v1 = vld [vmem:[#allocation5 + $0x438] sm:$0xff] }
 0x44b   : > { %2582 = vmatprep.subr.mxu1 %v2357_v7  ;;  %v2382_v7 = vld [vmem:[#allocation5 + $0x430] sm:$0xff] }
 0x44c   : > { %2583 = vmatpush2.msra.mxu1 %v2356_v8  ;;  %v2381_v8 = vld [vmem:[#allocation5 + $0x428] sm:$0xff] }
 0x44d   : > { %2584 = vmatprep.subr.mxu1 %v2355_v9  ;;  %v2380_v9 = vld [vmem:[#allocation5 + $0x420] sm:$0xff] }
 0x44e   : > { %2585 = vmatpush2.msra.mxu1 %v2354_v10  ;;  %v2379_v10 = vld [vmem:[#allocation5 + $0x418] sm:$0xff] }
 0x44f   : > { %2586 = vmatprep.subr.mxu1 %v2353_v13 }
 0x450   : > { %2587 = vmatpush2.msra.mxu1 %v2352_v14  ;;  %v2378_v14 = vld [vmem:[#allocation5 + $0x410] sm:$0xff] }
 0x451   : > { %2588 = vmatprep.subr.mxu1 %v2351_v16 }
 0x452   : > { %2589 = vmatpush2.msra.mxu1 %v2350_v5 }
 0x453   : > { %2590 = vmatprep.subr.mxu1 %v2349_v63  ;;  %v2377_v63 = vld [vmem:[#allocation5 + $0x408] sm:$0xff] }
 0x454   : > { %2591 = vmatpush2.msra.mxu1 %v2348_v17  ;;  %v2376_v17 = vld [vmem:[#allocation5 + $0x400] sm:$0xff] }
 0x455   : > { %2592 = vmatprep.subr.mxu1 %v2347_v18 }
 0x456   : > { %2593 = vmatpush2.msra.mxu1 %v2346_v19 }
 0x457   : > { %2594 = vmatprep.subr.mxu1 %v2345_v21  ;;  %v2439_v21 = vld [vmem:[#allocation5 + $0x5f8] sm:$0xff] }
 0x458   : > { %2595 = vmatpush2.msra.mxu1 %v2344_v22 }
 0x459   : > { %4071 = vmatprep.subr.msk.mxu1 %vm2454_vm15, %v2449_v40  ;;  %v2446_v40 = vld [vmem:[#allocation5 + $0x630] sm:$0xff] }
 0x45e   : > { %v4493_v30 = vpop.permute.xlu0 %4492 }
 0x45f   : > { %v4495_v32 = vunpack.i.h.bf16 %v4493_v30  ;;  %v4494_v31 = vunpack.i.l.bf16 %v4493_v30 }
 0x461   : > { %v2190_v57 = vsel %vm550_vm8, %v4489_v45, %v4494_v31  ;;  %v2191_v59 = vsel %vm550_vm8, %v4494_v31, %v4495_v32  ;;  %v2437_v31 = vld [vmem:[#allocation5 + $0x5e8] sm:$0xff] }
 0x462   : > { %v5403_v58 = vmax.f32 %v2162_v29, %v2190_v57  ;;  %v5407_v35 = vmax.f32 %v2163_v36, %v2191_v59  ;;  %v2436_v57 = vld [vmem:[#allocation5 + $0x5e0] sm:$0xff]  ;;  %v2447_v59 = vld [vmem:[#allocation5 + $0x638] sm:$0xff] }
 0x464   : > { %v4501_v39 = vpack.i.bf16 %v5407_v35, %v5403_v58 }
 0x466   : > { %4502 = vrot.lane.b32.xlu0 %v4501_v39, %s4608_s17  ;;  %v2435_v39 = vld [vmem:[#allocation5 + $0x5d8] sm:$0xff] }
 0x4b5   : > { %v2215_v29 = vpop.permute.xlu0 %2214 }
 0x4b7   : > { %v5413_v37 = vpop.permute.xlu1 %4497 }
 0x4b8   : > { %v4500_v42 = vunpack.i.h.bf16 %v5413_v37  ;;  %v4499_v24 = vunpack.i.l.bf16 %v5413_v37  ;;  %v2434_v37 = vld [vmem:[#allocation5 + $0x5d0] sm:$0xff] }
 0x4ba   : > { %v2228_v33 = vsel %vm648_vm6, %v2215_v29, %v4499_v24  ;;  %v2229_v36 = vsel %vm648_vm6, %v4499_v24, %v4500_v42  ;;  %v2432_v24 = vld [vmem:[#allocation5 + $0x5c0] sm:$0xff]  ;;  %v2443_v29 = vld [vmem:[#allocation5 + $0x618] sm:$0xff] }
 0x4bb   : > { %v2241_v43 = vmax.f32 %v5378_v55, %v2228_v33  ;;  %v2186_v44 = vpop.permute.xlu1 %2185  ;;  %v2242_v45 = vmax.f32 %v5374_v47, %v2229_v36  ;;  %v2402_v47 = vld [vmem:[#allocation5 + $0x4d0] sm:$0xff]  ;;  %v2401_v55 = vld [vmem:[#allocation5 + $0x4c8] sm:$0xff]  ;;  %v2431_v33 = vld [vmem:[#allocation5 + $0x5b8] sm:$0xff] }
 0x4bc   : > { %v2192_v46 = vsel %vm550_vm8, %v4495_v32, %v2186_v44  ;;  %v5426_v48 = vmax.f32 %v2165_v28, %v2186_v44  ;;  %v2390_v28 = vld [vmem:[#allocation5 + $0x470] sm:$0xff]  ;;  %v2441_v44 = vld [vmem:[#allocation5 + $0x608] sm:$0xff] }
 0x4bd   : > { %v5430_v41 = vmax.f32 %v2164_v38, %v2192_v46  ;;  %2525 = vmatprep.mubr.f32.mxu0 %v2242_v45  ;;  %v2399_v38 = vld [vmem:[#allocation5 + $0x4b8] sm:$0xff]  ;;  %v2438_v32 = vld [vmem:[#allocation5 + $0x5f0] sm:$0xff]  ;;  %v2429_v45 = vld [vmem:[#allocation5 + $0x5a8] sm:$0xff] }
 0x4be   : > { %2226 = vrot.lane.b32.xlu0 %v5426_v48, %s4608_s17  ;;  %2526 = vmatmul.mubr.f32.vlgmr.msra.gmra.mxu0 %v2241_v43  ;;  %v2442_v36 = vld [vmem:[#allocation5 + $0x610] sm:$0xff]  ;;  %v2440_v46 = vld [vmem:[#allocation5 + $0x600] sm:$0xff] }
 0x4bf   : > { %2224 = vrot.lane.b32.xlu1 %v5430_v41, %s4608_s17  ;;  %2604 = vmatpush1.msra.mxu0 %v2406_v49  ;;  %v2430_v43 = vld [vmem:[#allocation5 + $0x5b0] sm:$0xff]  ;;  %v2428_v49 = vld [vmem:[#allocation5 + $0x5a0] sm:$0xff]  ;;  %s4615_s17 = smov 94  }
 0x4c0   : > { %2605 = vmatprep.subr.mxu0 %v2405_v50  ;;  %v2427_v50 = vld [vmem:[#allocation5 + $0x598] sm:$0xff] }
 0x4c1   : > { %2606 = vmatpush1.msra.mxu0 %v2404_v53  ;;  %v2426_v53 = vld [vmem:[#allocation5 + $0x590] sm:$0xff] }
 0x4c2   : > { %2607 = vmatprep.subr.mxu0 %v2403_v54  ;;  %v2425_v54 = vld [vmem:[#allocation5 + $0x588] sm:$0xff] }
 0x4c3   : > { %2608 = vmatpush1.msra.mxu0 %v2402_v47  ;;  %v5449_v47 = vld [vmem:[#allocation3] sm:$0xff] }
 0x4c4   : > { %2609 = vmatprep.subr.mxu0 %v2401_v55  ;;  %v2424_v55 = vld [vmem:[#allocation5 + $0x580] sm:$0xff] }
 0x4c5   : > { %2610 = vmatpush1.msra.mxu0 %v2400_v6  ;;  %v2423_v6 = vld [vmem:[#allocation5 + $0x578] sm:$0xff] }
 0x4c6   : > { %2611 = vmatprep.subr.mxu0 %v2399_v38  ;;  %v2422_v38 = vld [vmem:[#allocation5 + $0x570] sm:$0xff] }
 0x4c7   : > { %2612 = vmatpush1.msra.mxu0 %v2398_v56  ;;  %v2421_v56 = vld [vmem:[#allocation5 + $0x568] sm:$0xff] }
 0x4c8   : > { %2613 = vmatprep.subr.mxu0 %v2397_v2  ;;  %v2420_v2 = vld [vmem:[#allocation5 + $0x560] sm:$0xff] }
 0x4c9   : > { %2614 = vmatpush1.msra.mxu0 %v2396_v3  ;;  %v2419_v3 = vld [vmem:[#allocation5 + $0x558] sm:$0xff] }
 0x4ca   : > { %2615 = vmatprep.subr.mxu0 %v2395_v23  ;;  %v2418_v23 = vld [vmem:[#allocation5 + $0x550] sm:$0xff] }
 0x4cb   : > { %2616 = vmatpush1.msra.mxu0 %v2394_v25  ;;  %v2417_v25 = vld [vmem:[#allocation5 + $0x548] sm:$0xff] }
 0x4cc   : > { %2617 = vmatprep.subr.mxu0 %v2393_v20  ;;  %v2416_v20 = vld [vmem:[#allocation5 + $0x540] sm:$0xff] }
 0x4cd   : > { %2618 = vmatpush1.msra.mxu0 %v2392_v26  ;;  %v2415_v26 = vld [vmem:[#allocation5 + $0x538] sm:$0xff] }
 0x4ce   : > { %2619 = vmatprep.subr.mxu0 %v2391_v27  ;;  %v2414_v27 = vld [vmem:[#allocation5 + $0x530] sm:$0xff] }
 0x4cf   : > { %2620 = vmatpush1.msra.mxu0 %v2390_v28  ;;  %v2413_v28 = vld [vmem:[#allocation5 + $0x528] sm:$0xff] }
 0x4d0   : > { %2621 = vmatprep.subr.mxu0 %v2389_v51  ;;  %v2412_v51 = vld [vmem:[#allocation5 + $0x520] sm:$0xff] }
 0x4d1   : > { %2622 = vmatpush1.msra.mxu0 %v2388_v52  ;;  %v2411_v52 = vld [vmem:[#allocation5 + $0x518] sm:$0xff] }
 0x4d2   : > { %2623 = vmatprep.subr.mxu0 %v2387_v60  ;;  %v2410_v60 = vld [vmem:[#allocation5 + $0x510] sm:$0xff] }
 0x4d3   : > { %2624 = vmatpush1.msra.mxu0 %v2386_v61  ;;  %v2409_v61 = vld [vmem:[#allocation5 + $0x508] sm:$0xff] }
 0x4d4   : > { %2625 = vmatprep.subr.mxu0 %v2385_v62  ;;  %v2408_v62 = vld [vmem:[#allocation5 + $0x500] sm:$0xff] }
 0x4d5   : > { %2626 = vmatpush1.msra.mxu0 %v2384_v0 }
 0x4d6   : > { %2627 = vmatprep.subr.mxu0 %v2383_v1 }
 0x4d7   : > { %2628 = vmatpush1.msra.mxu0 %v2382_v7 }
 0x4d8   : > { %v5436_v13 = vpop.permute.xlu0 %4502  ;;  %2629 = vmatprep.subr.mxu0 %v2381_v8 }
 0x4d9   : > { %v4505_v16 = vunpack.i.h.bf16 %v5436_v13  ;;  %v4504_v5 = vunpack.i.l.bf16 %v5436_v13  ;;  %2630 = vmatpush1.msra.mxu0 %v2380_v9 }
 0x4da   : > { %2631 = vmatprep.subr.mxu0 %v2379_v10 }
 0x4db   : > { %v2230_v18 = vsel %vm648_vm6, %v4500_v42, %v4504_v5  ;;  %v2231_v19 = vsel %vm648_vm6, %v4504_v5, %v4505_v16  ;;  %2632 = vmatpush1.msra.mxu0 %v2378_v14  ;;  %v2444_v42 = vld [vmem:[#allocation5 + $0x620] sm:$0xff] }
 0x4dc   : > { %v2243_v22 = vmax.f32 %v5382_v4, %v2230_v18  ;;  %v2244_v30 = vmax.f32 %v5403_v58, %v2231_v19  ;;  %2633 = vmatprep.subr.mxu0 %v2377_v63  ;;  %v2445_v4 = vld [vmem:[#allocation5 + $0x628] sm:$0xff] }
 0x4dd   : > { %2634 = vmatpush1.msra.mxu0 %v2376_v17  ;;  %v2433_v58 = vld [vmem:[#allocation5 + $0x5c8] sm:$0xff] }
 0x4de   : > { %2596 = vmatprep.mubr.f32.mxu1 %v2244_v30  ;;  %2635 = vmatprep.subr.mxu0 %v2439_v21 }
 0x4df   : > { %2597 = vmatmul.mubr.f32.vlgmr.msra.gmra.mxu1 %v2243_v22  ;;  %2636 = vmatpush2.msra.mxu0 %v2438_v32 }
 0x4e0   : > { %2637 = vmatprep.subr.mxu0 %v2437_v31  ;;  %4072 = vmatpush1.msk.msra.mxu1 %vm2454_vm15, %v2448_v34  ;;  %v2845_v31 = vld [vmem:[%s6004_s6] sm:$0xff] }
 0x4e1   : > { %2638 = vmatpush2.msra.mxu0 %v2436_v57  ;;  %2698 = vmatprep.subr.mxu1 %v2447_v59 }
 0x4e2   : > { %2639 = vmatprep.subr.mxu0 %v2435_v39  ;;  %2699 = vmatpush1.msra.mxu1 %v2446_v40 }
 0x4e3   : > { %2640 = vmatpush2.msra.mxu0 %v2434_v37  ;;  %2700 = vmatprep.subr.mxu1 %v2445_v4 }
 0x4e4   : > { %2641 = vmatprep.subr.mxu0 %v2433_v58  ;;  %2701 = vmatpush1.msra.mxu1 %v2444_v42 }
 0x4e5   : > { %2642 = vmatpush2.msra.mxu0 %v2432_v24  ;;  %2702 = vmatprep.subr.mxu1 %v2443_v29 }
 0x4e6   : > { %2643 = vmatprep.subr.mxu0 %v2431_v33  ;;  %2703 = vmatpush1.msra.mxu1 %v2442_v36 }
 0x4e7   : > { %2644 = vmatpush2.msra.mxu0 %v2430_v43  ;;  %2704 = vmatprep.subr.mxu1 %v2441_v44 }
 0x4e8   : > { %2645 = vmatprep.subr.mxu0 %v2429_v45  ;;  %2705 = vmatpush1.msra.mxu1 %v2440_v46 }
 0x4e9   : > { %2646 = vmatpush2.msra.mxu0 %v2428_v49  ;;  %2738 = vmatprep.mubr.f32.mxu1 %v5449_v47 }
 0x4ea   : > { %2647 = vmatprep.subr.mxu0 %v2427_v50 }
 0x4eb   : > { %2648 = vmatpush2.msra.mxu0 %v2426_v53 }
 0x4ec   : > { %2649 = vmatprep.subr.mxu0 %v2425_v54 }
 0x4ed   : > { %2650 = vmatpush2.msra.mxu0 %v2424_v55 }
 0x4ee   : > { %2651 = vmatprep.subr.mxu0 %v2423_v6 }
 0x4ef   : > { %2652 = vmatpush2.msra.mxu0 %v2422_v38 }
 0x4f0   : > { %2653 = vmatprep.subr.mxu0 %v2421_v56 }
 0x4f1   : > { %2654 = vmatpush2.msra.mxu0 %v2420_v2 }
 0x4f2   : > { %2655 = vmatprep.subr.mxu0 %v2419_v3 }
 0x4f3   : > { %2656 = vmatpush2.msra.mxu0 %v2418_v23 }
 0x4f4   : > { %2657 = vmatprep.subr.mxu0 %v2417_v25 }
 0x4f5   : > { %2658 = vmatpush2.msra.mxu0 %v2416_v20 }
 0x4f6   : > { %2659 = vmatprep.subr.mxu0 %v2415_v26 }
 0x4f7   : > { %2660 = vmatpush2.msra.mxu0 %v2414_v27 }
 0x4f8   : > { %2661 = vmatprep.subr.mxu0 %v2413_v28 }
 0x4f9   : > { %2662 = vmatpush2.msra.mxu0 %v2412_v51  ;;  %v2826_v51 = vld [vmem:[%s6003_s5] sm:$0xff] }
 0x4fa   : > { %2663 = vmatprep.subr.mxu0 %v2411_v52  ;;  %v2929_v52 = vld [vmem:[%s6010_s12] sm:$0x3] }
 0x4fb   : > { %2664 = vmatpush2.msra.mxu0 %v2410_v60 }
 0x4fc   : > { %2665 = vmatprep.subr.mxu0 %v2409_v61 }
 0x4fd   : > { %2666 = vmatpush2.msra.mxu0 %v2408_v62 }
 0x4fe   : > { %4273 = vmatprep.subr.mxu0 %v5449_v47 }
 0x530   : > { %v2227_v0 = vpop.permute.xlu0 %2226 }
 0x531   : > { %v2247_v1 = vmax.f32 %v5426_v48, %v2227_v0  ;;  %v2225_v7 = vpop.permute.xlu1 %2224 }
 0x532   : > { %v2232_v8 = vsel %vm648_vm6, %v4505_v16, %v2225_v7  ;;  %v2233_v9 = vsel %vm648_vm6, %v2225_v7, %v2227_v0  ;;  %vm2772_vm6 = vcmask 916480   ;;  %v2934_v0 = vrot.slane %v2929_v52, %v1306_v12 }
 0x533   : > { %v2245_v10 = vmax.f32 %v5407_v35, %v2232_v8  ;;  %v2246_v14 = vmax.f32 %v5430_v41, %v2233_v9  ;;  %4073 = vmatmul.mubr.msk.f32.vlgmr.msra.gmra.mxu1 %vm2450_vm0, %v2247_v1  ;;  %v2938_v9 = vrot.slane %v2929_v52, %v1310_v15  ;;  %v3083_v15 = vld [vmem:[%s6006_s8] sm:$0xff] }
 0x534   : > { %2918 = vmatprep.mubr.f32.mxu1 %v5449_v47 }
 0x535   : > { %2667 = vmatprep.mubr.f32.mxu0 %v2246_v14 }
 0x536   : > { %2668 = vmatmul.mubr.f32.vlgmr.msra.gmra.mxu0 %v2245_v10 }
 0x537   : > { %4287 = vmatprep.mubr.msk.f32.mxu0 %vm4613_vm10, %v5449_v47 }
 0x57e   : > { %v2527_v48 = vpop.f32.mrf.mxu0 }
 0x580   : > { %v2529_v63 = vpop.f32.mrf.mxu0 }
 0x59f   : > { %v2598_v5 = vpop.f32.mrf.mxu1 }
 0x5a0   : > { %v2599_v17 = vadd.f32 %v2598_v5, %v2527_v48 }
 0x5a1   : > { %v2600_v13 = vpop.f32.mrf.mxu1 }
 0x5a2   : > { %v2601_v19 = vadd.f32 %v2600_v13, %v2529_v63 }
 0x5f3   : > { %v2740_v16 = vpop.f32.mrf.mxu1 }
 0x5f5   : > { %v2742_v30 = vpop.f32.mrf.mxu1 }
 0x5f6   : > { %v2669_v18 = vpop.f32.mrf.mxu0 }
 0x5f7   : > { %v2670_v21 = vadd.f32 %v2669_v18, %v2599_v17 }
 0x5f8   : > { %v2671_v35 = vpop.f32.mrf.mxu0 }
 0x5f9   : > { %v5463_v22 = vadd.f32 %v2740_v16, %v2670_v21  ;;  %v2672_v41 = vadd.f32 %v2671_v35, %v2601_v19 }
 0x5fb   : > { %v2743_v32 = vadd.f32 %v2742_v30, %v2672_v41  ;;  %2817 = vrot.lane.b32.xlu1 %v5463_v22, %s4615_s17 }
 0x5fd   : > { %2819 = vrot.lane.b32.xlu0 %v2743_v32, %s4615_s17  ;;  %2747 = vst.msk [vmem:[#allocation4 + $0x8] sm:$0xff] %vm2746_vm1, %v2743_v32 }
 0x5ff   : > { %2807 = vrot.lane.b32.xlu1 %v5463_v22, %s4616_s23 }
 0x601   : > { %2809 = vrot.lane.b32.xlu0 %v2743_v32, %s4616_s23 }
 0x603   : > { %2798 = vrot.lane.b32.xlu1 %v5463_v22, %s4606_s29 }
 0x604   : > { %v2828_v28 = vld [vmem:[#allocation4 + $0x8] sm:$0xff] }
 0x605   : > { %2800 = vrot.lane.b32.xlu0 %v2743_v32, %s4606_s29 }
 0x607   : > { %2788 = vrot.lane.b32.xlu1 %v5463_v22, %s4617_s18 }
 0x609   : > { %2790 = vrot.lane.b32.xlu0 %v2743_v32, %s4617_s18 }
 0x60b   : > { %2778 = vrot.lane.b32.xlu1 %v5463_v22, %s4618_s16 }
 0x60d   : > { %2780 = vrot.lane.b32.xlu0 %v2743_v32, %s4618_s16 }
 0x60f   : > { %2768 = vrot.lane.b32.xlu1 %v5463_v22, %s4619_s20 }
 0x611   : > { %2770 = vrot.lane.b32.xlu0 %v2743_v32, %s4619_s20 }
 0x613   : > { %2759 = vrot.lane.b32.xlu1 %v5463_v22, %s4609_s25 }
 0x615   : > { %2761 = vrot.lane.b32.xlu0 %v2743_v32, %s4609_s25 }
 0x617   : > { %2750 = vrot.lane.b32.xlu1 %v5463_v22, %s6019_s26 }
 0x619   : > { %2752 = vrot.lane.b32.xlu0 %v2743_v32, %s6019_s26 }
 0x61b   : > { %2848 = vperm.xlu1 %4479, %v2845_v31  }
 0x66d   : > { %v2818_v34 = vpop.permute.xlu1 %2817 }
 0x66f   : > { %v2820_v57 = vpop.permute.xlu0 %2819 }
 0x670   : > { %2825 = vst.msk [vmem:[#allocation4 + $0x1c8] sm:$0xff] %vm2746_vm1, %v2820_v57  ;;  %v2821_v58 = vsel %vm2746_vm1, %v2818_v34, %v2820_v57 }
 0x671   : > { %v2808_v59 = vpop.permute.xlu1 %2807 }
 0x673   : > { %v2810_v39 = vpop.permute.xlu0 %2809 }
 0x674   : > { %2816 = vst.msk [vmem:[#allocation4 + $0x190] sm:$0xff] %vm2746_vm1, %v2810_v39  ;;  %v2812_v33 = vsel %vm2811_vm2, %v2808_v59, %v2810_v39 }
 0x675   : > { %v2799_v40 = vpop.permute.xlu1 %2798 }
 0x677   : > { %v2801_v37 = vpop.permute.xlu0 %2800  ;;  %v2844_v4 = vld [vmem:[#allocation4 + $0x1c8] sm:$0xff] }
 0x678   : > { %2806 = vst.msk [vmem:[#allocation4 + $0x158] sm:$0xff] %vm2746_vm1, %v2801_v37  ;;  %2868 = vmatprep.subr.mxu1 %v2844_v4  ;;  %v2802_v44 = vsel %vm746_vm4, %v2799_v40, %v2801_v37 }
 0x679   : > { %2869 = vmatpush1.msra.mxu1 %v2821_v58  ;;  %v2789_v42 = vpop.permute.xlu1 %2788 }
 0x67b   : > { %v2791_v24 = vpop.permute.xlu0 %2790  ;;  %v2842_v29 = vld [vmem:[#allocation4 + $0x190] sm:$0xff] }
 0x67c   : > { %2797 = vst.msk [vmem:[#allocation4 + $0x120] sm:$0xff] %vm2746_vm1, %v2791_v24  ;;  %2870 = vmatprep.subr.mxu1 %v2842_v29  ;;  %v2793_v50 = vsel %vm2792_vm3, %v2789_v42, %v2791_v24 }
 0x67d   : > { %2871 = vmatpush1.msra.mxu1 %v2812_v33  ;;  %v2779_v45 = vpop.permute.xlu1 %2778 }
 0x67f   : > { %v2781_v36 = vpop.permute.xlu0 %2780  ;;  %v2840_v43 = vld [vmem:[#allocation4 + $0x158] sm:$0xff] }
 0x680   : > { %2787 = vst.msk [vmem:[#allocation4 + $0xe8] sm:$0xff] %vm2746_vm1, %v2781_v36  ;;  %2872 = vmatprep.subr.mxu1 %v2840_v43  ;;  %v2783_v6 = vsel %vm2782_vm5, %v2779_v45, %v2781_v36 }
 0x681   : > { %2873 = vmatpush1.msra.mxu1 %v2802_v44  ;;  %v2769_v53 = vpop.permute.xlu1 %2768 }
 0x683   : > { %v2771_v46 = vpop.permute.xlu0 %2770  ;;  %v2838_v49 = vld [vmem:[#allocation4 + $0x120] sm:$0xff] }
 0x684   : > { %2777 = vst.msk [vmem:[#allocation4 + $0xb0] sm:$0xff] %vm2746_vm1, %v2771_v46  ;;  %2874 = vmatprep.subr.mxu1 %v2838_v49  ;;  %v2773_v2 = vsel %vm2772_vm6, %v2769_v53, %v2771_v46 }
 0x685   : > { %2875 = vmatpush1.msra.mxu1 %v2793_v50  ;;  %v2760_v3 = vpop.permute.xlu1 %2759 }
 0x687   : > { %v2762_v54 = vpop.permute.xlu0 %2761  ;;  %v2836_v55 = vld [vmem:[#allocation4 + $0xe8] sm:$0xff] }
 0x688   : > { %2767 = vst.msk [vmem:[#allocation4 + $0x78] sm:$0xff] %vm2746_vm1, %v2762_v54  ;;  %2876 = vmatprep.subr.mxu1 %v2836_v55  ;;  %v2763_v25 = vsel %vm599_vm7, %v2760_v3, %v2762_v54 }
 0x689   : > { %2877 = vmatpush1.msra.mxu1 %v2783_v6  ;;  %v2751_v20 = vpop.permute.xlu1 %2750  ;;  %v3064_v6 = vld [vmem:[%s6005_s7] sm:$0xff] }
 0x68b   : > { %v2753_v38 = vpop.permute.xlu0 %2752  ;;  %v2834_v56 = vld [vmem:[#allocation4 + $0xb0] sm:$0xff] }
 0x68c   : > { %2758 = vst.msk [vmem:[#allocation4 + $0x40] sm:$0xff] %vm2746_vm1, %v2753_v38  ;;  %2878 = vmatprep.subr.mxu1 %v2834_v56  ;;  %v2754_v27 = vsel %vm550_vm8, %v2751_v20, %v2753_v38  ;;  %v3202_v38 = vld [vmem:[%s6012_s14 + $0x78] sm:$0xff]  ;;  %v3201_v56 = vld [vmem:[%s6012_s14 + $0x70] sm:$0xff]  ;;  %v3199_v20 = vld [vmem:[%s6012_s14 + $0x60] sm:$0xff] }
 0x68d   : > { %2879 = vmatpush1.msra.mxu1 %v2773_v2  ;;  %v3200_v2 = vld [vmem:[%s6012_s14 + $0x68] sm:$0xff] }
 0x68f   : > { %v2832_v23 = vld [vmem:[#allocation4 + $0x78] sm:$0xff] }
 0x690   : > { %2880 = vmatprep.subr.mxu1 %v2832_v23 }
 0x691   : > { %2881 = vmatpush1.msra.mxu1 %v2763_v25 }
 0x693   : > { %v2830_v26 = vld [vmem:[#allocation4 + $0x40] sm:$0xff] }
 0x694   : > { %2882 = vmatprep.subr.mxu1 %v2830_v26 }
 0x695   : > { %2883 = vmatpush1.msra.mxu1 %v2754_v27 }
 0x696   : > { %2884 = vmatprep.subr.mxu1 %v2828_v28  ;;  %v2849_v60 = vpop.permute.xlu1 %2848 }
 0x697   : > { %2885 = vmatpush1.msra.mxu1 %v5463_v22 }
 0x698   : > { %4074 = vmatmul.mubr.msk.f32.vlgmr.msra.gmra.mxu1 %vm999_vm9, %v2826_v51  ;;  %v3198_v51 = vld [vmem:[%s6012_s14 + $0x58] sm:$0xff] }
 0x699   : > { %3156 = vmatprep.mubr.f32.mxu1 %v5449_v47 }
 0x758   : > { %v2920_v61 = vpop.f32.mrf.mxu1 }
 0x759   : > { %v2921_v62 = vadd.f32 %v2920_v61, %v2849_v60  ;;  %v3196_v61 = vld [vmem:[%s6012_s14 + $0x48] sm:$0xff] }
 0x75a   : > { %v2922_v1 = vpop.f32.mrf.mxu1 }
 0x75b   : > { %v2925_v7 = vmax.f32 %v2921_v62, 0.0  ;;  %v2923_v8 = vadd.f32 %v2922_v1, %v2849_v60  ;;  %v3197_v60 = vld [vmem:[%s6012_s14 + $0x50] sm:$0xff]  ;;  %v3195_v62 = vld [vmem:[%s6012_s14 + $0x40] sm:$0xff] }
 0x75c   : > { %v3193_v1 = vld [vmem:[%s6012_s14 + $0x30] sm:$0xff] }
 0x75d   : > { %v2941_v10 = vmul.f32 %v2934_v0, %v2925_v7  ;;  %v2926_v14 = vmax.f32 %v2923_v8, 0.0  ;;  %v3194_v0 = vld [vmem:[%s6012_s14 + $0x38] sm:$0xff]  ;;  %v3192_v7 = vld [vmem:[%s6012_s14 + $0x28] sm:$0xff]  ;;  %v3191_v8 = vld [vmem:[%s6012_s14 + $0x20] sm:$0xff] }
 0x75f   : > { %v2942_v48 = vmul.f32 %v2938_v9, %v2926_v14  ;;  %2945 = vrot.lane.b32.xlu0 %v2941_v10, %s4620_s30  ;;  %v3190_v9 = vld [vmem:[%s6012_s14 + $0x18] sm:$0xff]  ;;  %v3189_v10 = vld [vmem:[%s6012_s14 + $0x10] sm:$0xff]  ;;  %v3188_v14 = vld [vmem:[%s6012_s14 + $0x8] sm:$0xff] }
 0x761   : > { %2947 = vrot.lane.b32.xlu1 %v2942_v48, %s4620_s30  ;;  %v3187_v48 = vld [vmem:[%s6012_s14] sm:$0xff] }
 0x7d1   : > { %v2946_v5 = vpop.permute.xlu0 %2945 }
 0x7d2   : > { %2954 = vst.msk [vmem:[#allocation3] sm:$0xff] %vm2953_vm11, %v2946_v5 }
 0x7d3   : > { %v2948_v63 = vpop.permute.xlu1 %2947 }
 0x7d4   : > { %v2950_v13 = vsel %vm2949_vm12, %v2946_v5, %v2948_v63  ;;  %v3212_v5 = vld [vmem:[%s6012_s14 + $0xc8] sm:$0x1f]  ;;  %v3211_v63 = vld [vmem:[%s6012_s14 + $0xc0] sm:$0xff] }
 0x7d5   : > { %2955 = vst.msk [vmem:[#allocation3 + $0x8] sm:$0xff] %vm2782_vm5, %v2950_v13  ;;  %v3210_v13 = vld [vmem:[%s6012_s14 + $0xb8] sm:$0xff] }
 0x7d9   : > { %v5523_v12 = vld [vmem:[#allocation3] sm:$0xff] }
 0x7da   : > { %3055 = vrot.lane.b32.xlu0 %v5523_v12, %s4615_s17 }
 0x7dc   : > { %v2957_v11 = vld [vmem:[#allocation3 + $0x8] sm:$0xff] }
 0x7dd   : > { %2959 = vst.msk [vmem:[#allocation4 + $0x8] sm:$0xff] %vm2746_vm1, %v2957_v11  ;;  %3057 = vrot.lane.b32.xlu1 %v2957_v11, %s4615_s17  ;;  %s4621_s17 = smov [#allocation8]  }
 0x7de   : > { %3042 = vrot.lane.b32.xlu0 %v5523_v12, %s4616_s23 }
 0x7e1   : > { %3044 = vrot.lane.b32.xlu1 %v2957_v11, %s4616_s23  ;;  %s4143_s23 = sshll.u32 %s4723_s22, 4  ;;  %s4538_s22 = sshll.u32 %s4621_s17, 4  ;;  %s4539_s22 = int_to_ptr.vmem [resolvable:$false] %s4538_s22 }
 0x7e2   : > { %3029 = vrot.lane.b32.xlu0 %v5523_v12, %s4606_s29  ;;  %s3986_s27 = scalar_lea.hbm %s6013_s15, %s4143_s23 }
 0x7e4   : > { %v3066_v55 = vld [vmem:[#allocation4 + $0x8] sm:$0xff] }
 0x7e5   : > { %3031 = vrot.lane.b32.xlu1 %v2957_v11, %s4606_s29  ;;  %s6031_s29 = smov 127  }
 0x7e6   : > { %3016 = vrot.lane.b32.xlu0 %v5523_v12, %s4617_s18 }
 0x7e9   : > { %3018 = vrot.lane.b32.xlu1 %v2957_v11, %s4617_s18 }
 0x7ea   : > { %3003 = vrot.lane.b32.xlu0 %v5523_v12, %s4618_s16 }
 0x7ed   : > { %3005 = vrot.lane.b32.xlu1 %v2957_v11, %s4618_s16 }
 0x7ee   : > { %2990 = vrot.lane.b32.xlu0 %v5523_v12, %s4619_s20 }
 0x7f1   : > { %2992 = vrot.lane.b32.xlu1 %v2957_v11, %s4619_s20 }
 0x7f2   : > { %2977 = vrot.lane.b32.xlu0 %v5523_v12, %s4609_s25 }
 0x7f5   : > { %2979 = vrot.lane.b32.xlu1 %v2957_v11, %s4609_s25  ;;  %s500_s25 = sand.u32 1, %s4590_s19  }
 0x7f6   : > { %2964 = vrot.lane.b32.xlu0 %v5523_v12, %s6031_s29  ;;  %s3976_s30 = scalar_lea.sflag [#allocation7], %s500_s25 }
 0x7f9   : > { %2966 = vrot.lane.b32.xlu1 %v2957_v11, %s6031_s29  ;;  %v3208_v11 = vld [vmem:[%s6012_s14 + $0xa8] sm:$0xff] }
 0x7fa   : > { %3086 = vperm.xlu0 %4480, %v3083_v15   ;;  %v3207_v15 = vld [vmem:[%s6012_s14 + $0xa0] sm:$0xff] }
 0x84c   : > { %v3056_v17 = vpop.permute.xlu0 %3055 }
 0x84f   : > { %v3058_v16 = vpop.permute.xlu1 %3057 }
 0x850   : > { %v3059_v18 = vsel %vm2746_vm1, %v3056_v17, %v3058_v16  ;;  %3063 = vst.msk [vmem:[#allocation4 + $0x1c8] sm:$0xff] %vm2746_vm1, %v3058_v16  ;;  %v3043_v19 = vpop.permute.xlu0 %3042  ;;  %v3206_v17 = vld [vmem:[%s6012_s14 + $0x98] sm:$0xff]  ;;  %v3205_v16 = vld [vmem:[%s6012_s14 + $0x90] sm:$0xff] }
 0x853   : > { %v3045_v21 = vpop.permute.xlu1 %3044 }
 0x854   : > { %v3046_v35 = vsel %vm2811_vm2, %v3043_v19, %v3045_v21  ;;  %3050 = vst.msk [vmem:[#allocation4 + $0x190] sm:$0xff] %vm2746_vm1, %v3045_v21  ;;  %v3030_v22 = vpop.permute.xlu0 %3029  ;;  %v3203_v19 = vld [vmem:[%s6012_s14 + $0x80] sm:$0xff]  ;;  %v3298_v21 = vld [vmem:[%s6007_s9 + $0x30] sm:$0x1] }
 0x857   : > { %v3032_v41 = vpop.permute.xlu1 %3031  ;;  %v3082_v30 = vld [vmem:[#allocation4 + $0x1c8] sm:$0xff] }
 0x858   : > { %v3033_v32 = vsel %vm746_vm4, %v3030_v22, %v3032_v41  ;;  %3037 = vst.msk [vmem:[#allocation4 + $0x158] sm:$0xff] %vm2746_vm1, %v3032_v41  ;;  %v3017_v31 = vpop.permute.xlu0 %3016  ;;  %3106 = vmatprep.subr.mxu1 %v3082_v30  ;;  %vm3217_vm4 = vcmask 1044480   ;;  %v3296_v22 = vld [vmem:[%s6007_s9 + $0x20] sm:$0xff]  ;;  %v3295_v41 = vld [vmem:[%s6007_s9 + $0x18] sm:$0xff] }
 0x859   : > { %3107 = vmatpush1.msra.mxu1 %v3059_v18  ;;  %v3204_v18 = vld [vmem:[%s6012_s14 + $0x88] sm:$0xff] }
 0x85b   : > { %v3019_v34 = vpop.permute.xlu1 %3018  ;;  %v3080_v57 = vld [vmem:[#allocation4 + $0x190] sm:$0xff] }
 0x85c   : > { %v3020_v59 = vsel %vm2792_vm3, %v3017_v31, %v3019_v34  ;;  %3024 = vst.msk [vmem:[#allocation4 + $0x120] sm:$0xff] %vm2746_vm1, %v3019_v34  ;;  %v3004_v39 = vpop.permute.xlu0 %3003  ;;  %3108 = vmatprep.subr.mxu1 %v3080_v57  ;;  %v3294_v31 = vld [vmem:[%s6007_s9 + $0x10] sm:$0xff] }
 0x85d   : > { %3109 = vmatpush1.msra.mxu1 %v3046_v35  ;;  %v3297_v35 = vld [vmem:[%s6007_s9 + $0x28] sm:$0xff] }
 0x85f   : > { %v3006_v40 = vpop.permute.xlu1 %3005  ;;  %v3078_v37 = vld [vmem:[#allocation4 + $0x158] sm:$0xff] }
 0x860   : > { %v3007_v4 = vsel %vm2782_vm5, %v3004_v39, %v3006_v40  ;;  %3011 = vst.msk [vmem:[#allocation4 + $0xe8] sm:$0xff] %vm2746_vm1, %v3006_v40  ;;  %v2991_v58 = vpop.permute.xlu0 %2990  ;;  %3110 = vmatprep.subr.mxu1 %v3078_v37  ;;  %v3293_v39 = vld [vmem:[%s6007_s9 + $0x8] sm:$0xff]  ;;  %v3292_v40 = vld [vmem:[%s6007_s9] sm:$0xff] }
 0x861   : > { %3111 = vmatpush1.msra.mxu1 %v3033_v32 }
 0x863   : > { %v2993_v42 = vpop.permute.xlu1 %2992  ;;  %v3076_v24 = vld [vmem:[#allocation4 + $0x120] sm:$0xff] }
 0x864   : > { %v2994_v29 = vsel %vm2772_vm6, %v2991_v58, %v2993_v42  ;;  %2998 = vst.msk [vmem:[#allocation4 + $0xb0] sm:$0xff] %vm2746_vm1, %v2993_v42  ;;  %3112 = vmatprep.subr.mxu1 %v3076_v24  ;;  %v2978_v33 = vpop.permute.xlu0 %2977 }
 0x865   : > { %3113 = vmatpush1.msra.mxu1 %v3020_v59 }
 0x867   : > { %v2980_v36 = vpop.permute.xlu1 %2979  ;;  %v3074_v43 = vld [vmem:[#allocation4 + $0xe8] sm:$0xff] }
 0x868   : > { %v2981_v44 = vsel %vm599_vm7, %v2978_v33, %v2980_v36  ;;  %2985 = vst.msk [vmem:[#allocation4 + $0x78] sm:$0xff] %vm2746_vm1, %v2980_v36  ;;  %3114 = vmatprep.subr.mxu1 %v3074_v43  ;;  %v2965_v45 = vpop.permute.xlu0 %2964  ;;  %vm3303_vm7 = vcmask 1040384   ;;  %v4103_v33 = vld [vmem:[%s6007_s9 + $0xd0] sm:$0xff]  ;;  %v4102_v36 = vld [vmem:[%s6007_s9 + $0xc8] sm:$0xff]  ;;  %v4101_v43 = vld [vmem:[%s6007_s9 + $0xc0] sm:$0xff] }
 0x869   : > { %3115 = vmatpush1.msra.mxu1 %v3007_v4  ;;  %4274 = vmatpush3.msk.msra.mxu0 %vm3303_vm7, %v3298_v21  ;;  %v4109_v21 = vld [vmem:[%s6007_s9 + $0xf0] sm:$0xff] }
 0x86a   : > { %4275 = vmatprep.subr.mxu0 %v5449_v47 }
 0x86b   : > { %v2967_v46 = vpop.permute.xlu1 %2966  ;;  %v3072_v49 = vld [vmem:[#allocation4 + $0xb0] sm:$0xff]  ;;  %4276 = vmatpush3.msra.mxu0 %v3297_v35  ;;  %v4108_v35 = vld [vmem:[%s6007_s9 + $0xe8] sm:$0xff] }
 0x86c   : > { %v2968_v50 = vsel %vm550_vm8, %v2965_v45, %v2967_v46  ;;  %2972 = vst.msk [vmem:[#allocation4 + $0x40] sm:$0xff] %vm2746_vm1, %v2967_v46  ;;  %3116 = vmatprep.subr.mxu1 %v3072_v49  ;;  %4277 = vmatprep.subr.mxu0 %v5449_v47  ;;  %v4099_v45 = vld [vmem:[%s6007_s9 + $0xb0] sm:$0xff]  ;;  %v4098_v46 = vld [vmem:[%s6007_s9 + $0xa8] sm:$0xff] }
 0x86d   : > { %3117 = vmatpush1.msra.mxu1 %v2994_v29  ;;  %4278 = vmatpush3.msra.mxu0 %v3296_v22  ;;  %v4104_v29 = vld [vmem:[%s6007_s9 + $0xd8] sm:$0x1]  ;;  %v4086_v49 = vld [vmem:[%s6007_s9 + $0x68] sm:$0x1]  ;;  %v4107_v22 = vld [vmem:[%s6007_s9 + $0xe0] sm:$0xff] }
 0x86e   : > { %4279 = vmatprep.subr.mxu0 %v5449_v47 }
 0x86f   : > { %v3070_v53 = vld [vmem:[#allocation4 + $0x78] sm:$0xff]  ;;  %4280 = vmatpush3.msra.mxu0 %v3295_v41 }
 0x870   : > { %3118 = vmatprep.subr.mxu1 %v3070_v53  ;;  %4281 = vmatprep.subr.mxu0 %v5449_v47  ;;  %v4085_v53 = vld [vmem:[%s6007_s9 + $0x60] sm:$0xff] }
 0x871   : > { %3119 = vmatpush1.msra.mxu1 %v2981_v44  ;;  %4282 = vmatpush3.msra.mxu0 %v3294_v31  ;;  %v4100_v44 = vld [vmem:[%s6007_s9 + $0xb8] sm:$0xff]  ;;  %v4129_v31 = vld [vmem:[%s6007_s9 + $0x170] sm:$0xff] }
 0x872   : > { %4283 = vmatprep.subr.mxu0 %v5449_v47 }
 0x873   : > { %v3068_v54 = vld [vmem:[#allocation4 + $0x40] sm:$0xff]  ;;  %4284 = vmatpush3.msra.mxu0 %v3293_v39 }
 0x874   : > { %3120 = vmatprep.subr.mxu1 %v3068_v54  ;;  %4285 = vmatprep.subr.mxu0 %v5449_v47  ;;  %v4125_v39 = vld [vmem:[%s6007_s9 + $0x150] sm:$0xff] }
 0x875   : > { %3121 = vmatpush1.msra.mxu1 %v2968_v50  ;;  %v3087_v3 = vpop.permute.xlu0 %3086  ;;  %4286 = vmatpush3.msra.mxu0 %v3292_v40 }
 0x876   : > { %3122 = vmatprep.subr.mxu1 %v3066_v55  ;;  %4290 = vmatprep.subr.mxu0 %v5449_v47  ;;  %v4122_v55 = vld [vmem:[%s6007_s9 + $0x148] sm:$0x1] }
 0x877   : > { %3123 = vmatpush1.msra.mxu1 %v5523_v12  ;;  %v3209_v12 = vld [vmem:[%s6012_s14 + $0xb0] sm:$0xff] }
 0x878   : > { %4075 = vmatmul.mubr.msk.f32.vlgmr.msra.gmra.mxu1 %vm999_vm9, %v3064_v6  ;;  %3221 = vmatprep.subr.mxu1 %v5449_v47  ;;  %vm3299_vm9 = vcmask 400384  }
 0x879   : > { %3222 = vmatpush1.msra.mxu1 %v3202_v38  ;;  %v4084_v38 = vld [vmem:[%s6007_s9 + $0x58] sm:$0xff] }
 0x87a   : > { %3223 = vmatprep.subr.mxu1 %v5449_v47 }
 0x87b   : > { %3224 = vmatpush1.msra.mxu1 %v3201_v56  ;;  %v4121_v56 = vld [vmem:[%s6007_s9 + $0x140] sm:$0xff] }
 0x87c   : > { %3225 = vmatprep.subr.mxu1 %v5449_v47 }
 0x87d   : > { %3226 = vmatpush1.msra.mxu1 %v3200_v2  ;;  %v4083_v2 = vld [vmem:[%s6007_s9 + $0x50] sm:$0xff] }
 0x87e   : > { %3227 = vmatprep.subr.mxu1 %v5449_v47 }
 0x87f   : > { %3228 = vmatpush1.msra.mxu1 %v3199_v20  ;;  %v4081_v20 = vld [vmem:[%s6007_s9 + $0x40] sm:$0xff] }
 0x880   : > { %3229 = vmatprep.subr.mxu1 %v5449_v47 }
 0x881   : > { %3230 = vmatpush1.msra.mxu1 %v3198_v51 }
 0x882   : > { %3231 = vmatprep.subr.mxu1 %v5449_v47 }
 0x883   : > { %3232 = vmatpush1.msra.mxu1 %v3197_v60  ;;  %v4116_v60 = vld [vmem:[%s6007_s9 + $0x118] sm:$0xff] }
 0x884   : > { %3233 = vmatprep.subr.mxu1 %v5449_v47 }
 0x885   : > { %3234 = vmatpush1.msra.mxu1 %v3196_v61 }
 0x886   : > { %3235 = vmatprep.subr.mxu1 %v5449_v47 }
 0x887   : > { %3236 = vmatpush1.msra.mxu1 %v3195_v62  ;;  %v4094_v62 = vld [vmem:[%s6007_s9 + $0x98] sm:$0xff] }
 0x888   : > { %3237 = vmatprep.subr.mxu1 %v5449_v47 }
 0x889   : > { %3238 = vmatpush1.msra.mxu1 %v3194_v0  ;;  %v4140_v0 = vld [vmem:[%s6007_s9 + $0x1b8] sm:$0x1] }
 0x88a   : > { %3239 = vmatprep.subr.mxu1 %v5449_v47 }
 0x88b   : > { %3240 = vmatpush1.msra.mxu1 %v3193_v1  ;;  %v4093_v1 = vld [vmem:[%s6007_s9 + $0x90] sm:$0xff] }
 0x88c   : > { %3241 = vmatprep.subr.mxu1 %v5449_v47 }
 0x88d   : > { %3242 = vmatpush1.msra.mxu1 %v3192_v7  ;;  %v4139_v7 = vld [vmem:[%s6007_s9 + $0x1b0] sm:$0xff] }
 0x88e   : > { %3243 = vmatprep.subr.mxu1 %v5449_v47 }
 0x88f   : > { %3244 = vmatpush1.msra.mxu1 %v3191_v8  ;;  %v4092_v8 = vld [vmem:[%s6007_s9 + $0x88] sm:$0xff] }
 0x890   : > { %3245 = vmatprep.subr.mxu1 %v5449_v47 }
 0x891   : > { %3246 = vmatpush1.msra.mxu1 %v3190_v9  ;;  %v4138_v9 = vld [vmem:[%s6007_s9 + $0x1a8] sm:$0xff] }
 0x892   : > { %3247 = vmatprep.subr.mxu1 %v5449_v47 }
 0x893   : > { %3248 = vmatpush1.msra.mxu1 %v3189_v10  ;;  %v4091_v10 = vld [vmem:[%s6007_s9 + $0x80] sm:$0xff] }
 0x894   : > { %3249 = vmatprep.subr.mxu1 %v5449_v47 }
 0x895   : > { %3250 = vmatpush1.msra.mxu1 %v3188_v14  ;;  %v4137_v14 = vld [vmem:[%s6007_s9 + $0x1a0] sm:$0xff] }
 0x896   : > { %3251 = vmatprep.subr.mxu1 %v5449_v47 }
 0x897   : > { %3252 = vmatpush1.msra.mxu1 %v3187_v48  ;;  %v4090_v48 = vld [vmem:[%s6007_s9 + $0x78] sm:$0xff] }
 0x898   : > { %3265 = vmatprep.subr.mxu1 %v5449_v47 }
 0x899   : > { %4076 = vmatpush2.msk.msra.mxu1 %vm3217_vm4, %v3212_v5  ;;  %v4136_v5 = vld [vmem:[%s6007_s9 + $0x198] sm:$0xff] }
 0x89a   : > { %3267 = vmatprep.subr.mxu1 %v5449_v47 }
 0x89b   : > { %3268 = vmatpush2.msra.mxu1 %v3211_v63  ;;  %v4089_v63 = vld [vmem:[%s6007_s9 + $0x70] sm:$0xff] }
 0x89c   : > { %3269 = vmatprep.subr.mxu1 %v5449_v47 }
 0x89d   : > { %3270 = vmatpush2.msra.mxu1 %v3210_v13  ;;  %v4135_v13 = vld [vmem:[%s6007_s9 + $0x190] sm:$0xff] }
 0x89e   : > { %3271 = vmatprep.subr.mxu1 %v5449_v47 }
 0x89f   : > { %3272 = vmatpush2.msra.mxu1 %v3209_v12 }
 0x8a0   : > { %3273 = vmatprep.subr.mxu1 %v5449_v47 }
 0x8a1   : > { %3274 = vmatpush2.msra.mxu1 %v3208_v11  ;;  %v4113_v11 = vld [vmem:[%s6007_s9 + $0x110] sm:$0x1] }
 0x8a2   : > { %3275 = vmatprep.subr.mxu1 %v5449_v47 }
 0x8a3   : > { %3276 = vmatpush2.msra.mxu1 %v3207_v15  ;;  %v4134_v15 = vld [vmem:[%s6007_s9 + $0x188] sm:$0xff] }
 0x8a4   : > { %3277 = vmatprep.subr.mxu1 %v5449_v47 }
 0x8a5   : > { %3278 = vmatpush2.msra.mxu1 %v3206_v17 }
 0x8a6   : > { %3279 = vmatprep.subr.mxu1 %v5449_v47 }
 0x8a7   : > { %3280 = vmatpush2.msra.mxu1 %v3205_v16  ;;  %v4112_v16 = vld [vmem:[%s6007_s9 + $0x108] sm:$0xff] }
 0x8a8   : > { %3281 = vmatprep.subr.mxu1 %v5449_v47 }
 0x8a9   : > { %3282 = vmatpush2.msra.mxu1 %v3204_v18  ;;  %v4111_v18 = vld [vmem:[%s6007_s9 + $0x100] sm:$0xff] }
 0x8aa   : > { %3283 = vmatprep.subr.mxu1 %v5449_v47 }
 0x8ab   : > { %3284 = vmatpush2.msra.mxu1 %v3203_v19  ;;  %v4110_v19 = vld [vmem:[%s6007_s9 + $0xf8] sm:$0xff] }
 0x8ac   : > { %4324 = vmatprep.subr.mxu1 %v5449_v47 }
 0x938   : > { %v3158_v23 = vpop.f32.mrf.mxu1 }
 0x939   : > { %v5585_v25 = vadd.f32 %v3158_v23, %v3087_v3  ;;  %v4082_v23 = vld [vmem:[%s6007_s9 + $0x48] sm:$0xff] }
 0x93a   : > { %v3160_v26 = vpop.f32.mrf.mxu1 }
 0x93b   : > { %v3163_v27 = vmax.f32 %v5585_v25, 0.0  ;;  %v5592_v28 = vadd.f32 %v3160_v26, %v3087_v3  ;;  %v4120_v3 = vld [vmem:[%s6007_s9 + $0x138] sm:$0xff]  ;;  %v4119_v25 = vld [vmem:[%s6007_s9 + $0x130] sm:$0xff]  ;;  %v4118_v26 = vld [vmem:[%s6007_s9 + $0x128] sm:$0xff] }
 0x93d   : > { %v3164_v52 = vmax.f32 %v5592_v28, 0.0  ;;  %3167 = vrot.lane.b32.xlu1 %v3163_v27, %s6031_s29  ;;  %v4117_v28 = vld [vmem:[%s6007_s9 + $0x120] sm:$0xff] }
 0x93f   : > { %3169 = vrot.lane.b32.xlu0 %v3164_v52, %s6031_s29  ;;  %s501_s29 = scalar_lea.vmem [#allocation8], %s500_s25 }
 0x940   : > { %s3988_s18 = sshll.u32 %s501_s29, 4  ;;  %s3989_s18 = int_to_ptr.vmem [resolvable:$true] %s3988_s18 }
 0x941   : > { %s4534_s26 = scalar_lea.vmem %s3989_s18, 16  ;;  %p4541_p11 = scmp.lt.s32.totalorder %s3989_s18, %s4539_s22 }
 0x942   : > { %p4535_p6 = scmp.ne.s32.totalorder %s3989_s18, %s4534_s26 }
 0x944   : > { %p4536_p9 = pnand %p4535_p6, %p4740_p5 }
 0x946   : > { %p4537_p10 = pneg %p4536_p9 }
 0x9af   : > { %v3168_v30 = vpop.permute.xlu1 %3167 }
 0x9b1   : > { %v3170_v32 = vpop.permute.xlu0 %3169 }
 0x9b2   : > { %v3171_v34 = vsel %vm550_vm8, %v3168_v30, %v3170_v32  ;;  %v3175_v57 = vmax.f32 %v3164_v52, %v3170_v32  ;;  %vm3213_vm8 = vcmask 629760   ;;  %v4095_v52 = vld [vmem:[%s6007_s9 + $0xa0] sm:$0x1]  ;;  %v4130_v32 = vld [vmem:[%s6007_s9 + $0x178] sm:$0xff] }
 0x9b3   : > { %v3174_v59 = vmax.f32 %v3163_v27, %v3171_v34  ;;  %v4080_v27 = vld [vmem:[%s6007_s9 + $0x38] sm:$0xff]  ;;  %v4131_v30 = vld [vmem:[%s6007_s9 + $0x180] sm:$0x1]  ;;  %v4128_v34 = vld [vmem:[%s6007_s9 + $0x168] sm:$0xff] }
 0x9b4   : > { %3180 = vrot.lane.b32.xlu0 %v3175_v57, %s4619_s20 }
 0x9b5   : > { %3178 = vrot.lane.b32.xlu1 %v3174_v59, %s4619_s20  ;;  %s4540_s20 = scalar_lea.vmem %s4539_s22, 32 }
 0x9b6   : > { %p4542_p12 = scmp.lt.s32.totalorder %s4540_s20, %s4534_s26 }
 0x9b8   : > { %p4543_p13 = por %p4542_p12, %p4541_p11 }
 0x9ba   : > { %p4544_p0 = pnand %p4543_p13, %p4537_p10 }
 0xa26   : > { %v3181_v37 = vpop.permute.xlu0 %3180 }
 0xa27   : > { %v3186_v4 = vmax.f32 %v3175_v57, %v3181_v37  ;;  %v3179_v58 = vpop.permute.xlu1 %3178  ;;  %v4127_v57 = vld [vmem:[%s6007_s9 + $0x160] sm:$0xff] }
 0xa28   : > { %v3182_v42 = vsel %vm2772_vm6, %v3179_v58, %v3181_v37 }
 0xa29   : > { %v3185_v24 = vmax.f32 %v3174_v59, %v3182_v42  ;;  %4077 = vmatprep.mubr.msk.f32.mxu1 %vm3213_vm8, %v3186_v4  ;;  %v4126_v59 = vld [vmem:[%s6007_s9 + $0x158] sm:$0xff] }
 0xa2b   : > { %3286 = vmatmul.mubr.f32.vlgmr.msra.gmra.mxu1 %v3185_v24 }
 0xa2c   : > { %4325 = vmatpush3.msk.msra.mxu1 %vm3303_vm7, %v4104_v29  ;;  %4338 = vmatprep.mubr.msk.f32.mxu1 %vm4613_vm10, %v5449_v47 }
 0xa2d   : > { %4326 = vmatprep.subr.mxu1 %v5449_v47 }
 0xa2e   : > { %4327 = vmatpush3.msra.mxu1 %v4103_v33 }
 0xa2f   : > { %4328 = vmatprep.subr.mxu1 %v5449_v47 }
 0xa30   : > { %4329 = vmatpush3.msra.mxu1 %v4102_v36 }
 0xa31   : > { %4330 = vmatprep.subr.mxu1 %v5449_v47 }
 0xa32   : > { %4331 = vmatpush3.msra.mxu1 %v4101_v43 }
 0xa33   : > { %4332 = vmatprep.subr.mxu1 %v5449_v47 }
 0xa34   : > { %4333 = vmatpush3.msra.mxu1 %v4100_v44 }
 0xa35   : > { %4334 = vmatprep.subr.mxu1 %v5449_v47 }
 0xa36   : > { %4335 = vmatpush3.msra.mxu1 %v4099_v45 }
 0xa37   : > { %4336 = vmatprep.subr.mxu1 %v5449_v47 }
 0xa38   : > { %4337 = vmatpush3.msra.mxu1 %v4098_v46 }
 0xa39   : > { %4358 = vmatprep.subr.mxu1 %v5449_v47 }
 0xaeb   : > { %v5762_v50 = vpop.f32.mrf.mxu1 }
 0xaec   : > { %4288 = vmatmul.mubr.msk.f32.vlgmr.msra.gmra.mxu0 %vm3299_vm9, %v5762_v50  ;;  %v3556_v54 = vrot.slane %v5762_v50, 3  ;;  %v3386_v51 = vrot.slane %v5762_v50, 1  ;;  %v3726_v61 = vrot.slane %v5762_v50, 5  ;;  %v3471_v12 = vrot.slane %v5762_v50, 2 }
 0xaed   : > { %4291 = vmatpush3.msk.msra.mxu0 %vm3303_vm7, %v4086_v49  ;;  %v3289_v6 = vpop.f32.mrf.mxu1  ;;  %4304 = vmatprep.mubr.msk.f32.mxu0 %vm4613_vm10, %v5449_v47  ;;  %v3896_v17 = vrot.slane %v5762_v50, 7  ;;  %v3641_v41 = vrot.slane %v5762_v50, 4  ;;  %v3811_v40 = vrot.slane %v5762_v50, 6 }
 0xaee   : > { %4292 = vmatprep.subr.mxu0 %v5449_v47  ;;  %4339 = vmatmul.mubr.msk.f32.vlgmr.msra.gmra.mxu1 %vm3299_vm9, %v3556_v54 }
 0xaef   : > { %4293 = vmatpush3.msra.mxu0 %v4085_v53  ;;  %4359 = vmatpush3.msk.msra.mxu1 %vm3303_vm7, %v4122_v55 }
 0xaf0   : > { %4294 = vmatprep.subr.mxu0 %v5449_v47  ;;  %4360 = vmatprep.subr.mxu1 %v5449_v47 }
 0xaf1   : > { %4295 = vmatpush3.msra.mxu0 %v4084_v38  ;;  %4361 = vmatpush3.msra.mxu1 %v4121_v56 }
 0xaf2   : > { %4296 = vmatprep.subr.mxu0 %v5449_v47  ;;  %4362 = vmatprep.subr.mxu1 %v5449_v47 }
 0xaf3   : > { %4297 = vmatpush3.msra.mxu0 %v4083_v2  ;;  %4363 = vmatpush3.msra.mxu1 %v4120_v3 }
 0xaf4   : > { %4298 = vmatprep.subr.mxu0 %v5449_v47  ;;  %4364 = vmatprep.subr.mxu1 %v5449_v47 }
 0xaf5   : > { %4299 = vmatpush3.msra.mxu0 %v4082_v23  ;;  %4365 = vmatpush3.msra.mxu1 %v4119_v25 }
 0xaf6   : > { %4300 = vmatprep.subr.mxu0 %v5449_v47  ;;  %4366 = vmatprep.subr.mxu1 %v5449_v47 }
 0xaf7   : > { %4301 = vmatpush3.msra.mxu0 %v4081_v20  ;;  %4367 = vmatpush3.msra.mxu1 %v4118_v26 }
 0xaf8   : > { %4302 = vmatprep.subr.mxu0 %v5449_v47  ;;  %4368 = vmatprep.subr.mxu1 %v5449_v47 }
 0xaf9   : > { %4303 = vmatpush3.msra.mxu0 %v4080_v27  ;;  %4369 = vmatpush3.msra.mxu1 %v4117_v28 }
 0xafa   : > { %4305 = vmatmul.mubr.msk.f32.vlgmr.msra.gmra.mxu0 %vm3299_vm9, %v3386_v51  ;;  %4307 = vmatprep.subr.mxu0 %v5449_v47 }
 0xafb   : > { %4370 = vmatprep.subr.mxu1 %v5449_v47  ;;  %4308 = vmatpush3.msk.msra.mxu0 %vm3303_vm7, %v4095_v52 }
 0xafc   : > { %4371 = vmatpush3.msra.mxu1 %v4116_v60  ;;  %4372 = vmatprep.mubr.msk.f32.mxu1 %vm4613_vm10, %v5449_v47 }
 0xafd   : > { %4309 = vmatprep.subr.mxu0 %v5449_v47  ;;  %4373 = vmatmul.mubr.msk.f32.vlgmr.msra.gmra.mxu1 %vm3299_vm9, %v3726_v61 }
 0xafe   : > { %4392 = vmatprep.subr.mxu1 %v5449_v47  ;;  %4310 = vmatpush3.msra.mxu0 %v4094_v62 }
 0xaff   : > { %4393 = vmatpush3.msk.msra.mxu1 %vm3303_vm7, %v4140_v0  ;;  %4311 = vmatprep.subr.mxu0 %v5449_v47 }
 0xb00   : > { %4394 = vmatprep.subr.mxu1 %v5449_v47  ;;  %4312 = vmatpush3.msra.mxu0 %v4093_v1 }
 0xb01   : > { %4395 = vmatpush3.msra.mxu1 %v4139_v7  ;;  %4313 = vmatprep.subr.mxu0 %v5449_v47 }
 0xb02   : > { %4396 = vmatprep.subr.mxu1 %v5449_v47  ;;  %4314 = vmatpush3.msra.mxu0 %v4092_v8 }
 0xb03   : > { %4397 = vmatpush3.msra.mxu1 %v4138_v9  ;;  %4315 = vmatprep.subr.mxu0 %v5449_v47 }
 0xb04   : > { %4398 = vmatprep.subr.mxu1 %v5449_v47  ;;  %4316 = vmatpush3.msra.mxu0 %v4091_v10 }
 0xb05   : > { %4399 = vmatpush3.msra.mxu1 %v4137_v14  ;;  %4317 = vmatprep.subr.mxu0 %v5449_v47 }
 0xb06   : > { %4400 = vmatprep.subr.mxu1 %v5449_v47  ;;  %4318 = vmatpush3.msra.mxu0 %v4090_v48 }
 0xb07   : > { %4401 = vmatpush3.msra.mxu1 %v4136_v5  ;;  %4319 = vmatprep.subr.mxu0 %v5449_v47 }
 0xb08   : > { %4402 = vmatprep.subr.mxu1 %v5449_v47  ;;  %4320 = vmatpush3.msra.mxu0 %v4089_v63 }
 0xb09   : > { %4321 = vmatprep.mubr.msk.f32.mxu0 %vm4613_vm10, %v5449_v47  ;;  %4403 = vmatpush3.msra.mxu1 %v4135_v13 }
 0xb0a   : > { %4322 = vmatmul.mubr.msk.f32.vlgmr.msra.gmra.mxu0 %vm3299_vm9, %v3471_v12  ;;  %4341 = vmatprep.subr.mxu0 %v5449_v47 }
 0xb0b   : > { %4404 = vmatprep.subr.mxu1 %v5449_v47  ;;  %4342 = vmatpush3.msk.msra.mxu0 %vm3303_vm7, %v4113_v11 }
 0xb0c   : > { %4405 = vmatpush3.msra.mxu1 %v4134_v15  ;;  %4406 = vmatprep.mubr.msk.f32.mxu1 %vm4613_vm10, %v5449_v47 }
 0xb0d   : > { %4343 = vmatprep.subr.mxu0 %v5449_v47  ;;  %4407 = vmatmul.mubr.msk.f32.vlgmr.msra.gmra.mxu1 %vm3299_vm9, %v3896_v17 }
 0xb0e   : > { %4344 = vmatpush3.msra.mxu0 %v4112_v16  ;;  %4355 = vmatprep.mubr.msk.f32.mxu0 %vm4613_vm10, %v5449_v47 }
 0xb0f   : > { %4345 = vmatprep.subr.mxu0 %v5449_v47 }
 0xb10   : > { %4346 = vmatpush3.msra.mxu0 %v4111_v18 }
 0xb11   : > { %4347 = vmatprep.subr.mxu0 %v5449_v47 }
 0xb12   : > { %4348 = vmatpush3.msra.mxu0 %v4110_v19 }
 0xb13   : > { %4349 = vmatprep.subr.mxu0 %v5449_v47 }
 0xb14   : > { %4350 = vmatpush3.msra.mxu0 %v4109_v21 }
 0xb15   : > { %4351 = vmatprep.subr.mxu0 %v5449_v47 }
 0xb16   : > { %4352 = vmatpush3.msra.mxu0 %v4108_v35 }
 0xb17   : > { %4353 = vmatprep.subr.mxu0 %v5449_v47 }
 0xb18   : > { %4354 = vmatpush3.msra.mxu0 %v4107_v22 }
 0xb19   : > { %4356 = vmatmul.mubr.msk.f32.vlgmr.msra.gmra.mxu0 %vm3299_vm9, %v3641_v41  ;;  %4375 = vmatprep.subr.mxu0 %v5449_v47 }
 0xb1a   : > { %4376 = vmatpush3.msk.msra.mxu0 %vm3303_vm7, %v4131_v30  ;;  %4389 = vmatprep.mubr.msk.f32.mxu0 %vm4613_vm10, %v5449_v47  ;;  %vm3973_vm10 = vcmask 73728  }
 0xb1b   : > { %4377 = vmatprep.subr.mxu0 %v5449_v47 }
 0xb1c   : > { %4378 = vmatpush3.msra.mxu0 %v4130_v32 }
 0xb1d   : > { %4379 = vmatprep.subr.mxu0 %v5449_v47 }
 0xb1e   : > { %4380 = vmatpush3.msra.mxu0 %v4129_v31 }
 0xb1f   : > { %4381 = vmatprep.subr.mxu0 %v5449_v47 }
 0xb20   : > { %4382 = vmatpush3.msra.mxu0 %v4128_v34 }
 0xb21   : > { %4383 = vmatprep.subr.mxu0 %v5449_v47 }
 0xb22   : > { %4384 = vmatpush3.msra.mxu0 %v4127_v57 }
 0xb23   : > { %4385 = vmatprep.subr.mxu0 %v5449_v47 }
 0xb24   : > { %4386 = vmatpush3.msra.mxu0 %v4126_v59 }
 0xb25   : > { %4387 = vmatprep.subr.mxu0 %v5449_v47  ;;  %v3291_v47 = vld [vmem:[%s6008_s10] sm:$0x1] }
 0xb26   : > { %4388 = vmatpush3.msra.mxu0 %v4125_v39 }
 0xb27   : > { %4390 = vmatmul.mubr.msk.f32.vlgmr.msra.gmra.mxu0 %vm3299_vm9, %v3811_v40 }
 0xbac   : > { %v3373_v37 = vpop.f32.mrf.mxu0 }
 0xbad   : > { %v3377_v49 = vadd.f32 %v3373_v37, %v3291_v47 }
 0xbae   : > { %v4289_v4 = vpop.f32.mrf.mxu0  ;;  %v3628_v58 = vpop.f32.mrf.mxu1 }
 0xbb0   : > { %v4340_v42 = vpop.f32.mrf.mxu1 }
 0xbba   : > { %v3458_v24 = vpop.f32.mrf.mxu0 }
 0xbbb   : > { %v3462_v53 = vadd.f32 %v3458_v24, %v3377_v49 }
 0xbbc   : > { %v4306_v29 = vpop.f32.mrf.mxu0 }
 0xbbd   : > { %v3798_v33 = vpop.f32.mrf.mxu1 }
 0xbbf   : > { %v4374_v36 = vpop.f32.mrf.mxu1 }
 0xbca   : > { %v3543_v43 = vpop.f32.mrf.mxu0 }
 0xbcb   : > { %v3547_v55 = vadd.f32 %v3543_v43, %v3462_v53 }
 0xbcc   : > { %v4323_v44 = vpop.f32.mrf.mxu0 }
 0xbcd   : > { %v3968_v45 = vpop.f32.mrf.mxu1  ;;  %v3632_v6 = vadd.f32 %v3628_v58, %v3547_v55 }
 0xbcf   : > { %v4408_v46 = vpop.f32.mrf.mxu1 }
 0xbd9   : > { %v3713_v50 = vpop.f32.mrf.mxu0 }
 0xbda   : > { %v3717_v38 = vadd.f32 %v3713_v50, %v3632_v6 }
 0xbdb   : > { %v4357_v54 = vpop.f32.mrf.mxu0 }
 0xbdc   : > { %v3802_v56 = vadd.f32 %v3798_v33, %v3717_v38 }
 0xbe7   : > { %v3883_v2 = vpop.f32.mrf.mxu0 }
 0xbe8   : > { %v3887_v3 = vadd.f32 %v3883_v2, %v3802_v56 }
 0xbe9   : > { %v4391_v23 = vpop.f32.mrf.mxu0 }
 0xbea   : > { %v3972_v25 = vadd.f32 %v3968_v45, %v3887_v3 }
 0xbec   : > { %3974 = vst.msk [vmem:[%s501_s29] sm:$0x1] %vm3973_vm10, %v3972_v25 }
 0xbed   : > { %4547 = shalt.err (!%p4544_p0)
}
 0xbee   : > { %s4548_s0 = scalar_lea.hbm %s3986_s27, 16  ;;  %s4552_s29 = scalar_lea.hbm %s6013_s15, 32 }
 0xbef   : > { %p4549_p1 = scmp.ne.s32.totalorder %s3986_s27, %s4548_s0  ;;  %p4553_p4 = scmp.lt.s32.totalorder %s3986_s27, %s6013_s15 }
 0xbf0   : > { %p4554_p7 = scmp.lt.s32.totalorder %s4552_s29, %s4548_s0 }
 0xbf1   : > { %p4550_p2 = pnand %p4549_p1, %p4740_p5 }
 0xbf2   : > { %p4555_p8 = por %p4554_p7, %p4553_p4 }
 0xbf3   : > { %p4551_p3 = pneg %p4550_p2 }
 0xbf5   : > { %p4556_p6 = pnand %p4555_p8, %p4551_p3 }
 0xbf7   : > { %4559 = shalt.err (!%p4556_p6)
}
 0xbf8   : > { %4413 = dma.vmem_to_hbm [thread:$0]  (%p4740_p5), %s3989_s18, 16, %s3986_s27, %s3976_s30  }
 0xbf9 PF: > { %s6032_s26 = sld [smem:[#allocation11_spill]]  ;;  %p4425_p9 = scmp.ge.s32.totalorder %s4598_s21, 2 }
 0xbfa   : > { %s6033_s17 = sld [smem:[#allocation15_spill]] }
 0xbff   : > { %s4000_s22 = sand.u32 1, %s6032_s26  }
 0xc00   : > { %p6034_p10 = scmp.ne.s32.totalorder %s6033_s17, 0  ;;  %s4001_s20 = scalar_lea.sflag [#allocation7], %s4000_s22 }
 0xc02   : > { %p4420_p11 = pnand %p4425_p9, %p6034_p10 }
 0xc04   : > { %p4421_p12 = pneg %p4420_p11 }
 0xc06   : > { %4581 = dma.done.wait (%p4421_p12), %s4001_s20, 16  }
 0xc07   : > { %4583 = vsyncadd (%p4421_p12), %s4001_s20, 4294967280  ;;  %s6035_s21 = sld [smem:[#allocation13_spill]]  ;;  %s6038_s18 = smov %s4590_s19 }
 0xc08   : > { %s6036_s0 = sld [smem:[#allocation12_spill]] }
 0xc09   : > { %s6037_s20 = sld [smem:[#allocation14_spill]] }
 0xc0d   : > { %p26_p13 = scmp.ge.s32.totalorder %s6035_s21, 4  }
 0xc0e   : > { %s6039_s19 = smov %s6036_s0 }
 0xc0f   :  { %28 = sbr.rel (!%p26_p13) target bundleno = 6 (0x6), region = 127 }
 0xc14   :  { %4005 = vsyncpa [#allocation6], 1 }
 0xc15   :  { %4007 = vsyncpa [#allocation6 + $0x1], 1 }
 0xc16   :  { %4008 = vsyncpa [#allocation7], 1 }
 0xc17   :  { %4010 = vsyncpa [#allocation7 + $0x1], 1 }

</bundles_post_ra>
